<compile_context>
chip_gen: v7x
topology: tpu7x:2x2x1
jax: 0.10.0
libtpu: 0.0.40
codegen_flags: <defaults>
</compile_context>

<pallas_src>
import math
import functools

import jax
import jax.numpy as jnp
from jax.experimental import pallas as pl
from jax.experimental.pallas import tpu as pltpu  # noqa: F401  (TPU backend)

EPS = 1e-5
LANE = 128
_SQRT1_2 = 1.0 / math.sqrt(2.0)


# ----------------------------- in-kernel helpers -----------------------------

def _erf(x):
    # TODO(synk): switch to jax.lax.erf once its Mosaic lowering is confirmed;
    # this Numerical-Recipes erfc approximation is f32-exact (|rel err| < 1.2e-7)
    # and keeps nn.GELU()'s exact (erf) semantics.
    a = jnp.abs(x)
    t = 1.0 / (1.0 + 0.5 * a)
    poly = -1.26551223 + t * (1.00002368 + t * (0.37409196 + t * (0.09678418 +
           t * (-0.18628806 + t * (0.27886807 + t * (-1.13520398 + t * (1.48851587 +
           t * (-0.82215223 + t * 0.17087277))))))))
    erfc = t * jnp.exp(-a * a + poly)
    return jnp.where(x >= 0.0, 1.0 - erfc, erfc - 1.0)


def _gelu_exact(x):
    # nn.GELU() default == exact (erf-based) GELU.
    return 0.5 * x * (1.0 + _erf(x * _SQRT1_2))


def _layernorm(v, w, b):
    # Matches the reference LayerNorm exactly: (x - mean) / (std + eps),
    # std = sqrt(biased var); one (exact) reciprocal per row, then multiply.
    mean = jnp.mean(v, axis=-1, keepdims=True)
    cen = v - mean
    var = jnp.mean(cen * cen, axis=-1, keepdims=True)
    inv = pl.reciprocal(jnp.sqrt(var) + EPS, approx=False)
    return w * (cen * inv) + b


# ----------------------------- fused Pallas kernel ----------------------------

def _fused_kernel(x_ref, mask_ref,
                  ln1w_ref, ln1b_ref, wqkvT_ref, woT_ref,
                  ln2w_ref, ln2b_ref, winT_ref, bin_ref, woutT_ref, bout_ref,
                  lnfw_ref, lnfb_ref, weT_ref,
                  o_ref, *, n_layers, n_heads, batch, seq):
    """Whole forward pass: n_layers blocks + final LN + tied unembedding."""
    B, H, S = batch, n_heads, seq
    x = x_ref[...]                               # (B*S, D) f32
    D = x.shape[-1]
    BHS = B * H * S
    # Precomputed additive mask (0 on valid causal entries inside each (b,h)
    # 32x32 block, -1e9 elsewhere -- including all cross-(b,h) blocks).
    mask = mask_ref[...]                         # (BHS, BHS) f32

    # Static unroll: n_layers is small. At scale, use a layer grid axis instead
    # (keeps VMEM bounded and live ranges short; required on v7x's 64 MiB VMEM).
    for l in range(n_layers):
        # ---------------- attention sub-block (packed over batch x heads) ----
        ln1 = _layernorm(x, ln1w_ref[l], ln1b_ref[l])          # (B*S, D)
        # One fused broadcast multiply for all of Q/K/V over all heads.
        # wqkvT_ref[l]: (3H, S, D); q rows carry the pre-folded 1/sqrt(d_head).
        qkv = ln1.reshape(B, 1, S, D) * wqkvT_ref[l]           # (B, 3H, S, D)
        q = qkv[:, :H].reshape(BHS, D)                         # (B*H*S, D)
        k = qkv[:, H:2 * H].reshape(BHS, D)
        v = qkv[:, 2 * H:].reshape(BHS, D)

        # One full-width score matmul for all (b,h) pairs: (BHS,D)x(D,BHS).
        s = jax.lax.dot_general(q, k, (((1,), (1,)), ((), ())),
                                preferred_element_type=jnp.float32)  # (BHS, BHS)
        s = s + mask                                            # single VPU add
        s = s - jnp.max(s, axis=-1, keepdims=True)              # lane-dense reduce
        p = jnp.exp(s)
        p = p * pl.reciprocal(jnp.sum(p, axis=-1, keepdims=True), approx=True)
        # One PV matmul for all (b,h) pairs: (BHS,BHS)x(BHS,D).
        z = jnp.dot(p, v, preferred_element_type=jnp.float32)   # (BHS, D)

        # Diagonal W_O product + head sum (reference 'bhsd,hds->bsd').
        attn = jnp.sum(z.reshape(B, H, S, D) * woT_ref[l], axis=1)   # (B, S, D)
        x = x + attn.reshape(B * S, D)

        # ---------------- MLP sub-block (single (B*S,D)@(D,M) dots) ----------
        ln2 = _layernorm(x, ln2w_ref[l], ln2b_ref[l])
        pre = jnp.dot(ln2, winT_ref[l],
                      preferred_element_type=jnp.float32) + bin_ref[l]
        act = _gelu_exact(pre)
        x = x + jnp.dot(act, woutT_ref[l],
                        preferred_element_type=jnp.float32) + bout_ref[l]

    # ---------------- final LayerNorm + tied unembedding ----------------
    y = _layernorm(x, lnfw_ref[...], lnfb_ref[...])
    # Vocab zero-padded to 128 lanes -> unmasked, lane-dense output store.
    o_ref[...] = jnp.dot(y, weT_ref[...], preferred_element_type=jnp.float32)


# ----------------------------- one-time weight prep ----------------------------

def prep_params(params, *, d_head):
    """Hoisted, one-time preprocessing: transposes, head/qkv slab concatenation,
    layer stacking, vocab lane-padding, and folding 1/sqrt(d_head) into W_Q."""
    V, D = params['W_E'].shape
    scale = 1.0 / math.sqrt(d_head)
    blocks = params['blocks']

    def stack(fn):
        return jnp.stack([fn(b) for b in blocks], axis=0)

    def qkv_slab(b):
        wq = jnp.transpose(b['W_Q'], (0, 2, 1)) * scale        # (H, S, D)
        wk = jnp.transpose(b['W_K'], (0, 2, 1))
        wv = jnp.transpose(b['W_V'], (0, 2, 1))
        return jnp.concatenate([wq, wk, wv], axis=0)           # (3H, S, D)

    v_pad = max(LANE, ((V + LANE - 1) // LANE) * LANE)
    weT_pad = jnp.zeros((D, v_pad), jnp.float32).at[:, :V].set(params['W_E'].T)

    return dict(
        ln1_w=stack(lambda b: b['ln1_w'].reshape(1, D)),
        ln1_b=stack(lambda b: b['ln1_b'].reshape(1, D)),
        wqkvT=stack(qkv_slab),                                  # (L, 3H, S, D)
        woT=stack(lambda b: jnp.transpose(b['W_O'], (0, 2, 1))),  # (L, H, S, D)
        ln2_w=stack(lambda b: b['ln2_w'].reshape(1, D)),
        ln2_b=stack(lambda b: b['ln2_b'].reshape(1, D)),
        w_inT=stack(lambda b: b['W_in'].T),                     # (L, D, d_mlp)
        b_in=stack(lambda b: b['b_in'].reshape(1, -1)),
        w_outT=stack(lambda b: b['W_out'].T),                   # (L, d_mlp, D)
        b_out=stack(lambda b: b['b_out'].reshape(1, D)),
        lnf_w=params['lnf_w'].reshape(1, D),
        lnf_b=params['lnf_b'].reshape(1, D),
        weT_pad=weT_pad,
    )


# ----------------------------- forward wrapper ----------------------------

@functools.partial(jax.jit, static_argnames=("n_heads",))
def transformer_forward(input_ids, W_E, pos, pp, *, n_heads):
    B, S = input_ids.shape
    V, D = W_E.shape
    # Glue: embedding gather + positional add (not a hot-path matmul).
    x = (W_E[input_ids] + pos[:S]).reshape(B * S, D)

    # Precomputed additive attention mask for the packed (b,h)-block layout:
    # 0 where (same (b,h) block AND col <= row), -1e9 elsewhere. Constant-folded.
    n = B * n_heads * S
    idx = jnp.arange(n, dtype=jnp.int32)
    blk = idx // S
    posn = idx % S
    valid = (blk[:, None] == blk[None, :]) & (posn[None, :] <= posn[:, None])
    mask = jnp.where(valid, jnp.float32(0.0), jnp.float32(-1e9))

    n_layers = pp['wqkvT'].shape[0]
    v_pad = pp['weT_pad'].shape[1]
    kernel = functools.partial(_fused_kernel, n_layers=n_layers,
                               n_heads=n_heads, batch=B, seq=S)
    # Single pallas_call, no grid: all operands live whole in VMEM (~1 MB).
    logits_pad = pl.pallas_call(
        kernel,
        out_shape=jax.ShapeDtypeStruct((B * S, v_pad), jnp.float32),
    )(x, mask,
      pp['ln1_w'], pp['ln1_b'], pp['wqkvT'], pp['woT'],
      pp['ln2_w'], pp['ln2_b'], pp['w_inT'], pp['b_in'], pp['w_outT'],
      pp['b_out'], pp['lnf_w'], pp['lnf_b'], pp['weT_pad'])
    return logits_pad[:, :V].reshape(B, S, V)


# ----------------------------- parameter init ---------------------------------

def init_params(key, *, d_model, n_layers, n_heads, d_mlp, vocab_size, d_head,
                max_seq_len):
    std = 0.02
    keys = jax.random.split(key, 2 + n_layers)
    W_E = std * jax.random.normal(keys[0], (vocab_size, d_model), jnp.float32)
    pos = std * jax.random.normal(keys[1], (max_seq_len, d_model), jnp.float32)
    blocks = []
    for i in range(n_layers):
        bk = jax.random.split(keys[2 + i], 6)
        blocks.append(dict(
            ln1_w=jnp.ones((d_model,), jnp.float32),
            ln1_b=jnp.zeros((d_model,), jnp.float32),
            W_Q=std * jax.random.normal(bk[0], (n_heads, d_head, d_model), jnp.float32),
            W_K=std * jax.random.normal(bk[1], (n_heads, d_head, d_model), jnp.float32),
            W_V=std * jax.random.normal(bk[2], (n_heads, d_head, d_model), jnp.float32),
            W_O=std * jax.random.normal(bk[3], (n_heads, d_model, d_head), jnp.float32),
            ln2_w=jnp.ones((d_model,), jnp.float32),
            ln2_b=jnp.zeros((d_model,), jnp.float32),
            W_in=std * jax.random.normal(bk[4], (d_mlp, d_model), jnp.float32),
            b_in=jnp.zeros((d_mlp,), jnp.float32),
            W_out=std * jax.random.normal(bk[5], (d_model, d_mlp), jnp.float32),
            b_out=jnp.zeros((d_model,), jnp.float32),
        ))
    return dict(
        W_E=W_E, pos=pos, blocks=blocks,
        lnf_w=jnp.ones((d_model,), jnp.float32),
        lnf_b=jnp.zeros((d_model,), jnp.float32),
    )


# ----------------------------- main --------------------------------------------

if __name__ == "__main__":
    # Reference einsums require seq_len == d_model == d_head.
    B = 2
    S = 32
    D_MODEL = 32
    D_HEAD = 32
    N_HEADS = 2
    D_MLP = 64
    N_LAYERS = 2
    VOCAB = 64
    MAX_SEQ = 64
    assert S == D_MODEL == D_HEAD, "degenerate reference einsum requires S == d_model == d_head"

    key = jax.random.PRNGKey(0)
    pkey, ikey = jax.random.split(key)
    params = init_params(pkey, d_model=D_MODEL, n_layers=N_LAYERS,
                         n_heads=N_HEADS, d_mlp=D_MLP, vocab_size=VOCAB,
                         d_head=D_HEAD, max_seq_len=MAX_SEQ)
    prepped = prep_params(params, d_head=D_HEAD)          # one-time weight prep
    input_ids = jax.random.randint(ikey, (B, S), 0, VOCAB, dtype=jnp.int32)

    logits = transformer_forward(input_ids, params['W_E'], params['pos'],
                                 prepped, n_heads=N_HEADS)
    logits = jax.block_until_ready(logits)

    assert logits.shape == (B, S, VOCAB)
    assert logits.dtype == jnp.float32
    assert bool(jnp.all(jnp.isfinite(logits)))
    print("KERNEL_OK")
</pallas_src>

<mosaic_0001>
module attributes {stable_mosaic.version = 11 : i64} {
  func.func @_fused_kernel(%arg0: memref<64x32xf32, #tpu.memory_space<vmem>>, %arg1: memref<128x128xf32, #tpu.memory_space<vmem>>, %arg2: memref<2x1x32xf32, #tpu.memory_space<vmem>>, %arg3: memref<2x1x32xf32, #tpu.memory_space<vmem>>, %arg4: memref<2x6x32x32xf32, #tpu.memory_space<vmem>>, %arg5: memref<2x2x32x32xf32, #tpu.memory_space<vmem>>, %arg6: memref<2x1x32xf32, #tpu.memory_space<vmem>>, %arg7: memref<2x1x32xf32, #tpu.memory_space<vmem>>, %arg8: memref<2x32x64xf32, #tpu.memory_space<vmem>>, %arg9: memref<2x1x64xf32, #tpu.memory_space<vmem>>, %arg10: memref<2x64x32xf32, #tpu.memory_space<vmem>>, %arg11: memref<2x1x32xf32, #tpu.memory_space<vmem>>, %arg12: memref<1x32xf32, #tpu.memory_space<vmem>>, %arg13: memref<1x32xf32, #tpu.memory_space<vmem>>, %arg14: memref<32x128xf32, #tpu.memory_space<vmem>>, %arg15: memref<64x128xf32, #tpu.memory_space<vmem>>) attributes {dimension_semantics = [], scalar_prefetch = 0 : i64, scratch_operands = 0 : i64, tpu.core_type = #tpu.core_type<tc>} {
    %c0 = arith.constant 0 : index
    %c0_0 = arith.constant 0 : index
    %0 = vector.load %arg0[%c0, %c0_0] : memref<64x32xf32, #tpu.memory_space<vmem>>, vector<64x32xf32>
    %c0_1 = arith.constant 0 : index
    %c0_2 = arith.constant 0 : index
    %1 = vector.load %arg1[%c0_1, %c0_2] : memref<128x128xf32, #tpu.memory_space<vmem>>, vector<128x128xf32>
    %c0_3 = arith.constant 0 : index
    %c0_4 = arith.constant 0 : index
    %c0_5 = arith.constant 0 : index
    %2 = vector.load %arg2[%c0_3, %c0_4, %c0_5] : memref<2x1x32xf32, #tpu.memory_space<vmem>>, vector<1x1x32xf32>
    %3 = vector.shape_cast %2 : vector<1x1x32xf32> to vector<1x32xf32>
    %c0_6 = arith.constant 0 : index
    %c0_7 = arith.constant 0 : index
    %c0_8 = arith.constant 0 : index
    %4 = vector.load %arg3[%c0_6, %c0_7, %c0_8] : memref<2x1x32xf32, #tpu.memory_space<vmem>>, vector<1x1x32xf32>
    %5 = vector.shape_cast %4 : vector<1x1x32xf32> to vector<1x32xf32>
    %cst = arith.constant dense<0.000000e+00> : vector<64xf32>
    %6 = vector.multi_reduction <add>, %0, %cst [1] : vector<64x32xf32> to vector<64xf32>
    %7 = vector.shape_cast %6 : vector<64xf32> to vector<64x1xf32>
    %cst_9 = arith.constant 3.200000e+01 : f32
    %8 = vector.broadcast %cst_9 : f32 to vector<64x1xf32>
    %9 = arith.divf %7, %8 : vector<64x1xf32>
    %10 = vector.broadcast %9 : vector<64x1xf32> to vector<64x32xf32>
    %11 = arith.subf %0, %10 : vector<64x32xf32>
    %12 = arith.mulf %11, %11 : vector<64x32xf32>
    %cst_10 = arith.constant dense<0.000000e+00> : vector<64xf32>
    %13 = vector.multi_reduction <add>, %12, %cst_10 [1] : vector<64x32xf32> to vector<64xf32>
    %14 = vector.shape_cast %13 : vector<64xf32> to vector<64x1xf32>
    %cst_11 = arith.constant 3.200000e+01 : f32
    %15 = vector.broadcast %cst_11 : f32 to vector<64x1xf32>
    %16 = arith.divf %14, %15 : vector<64x1xf32>
    %17 = math.sqrt %16 : vector<64x1xf32>
    %cst_12 = arith.constant 9.99999974E-6 : f32
    %18 = vector.broadcast %cst_12 : f32 to vector<64x1xf32>
    %19 = arith.addf %17, %18 : vector<64x1xf32>
    %20 = tpu.reciprocal %19 : vector<64x1xf32> -> vector<64x1xf32>
    %21 = vector.broadcast %20 : vector<64x1xf32> to vector<64x32xf32>
    %22 = arith.mulf %11, %21 : vector<64x32xf32>
    %23 = vector.broadcast %3 : vector<1x32xf32> to vector<64x32xf32>
    %24 = arith.mulf %23, %22 : vector<64x32xf32>
    %25 = vector.broadcast %5 : vector<1x32xf32> to vector<64x32xf32>
    %26 = arith.addf %24, %25 : vector<64x32xf32>
    %27 = vector.shape_cast %26 : vector<64x32xf32> to vector<2x1x32x32xf32>
    %c0_13 = arith.constant 0 : index
    %c0_14 = arith.constant 0 : index
    %c0_15 = arith.constant 0 : index
    %c0_16 = arith.constant 0 : index
    %28 = vector.load %arg4[%c0_13, %c0_14, %c0_15, %c0_16] : memref<2x6x32x32xf32, #tpu.memory_space<vmem>>, vector<1x6x32x32xf32>
    %29 = vector.shape_cast %28 : vector<1x6x32x32xf32> to vector<6x32x32xf32>
    %30 = vector.shape_cast %29 : vector<6x32x32xf32> to vector<1x6x32x32xf32>
    %31 = vector.broadcast %27 : vector<2x1x32x32xf32> to vector<2x6x32x32xf32>
    %32 = vector.broadcast %30 : vector<1x6x32x32xf32> to vector<2x6x32x32xf32>
    %33 = arith.mulf %31, %32 : vector<2x6x32x32xf32>
    %34 = vector.extract_strided_slice %33 {offsets = [0, 0, 0, 0], sizes = [2, 2, 32, 32], strides = [1, 1, 1, 1]} : vector<2x6x32x32xf32> to vector<2x2x32x32xf32>
    %35 = vector.shape_cast %34 : vector<2x2x32x32xf32> to vector<128x32xf32>
    %36 = vector.extract_strided_slice %33 {offsets = [0, 2, 0, 0], sizes = [2, 2, 32, 32], strides = [1, 1, 1, 1]} : vector<2x6x32x32xf32> to vector<2x2x32x32xf32>
    %37 = vector.shape_cast %36 : vector<2x2x32x32xf32> to vector<128x32xf32>
    %38 = vector.extract_strided_slice %33 {offsets = [0, 4, 0, 0], sizes = [2, 2, 32, 32], strides = [1, 1, 1, 1]} : vector<2x6x32x32xf32> to vector<2x2x32x32xf32>
    %39 = vector.shape_cast %38 : vector<2x2x32x32xf32> to vector<128x32xf32>
    %cst_17 = arith.constant dense<0.000000e+00> : vector<128x128xf32>
    %40 = tpu.matmul %35, %37, %cst_17 {dimension_numbers = #tpu.dot_dimension_numbers<[1], [1], [0], [0], [0, 0, 1, 0], [], []>} : vector<128x32xf32>, vector<128x32xf32>, vector<128x128xf32> -> vector<128x128xf32>
    %41 = arith.addf %40, %1 : vector<128x128xf32>
    %cst_18 = arith.constant dense<0xFF800000> : vector<128xf32>
    %42 = vector.multi_reduction <maximumf>, %41, %cst_18 [1] : vector<128x128xf32> to vector<128xf32>
    %43 = vector.shape_cast %42 : vector<128xf32> to vector<128x1xf32>
    %44 = vector.broadcast %43 : vector<128x1xf32> to vector<128x128xf32>
    %45 = arith.subf %41, %44 : vector<128x128xf32>
    %46 = math.exp %45 : vector<128x128xf32>
    %cst_19 = arith.constant dense<0.000000e+00> : vector<128xf32>
    %47 = vector.multi_reduction <add>, %46, %cst_19 [1] : vector<128x128xf32> to vector<128xf32>
    %48 = vector.shape_cast %47 : vector<128xf32> to vector<128x1xf32>
    %49 = tpu.reciprocal %48 {approx = true} : vector<128x1xf32> -> vector<128x1xf32>
    %50 = vector.broadcast %49 : vector<128x1xf32> to vector<128x128xf32>
    %51 = arith.mulf %46, %50 : vector<128x128xf32>
    %cst_20 = arith.constant dense<0.000000e+00> : vector<128x32xf32>
    %52 = tpu.matmul %51, %39, %cst_20 {dimension_numbers = #tpu.dot_dimension_numbers<[1], [0], [0], [1], [0, 0, 1, 1], [], []>} : vector<128x128xf32>, vector<128x32xf32>, vector<128x32xf32> -> vector<128x32xf32>
    %53 = vector.shape_cast %52 : vector<128x32xf32> to vector<2x2x32x32xf32>
    %c0_21 = arith.constant 0 : index
    %c0_22 = arith.constant 0 : index
    %c0_23 = arith.constant 0 : index
    %c0_24 = arith.constant 0 : index
    %54 = vector.load %arg5[%c0_21, %c0_22, %c0_23, %c0_24] : memref<2x2x32x32xf32, #tpu.memory_space<vmem>>, vector<1x2x32x32xf32>
    %55 = vector.shape_cast %54 : vector<1x2x32x32xf32> to vector<2x32x32xf32>
    %56 = vector.shape_cast %55 : vector<2x32x32xf32> to vector<1x2x32x32xf32>
    %57 = vector.broadcast %56 : vector<1x2x32x32xf32> to vector<2x2x32x32xf32>
    %58 = arith.mulf %53, %57 : vector<2x2x32x32xf32>
    %cst_25 = arith.constant dense<0.000000e+00> : vector<2x32x32xf32>
    %59 = vector.multi_reduction <add>, %58, %cst_25 [1] : vector<2x2x32x32xf32> to vector<2x32x32xf32>
    %60 = vector.shape_cast %59 : vector<2x32x32xf32> to vector<64x32xf32>
    %61 = arith.addf %0, %60 : vector<64x32xf32>
    %c0_26 = arith.constant 0 : index
    %c0_27 = arith.constant 0 : index
    %c0_28 = arith.constant 0 : index
    %62 = vector.load %arg6[%c0_26, %c0_27, %c0_28] : memref<2x1x32xf32, #tpu.memory_space<vmem>>, vector<1x1x32xf32>
    %63 = vector.shape_cast %62 : vector<1x1x32xf32> to vector<1x32xf32>
    %c0_29 = arith.constant 0 : index
    %c0_30 = arith.constant 0 : index
    %c0_31 = arith.constant 0 : index
    %64 = vector.load %arg7[%c0_29, %c0_30, %c0_31] : memref<2x1x32xf32, #tpu.memory_space<vmem>>, vector<1x1x32xf32>
    %65 = vector.shape_cast %64 : vector<1x1x32xf32> to vector<1x32xf32>
    %cst_32 = arith.constant dense<0.000000e+00> : vector<64xf32>
    %66 = vector.multi_reduction <add>, %61, %cst_32 [1] : vector<64x32xf32> to vector<64xf32>
    %67 = vector.shape_cast %66 : vector<64xf32> to vector<64x1xf32>
    %cst_33 = arith.constant 3.200000e+01 : f32
    %68 = vector.broadcast %cst_33 : f32 to vector<64x1xf32>
    %69 = arith.divf %67, %68 : vector<64x1xf32>
    %70 = vector.broadcast %69 : vector<64x1xf32> to vector<64x32xf32>
    %71 = arith.subf %61, %70 : vector<64x32xf32>
    %72 = arith.mulf %71, %71 : vector<64x32xf32>
    %cst_34 = arith.constant dense<0.000000e+00> : vector<64xf32>
    %73 = vector.multi_reduction <add>, %72, %cst_34 [1] : vector<64x32xf32> to vector<64xf32>
    %74 = vector.shape_cast %73 : vector<64xf32> to vector<64x1xf32>
    %cst_35 = arith.constant 3.200000e+01 : f32
    %75 = vector.broadcast %cst_35 : f32 to vector<64x1xf32>
    %76 = arith.divf %74, %75 : vector<64x1xf32>
    %77 = math.sqrt %76 : vector<64x1xf32>
    %cst_36 = arith.constant 9.99999974E-6 : f32
    %78 = vector.broadcast %cst_36 : f32 to vector<64x1xf32>
    %79 = arith.addf %77, %78 : vector<64x1xf32>
    %80 = tpu.reciprocal %79 : vector<64x1xf32> -> vector<64x1xf32>
    %81 = vector.broadcast %80 : vector<64x1xf32> to vector<64x32xf32>
    %82 = arith.mulf %71, %81 : vector<64x32xf32>
    %83 = vector.broadcast %63 : vector<1x32xf32> to vector<64x32xf32>
    %84 = arith.mulf %83, %82 : vector<64x32xf32>
    %85 = vector.broadcast %65 : vector<1x32xf32> to vector<64x32xf32>
    %86 = arith.addf %84, %85 : vector<64x32xf32>
    %c0_37 = arith.constant 0 : index
    %c0_38 = arith.constant 0 : index
    %c0_39 = arith.constant 0 : index
    %87 = vector.load %arg8[%c0_37, %c0_38, %c0_39] : memref<2x32x64xf32, #tpu.memory_space<vmem>>, vector<1x32x64xf32>
    %88 = vector.shape_cast %87 : vector<1x32x64xf32> to vector<32x64xf32>
    %cst_40 = arith.constant dense<0.000000e+00> : vector<64x64xf32>
    %89 = tpu.matmul %86, %88, %cst_40 {dimension_numbers = #tpu.dot_dimension_numbers<[1], [0], [0], [1], [0, 0, 1, 1], [], []>} : vector<64x32xf32>, vector<32x64xf32>, vector<64x64xf32> -> vector<64x64xf32>
    %c0_41 = arith.constant 0 : index
    %c0_42 = arith.constant 0 : index
    %c0_43 = arith.constant 0 : index
    %90 = vector.load %arg9[%c0_41, %c0_42, %c0_43] : memref<2x1x64xf32, #tpu.memory_space<vmem>>, vector<1x1x64xf32>
    %91 = vector.shape_cast %90 : vector<1x1x64xf32> to vector<1x64xf32>
    %92 = vector.broadcast %91 : vector<1x64xf32> to vector<64x64xf32>
    %93 = arith.addf %89, %92 : vector<64x64xf32>
    %cst_44 = arith.constant 5.000000e-01 : f32
    %94 = vector.broadcast %cst_44 : f32 to vector<64x64xf32>
    %95 = arith.mulf %94, %93 : vector<64x64xf32>
    %cst_45 = arith.constant 0.707106769 : f32
    %96 = vector.broadcast %cst_45 : f32 to vector<64x64xf32>
    %97 = arith.mulf %93, %96 : vector<64x64xf32>
    %98 = math.absf %97 : vector<64x64xf32>
    %cst_46 = arith.constant 5.000000e-01 : f32
    %99 = vector.broadcast %cst_46 : f32 to vector<64x64xf32>
    %100 = arith.mulf %99, %98 : vector<64x64xf32>
    %cst_47 = arith.constant 1.000000e+00 : f32
    %101 = vector.broadcast %cst_47 : f32 to vector<64x64xf32>
    %102 = arith.addf %101, %100 : vector<64x64xf32>
    %cst_48 = arith.constant 1.000000e+00 : f32
    %103 = vector.broadcast %cst_48 : f32 to vector<64x64xf32>
    %104 = arith.divf %103, %102 : vector<64x64xf32>
    %cst_49 = arith.constant 0.170872763 : f32
    %105 = vector.broadcast %cst_49 : f32 to vector<64x64xf32>
    %106 = arith.mulf %104, %105 : vector<64x64xf32>
    %cst_50 = arith.constant -0.822152256 : f32
    %107 = vector.broadcast %cst_50 : f32 to vector<64x64xf32>
    %108 = arith.addf %107, %106 : vector<64x64xf32>
    %109 = arith.mulf %104, %108 : vector<64x64xf32>
    %cst_51 = arith.constant 1.48851585 : f32
    %110 = vector.broadcast %cst_51 : f32 to vector<64x64xf32>
    %111 = arith.addf %110, %109 : vector<64x64xf32>
    %112 = arith.mulf %104, %111 : vector<64x64xf32>
    %cst_52 = arith.constant -1.13520396 : f32
    %113 = vector.broadcast %cst_52 : f32 to vector<64x64xf32>
    %114 = arith.addf %113, %112 : vector<64x64xf32>
    %115 = arith.mulf %104, %114 : vector<64x64xf32>
    %cst_53 = arith.constant 0.278868079 : f32
    %116 = vector.broadcast %cst_53 : f32 to vector<64x64xf32>
    %117 = arith.addf %116, %115 : vector<64x64xf32>
    %118 = arith.mulf %104, %117 : vector<64x64xf32>
    %cst_54 = arith.constant -0.186288059 : f32
    %119 = vector.broadcast %cst_54 : f32 to vector<64x64xf32>
    %120 = arith.addf %119, %118 : vector<64x64xf32>
    %121 = arith.mulf %104, %120 : vector<64x64xf32>
    %cst_55 = arith.constant 0.0967841818 : f32
    %122 = vector.broadcast %cst_55 : f32 to vector<64x64xf32>
    %123 = arith.addf %122, %121 : vector<64x64xf32>
    %124 = arith.mulf %104, %123 : vector<64x64xf32>
    %cst_56 = arith.constant 0.374091953 : f32
    %125 = vector.broadcast %cst_56 : f32 to vector<64x64xf32>
    %126 = arith.addf %125, %124 : vector<64x64xf32>
    %127 = arith.mulf %104, %126 : vector<64x64xf32>
    %cst_57 = arith.constant 1.00002372 : f32
    %128 = vector.broadcast %cst_57 : f32 to vector<64x64xf32>
    %129 = arith.addf %128, %127 : vector<64x64xf32>
    %130 = arith.mulf %104, %129 : vector<64x64xf32>
    %cst_58 = arith.constant -1.26551223 : f32
    %131 = vector.broadcast %cst_58 : f32 to vector<64x64xf32>
    %132 = arith.addf %131, %130 : vector<64x64xf32>
    %cst_59 = arith.constant 0.000000e+00 : f32
    %133 = vector.broadcast %cst_59 : f32 to vector<64x64xf32>
    %134 = arith.subf %133, %98 : vector<64x64xf32>
    %135 = arith.mulf %134, %98 : vector<64x64xf32>
    %136 = arith.addf %135, %132 : vector<64x64xf32>
    %137 = math.exp %136 : vector<64x64xf32>
    %138 = arith.mulf %104, %137 : vector<64x64xf32>
    %cst_60 = arith.constant 0.000000e+00 : f32
    %139 = vector.broadcast %cst_60 : f32 to vector<64x64xf32>
    %140 = arith.cmpf oge, %97, %139 : vector<64x64xf32>
    %cst_61 = arith.constant 1.000000e+00 : f32
    %141 = vector.broadcast %cst_61 : f32 to vector<64x64xf32>
    %142 = arith.subf %141, %138 : vector<64x64xf32>
    %cst_62 = arith.constant 1.000000e+00 : f32
    %143 = vector.broadcast %cst_62 : f32 to vector<64x64xf32>
    %144 = arith.subf %138, %143 : vector<64x64xf32>
    %145 = arith.select %140, %142, %144 : vector<64x64xi1>, vector<64x64xf32>
    %cst_63 = arith.constant 1.000000e+00 : f32
    %146 = vector.broadcast %cst_63 : f32 to vector<64x64xf32>
    %147 = arith.addf %146, %145 : vector<64x64xf32>
    %148 = arith.mulf %95, %147 : vector<64x64xf32>
    %c0_64 = arith.constant 0 : index
    %c0_65 = arith.constant 0 : index
    %c0_66 = arith.constant 0 : index
    %149 = vector.load %arg10[%c0_64, %c0_65, %c0_66] : memref<2x64x32xf32, #tpu.memory_space<vmem>>, vector<1x64x32xf32>
    %150 = vector.shape_cast %149 : vector<1x64x32xf32> to vector<64x32xf32>
    %cst_67 = arith.constant dense<0.000000e+00> : vector<64x32xf32>
    %151 = tpu.matmul %148, %150, %cst_67 {dimension_numbers = #tpu.dot_dimension_numbers<[1], [0], [0], [1], [0, 0, 1, 1], [], []>} : vector<64x64xf32>, vector<64x32xf32>, vector<64x32xf32> -> vector<64x32xf32>
    %152 = arith.addf %61, %151 : vector<64x32xf32>
    %c0_68 = arith.constant 0 : index
    %c0_69 = arith.constant 0 : index
    %c0_70 = arith.constant 0 : index
    %153 = vector.load %arg11[%c0_68, %c0_69, %c0_70] : memref<2x1x32xf32, #tpu.memory_space<vmem>>, vector<1x1x32xf32>
    %154 = vector.shape_cast %153 : vector<1x1x32xf32> to vector<1x32xf32>
    %155 = vector.broadcast %154 : vector<1x32xf32> to vector<64x32xf32>
    %156 = arith.addf %152, %155 : vector<64x32xf32>
    %c1 = arith.constant 1 : index
    %c0_71 = arith.constant 0 : index
    %c0_72 = arith.constant 0 : index
    %157 = vector.load %arg2[%c1, %c0_71, %c0_72] : memref<2x1x32xf32, #tpu.memory_space<vmem>>, vector<1x1x32xf32>
    %158 = vector.shape_cast %157 : vector<1x1x32xf32> to vector<1x32xf32>
    %c1_73 = arith.constant 1 : index
    %c0_74 = arith.constant 0 : index
    %c0_75 = arith.constant 0 : index
    %159 = vector.load %arg3[%c1_73, %c0_74, %c0_75] : memref<2x1x32xf32, #tpu.memory_space<vmem>>, vector<1x1x32xf32>
    %160 = vector.shape_cast %159 : vector<1x1x32xf32> to vector<1x32xf32>
    %cst_76 = arith.constant dense<0.000000e+00> : vector<64xf32>
    %161 = vector.multi_reduction <add>, %156, %cst_76 [1] : vector<64x32xf32> to vector<64xf32>
    %162 = vector.shape_cast %161 : vector<64xf32> to vector<64x1xf32>
    %cst_77 = arith.constant 3.200000e+01 : f32
    %163 = vector.broadcast %cst_77 : f32 to vector<64x1xf32>
    %164 = arith.divf %162, %163 : vector<64x1xf32>
    %165 = vector.broadcast %164 : vector<64x1xf32> to vector<64x32xf32>
    %166 = arith.subf %156, %165 : vector<64x32xf32>
    %167 = arith.mulf %166, %166 : vector<64x32xf32>
    %cst_78 = arith.constant dense<0.000000e+00> : vector<64xf32>
    %168 = vector.multi_reduction <add>, %167, %cst_78 [1] : vector<64x32xf32> to vector<64xf32>
    %169 = vector.shape_cast %168 : vector<64xf32> to vector<64x1xf32>
    %cst_79 = arith.constant 3.200000e+01 : f32
    %170 = vector.broadcast %cst_79 : f32 to vector<64x1xf32>
    %171 = arith.divf %169, %170 : vector<64x1xf32>
    %172 = math.sqrt %171 : vector<64x1xf32>
    %cst_80 = arith.constant 9.99999974E-6 : f32
    %173 = vector.broadcast %cst_80 : f32 to vector<64x1xf32>
    %174 = arith.addf %172, %173 : vector<64x1xf32>
    %175 = tpu.reciprocal %174 : vector<64x1xf32> -> vector<64x1xf32>
    %176 = vector.broadcast %175 : vector<64x1xf32> to vector<64x32xf32>
    %177 = arith.mulf %166, %176 : vector<64x32xf32>
    %178 = vector.broadcast %158 : vector<1x32xf32> to vector<64x32xf32>
    %179 = arith.mulf %178, %177 : vector<64x32xf32>
    %180 = vector.broadcast %160 : vector<1x32xf32> to vector<64x32xf32>
    %181 = arith.addf %179, %180 : vector<64x32xf32>
    %182 = vector.shape_cast %181 : vector<64x32xf32> to vector<2x1x32x32xf32>
    %c1_81 = arith.constant 1 : index
    %c0_82 = arith.constant 0 : index
    %c0_83 = arith.constant 0 : index
    %c0_84 = arith.constant 0 : index
    %183 = vector.load %arg4[%c1_81, %c0_82, %c0_83, %c0_84] : memref<2x6x32x32xf32, #tpu.memory_space<vmem>>, vector<1x6x32x32xf32>
    %184 = vector.shape_cast %183 : vector<1x6x32x32xf32> to vector<6x32x32xf32>
    %185 = vector.shape_cast %184 : vector<6x32x32xf32> to vector<1x6x32x32xf32>
    %186 = vector.broadcast %182 : vector<2x1x32x32xf32> to vector<2x6x32x32xf32>
    %187 = vector.broadcast %185 : vector<1x6x32x32xf32> to vector<2x6x32x32xf32>
    %188 = arith.mulf %186, %187 : vector<2x6x32x32xf32>
    %189 = vector.extract_strided_slice %188 {offsets = [0, 0, 0, 0], sizes = [2, 2, 32, 32], strides = [1, 1, 1, 1]} : vector<2x6x32x32xf32> to vector<2x2x32x32xf32>
    %190 = vector.shape_cast %189 : vector<2x2x32x32xf32> to vector<128x32xf32>
    %191 = vector.extract_strided_slice %188 {offsets = [0, 2, 0, 0], sizes = [2, 2, 32, 32], strides = [1, 1, 1, 1]} : vector<2x6x32x32xf32> to vector<2x2x32x32xf32>
    %192 = vector.shape_cast %191 : vector<2x2x32x32xf32> to vector<128x32xf32>
    %193 = vector.extract_strided_slice %188 {offsets = [0, 4, 0, 0], sizes = [2, 2, 32, 32], strides = [1, 1, 1, 1]} : vector<2x6x32x32xf32> to vector<2x2x32x32xf32>
    %194 = vector.shape_cast %193 : vector<2x2x32x32xf32> to vector<128x32xf32>
    %cst_85 = arith.constant dense<0.000000e+00> : vector<128x128xf32>
    %195 = tpu.matmul %190, %192, %cst_85 {dimension_numbers = #tpu.dot_dimension_numbers<[1], [1], [0], [0], [0, 0, 1, 0], [], []>} : vector<128x32xf32>, vector<128x32xf32>, vector<128x128xf32> -> vector<128x128xf32>
    %196 = arith.addf %195, %1 : vector<128x128xf32>
    %cst_86 = arith.constant dense<0xFF800000> : vector<128xf32>
    %197 = vector.multi_reduction <maximumf>, %196, %cst_86 [1] : vector<128x128xf32> to vector<128xf32>
    %198 = vector.shape_cast %197 : vector<128xf32> to vector<128x1xf32>
    %199 = vector.broadcast %198 : vector<128x1xf32> to vector<128x128xf32>
    %200 = arith.subf %196, %199 : vector<128x128xf32>
    %201 = math.exp %200 : vector<128x128xf32>
    %cst_87 = arith.constant dense<0.000000e+00> : vector<128xf32>
    %202 = vector.multi_reduction <add>, %201, %cst_87 [1] : vector<128x128xf32> to vector<128xf32>
    %203 = vector.shape_cast %202 : vector<128xf32> to vector<128x1xf32>
    %204 = tpu.reciprocal %203 {approx = true} : vector<128x1xf32> -> vector<128x1xf32>
    %205 = vector.broadcast %204 : vector<128x1xf32> to vector<128x128xf32>
    %206 = arith.mulf %201, %205 : vector<128x128xf32>
    %cst_88 = arith.constant dense<0.000000e+00> : vector<128x32xf32>
    %207 = tpu.matmul %206, %194, %cst_88 {dimension_numbers = #tpu.dot_dimension_numbers<[1], [0], [0], [1], [0, 0, 1, 1], [], []>} : vector<128x128xf32>, vector<128x32xf32>, vector<128x32xf32> -> vector<128x32xf32>
    %208 = vector.shape_cast %207 : vector<128x32xf32> to vector<2x2x32x32xf32>
    %c1_89 = arith.constant 1 : index
    %c0_90 = arith.constant 0 : index
    %c0_91 = arith.constant 0 : index
    %c0_92 = arith.constant 0 : index
    %209 = vector.load %arg5[%c1_89, %c0_90, %c0_91, %c0_92] : memref<2x2x32x32xf32, #tpu.memory_space<vmem>>, vector<1x2x32x32xf32>
    %210 = vector.shape_cast %209 : vector<1x2x32x32xf32> to vector<2x32x32xf32>
    %211 = vector.shape_cast %210 : vector<2x32x32xf32> to vector<1x2x32x32xf32>
    %212 = vector.broadcast %211 : vector<1x2x32x32xf32> to vector<2x2x32x32xf32>
    %213 = arith.mulf %208, %212 : vector<2x2x32x32xf32>
    %cst_93 = arith.constant dense<0.000000e+00> : vector<2x32x32xf32>
    %214 = vector.multi_reduction <add>, %213, %cst_93 [1] : vector<2x2x32x32xf32> to vector<2x32x32xf32>
    %215 = vector.shape_cast %214 : vector<2x32x32xf32> to vector<64x32xf32>
    %216 = arith.addf %156, %215 : vector<64x32xf32>
    %c1_94 = arith.constant 1 : index
    %c0_95 = arith.constant 0 : index
    %c0_96 = arith.constant 0 : index
    %217 = vector.load %arg6[%c1_94, %c0_95, %c0_96] : memref<2x1x32xf32, #tpu.memory_space<vmem>>, vector<1x1x32xf32>
    %218 = vector.shape_cast %217 : vector<1x1x32xf32> to vector<1x32xf32>
    %c1_97 = arith.constant 1 : index
    %c0_98 = arith.constant 0 : index
    %c0_99 = arith.constant 0 : index
    %219 = vector.load %arg7[%c1_97, %c0_98, %c0_99] : memref<2x1x32xf32, #tpu.memory_space<vmem>>, vector<1x1x32xf32>
    %220 = vector.shape_cast %219 : vector<1x1x32xf32> to vector<1x32xf32>
    %cst_100 = arith.constant dense<0.000000e+00> : vector<64xf32>
    %221 = vector.multi_reduction <add>, %216, %cst_100 [1] : vector<64x32xf32> to vector<64xf32>
    %222 = vector.shape_cast %221 : vector<64xf32> to vector<64x1xf32>
    %cst_101 = arith.constant 3.200000e+01 : f32
    %223 = vector.broadcast %cst_101 : f32 to vector<64x1xf32>
    %224 = arith.divf %222, %223 : vector<64x1xf32>
    %225 = vector.broadcast %224 : vector<64x1xf32> to vector<64x32xf32>
    %226 = arith.subf %216, %225 : vector<64x32xf32>
    %227 = arith.mulf %226, %226 : vector<64x32xf32>
    %cst_102 = arith.constant dense<0.000000e+00> : vector<64xf32>
    %228 = vector.multi_reduction <add>, %227, %cst_102 [1] : vector<64x32xf32> to vector<64xf32>
    %229 = vector.shape_cast %228 : vector<64xf32> to vector<64x1xf32>
    %cst_103 = arith.constant 3.200000e+01 : f32
    %230 = vector.broadcast %cst_103 : f32 to vector<64x1xf32>
    %231 = arith.divf %229, %230 : vector<64x1xf32>
    %232 = math.sqrt %231 : vector<64x1xf32>
    %cst_104 = arith.constant 9.99999974E-6 : f32
    %233 = vector.broadcast %cst_104 : f32 to vector<64x1xf32>
    %234 = arith.addf %232, %233 : vector<64x1xf32>
    %235 = tpu.reciprocal %234 : vector<64x1xf32> -> vector<64x1xf32>
    %236 = vector.broadcast %235 : vector<64x1xf32> to vector<64x32xf32>
    %237 = arith.mulf %226, %236 : vector<64x32xf32>
    %238 = vector.broadcast %218 : vector<1x32xf32> to vector<64x32xf32>
    %239 = arith.mulf %238, %237 : vector<64x32xf32>
    %240 = vector.broadcast %220 : vector<1x32xf32> to vector<64x32xf32>
    %241 = arith.addf %239, %240 : vector<64x32xf32>
    %c1_105 = arith.constant 1 : index
    %c0_106 = arith.constant 0 : index
    %c0_107 = arith.constant 0 : index
    %242 = vector.load %arg8[%c1_105, %c0_106, %c0_107] : memref<2x32x64xf32, #tpu.memory_space<vmem>>, vector<1x32x64xf32>
    %243 = vector.shape_cast %242 : vector<1x32x64xf32> to vector<32x64xf32>
    %cst_108 = arith.constant dense<0.000000e+00> : vector<64x64xf32>
    %244 = tpu.matmul %241, %243, %cst_108 {dimension_numbers = #tpu.dot_dimension_numbers<[1], [0], [0], [1], [0, 0, 1, 1], [], []>} : vector<64x32xf32>, vector<32x64xf32>, vector<64x64xf32> -> vector<64x64xf32>
    %c1_109 = arith.constant 1 : index
    %c0_110 = arith.constant 0 : index
    %c0_111 = arith.constant 0 : index
    %245 = vector.load %arg9[%c1_109, %c0_110, %c0_111] : memref<2x1x64xf32, #tpu.memory_space<vmem>>, vector<1x1x64xf32>
    %246 = vector.shape_cast %245 : vector<1x1x64xf32> to vector<1x64xf32>
    %247 = vector.broadcast %246 : vector<1x64xf32> to vector<64x64xf32>
    %248 = arith.addf %244, %247 : vector<64x64xf32>
    %cst_112 = arith.constant 5.000000e-01 : f32
    %249 = vector.broadcast %cst_112 : f32 to vector<64x64xf32>
    %250 = arith.mulf %249, %248 : vector<64x64xf32>
    %cst_113 = arith.constant 0.707106769 : f32
    %251 = vector.broadcast %cst_113 : f32 to vector<64x64xf32>
    %252 = arith.mulf %248, %251 : vector<64x64xf32>
    %253 = math.absf %252 : vector<64x64xf32>
    %cst_114 = arith.constant 5.000000e-01 : f32
    %254 = vector.broadcast %cst_114 : f32 to vector<64x64xf32>
    %255 = arith.mulf %254, %253 : vector<64x64xf32>
    %cst_115 = arith.constant 1.000000e+00 : f32
    %256 = vector.broadcast %cst_115 : f32 to vector<64x64xf32>
    %257 = arith.addf %256, %255 : vector<64x64xf32>
    %cst_116 = arith.constant 1.000000e+00 : f32
    %258 = vector.broadcast %cst_116 : f32 to vector<64x64xf32>
    %259 = arith.divf %258, %257 : vector<64x64xf32>
    %cst_117 = arith.constant 0.170872763 : f32
    %260 = vector.broadcast %cst_117 : f32 to vector<64x64xf32>
    %261 = arith.mulf %259, %260 : vector<64x64xf32>
    %cst_118 = arith.constant -0.822152256 : f32
    %262 = vector.broadcast %cst_118 : f32 to vector<64x64xf32>
    %263 = arith.addf %262, %261 : vector<64x64xf32>
    %264 = arith.mulf %259, %263 : vector<64x64xf32>
    %cst_119 = arith.constant 1.48851585 : f32
    %265 = vector.broadcast %cst_119 : f32 to vector<64x64xf32>
    %266 = arith.addf %265, %264 : vector<64x64xf32>
    %267 = arith.mulf %259, %266 : vector<64x64xf32>
    %cst_120 = arith.constant -1.13520396 : f32
    %268 = vector.broadcast %cst_120 : f32 to vector<64x64xf32>
    %269 = arith.addf %268, %267 : vector<64x64xf32>
    %270 = arith.mulf %259, %269 : vector<64x64xf32>
    %cst_121 = arith.constant 0.278868079 : f32
    %271 = vector.broadcast %cst_121 : f32 to vector<64x64xf32>
    %272 = arith.addf %271, %270 : vector<64x64xf32>
    %273 = arith.mulf %259, %272 : vector<64x64xf32>
    %cst_122 = arith.constant -0.186288059 : f32
    %274 = vector.broadcast %cst_122 : f32 to vector<64x64xf32>
    %275 = arith.addf %274, %273 : vector<64x64xf32>
    %276 = arith.mulf %259, %275 : vector<64x64xf32>
    %cst_123 = arith.constant 0.0967841818 : f32
    %277 = vector.broadcast %cst_123 : f32 to vector<64x64xf32>
    %278 = arith.addf %277, %276 : vector<64x64xf32>
    %279 = arith.mulf %259, %278 : vector<64x64xf32>
    %cst_124 = arith.constant 0.374091953 : f32
    %280 = vector.broadcast %cst_124 : f32 to vector<64x64xf32>
    %281 = arith.addf %280, %279 : vector<64x64xf32>
    %282 = arith.mulf %259, %281 : vector<64x64xf32>
    %cst_125 = arith.constant 1.00002372 : f32
    %283 = vector.broadcast %cst_125 : f32 to vector<64x64xf32>
    %284 = arith.addf %283, %282 : vector<64x64xf32>
    %285 = arith.mulf %259, %284 : vector<64x64xf32>
    %cst_126 = arith.constant -1.26551223 : f32
    %286 = vector.broadcast %cst_126 : f32 to vector<64x64xf32>
    %287 = arith.addf %286, %285 : vector<64x64xf32>
    %cst_127 = arith.constant 0.000000e+00 : f32
    %288 = vector.broadcast %cst_127 : f32 to vector<64x64xf32>
    %289 = arith.subf %288, %253 : vector<64x64xf32>
    %290 = arith.mulf %289, %253 : vector<64x64xf32>
    %291 = arith.addf %290, %287 : vector<64x64xf32>
    %292 = math.exp %291 : vector<64x64xf32>
    %293 = arith.mulf %259, %292 : vector<64x64xf32>
    %cst_128 = arith.constant 0.000000e+00 : f32
    %294 = vector.broadcast %cst_128 : f32 to vector<64x64xf32>
    %295 = arith.cmpf oge, %252, %294 : vector<64x64xf32>
    %cst_129 = arith.constant 1.000000e+00 : f32
    %296 = vector.broadcast %cst_129 : f32 to vector<64x64xf32>
    %297 = arith.subf %296, %293 : vector<64x64xf32>
    %cst_130 = arith.constant 1.000000e+00 : f32
    %298 = vector.broadcast %cst_130 : f32 to vector<64x64xf32>
    %299 = arith.subf %293, %298 : vector<64x64xf32>
    %300 = arith.select %295, %297, %299 : vector<64x64xi1>, vector<64x64xf32>
    %cst_131 = arith.constant 1.000000e+00 : f32
    %301 = vector.broadcast %cst_131 : f32 to vector<64x64xf32>
    %302 = arith.addf %301, %300 : vector<64x64xf32>
    %303 = arith.mulf %250, %302 : vector<64x64xf32>
    %c1_132 = arith.constant 1 : index
    %c0_133 = arith.constant 0 : index
    %c0_134 = arith.constant 0 : index
    %304 = vector.load %arg10[%c1_132, %c0_133, %c0_134] : memref<2x64x32xf32, #tpu.memory_space<vmem>>, vector<1x64x32xf32>
    %305 = vector.shape_cast %304 : vector<1x64x32xf32> to vector<64x32xf32>
    %cst_135 = arith.constant dense<0.000000e+00> : vector<64x32xf32>
    %306 = tpu.matmul %303, %305, %cst_135 {dimension_numbers = #tpu.dot_dimension_numbers<[1], [0], [0], [1], [0, 0, 1, 1], [], []>} : vector<64x64xf32>, vector<64x32xf32>, vector<64x32xf32> -> vector<64x32xf32>
    %307 = arith.addf %216, %306 : vector<64x32xf32>
    %c1_136 = arith.constant 1 : index
    %c0_137 = arith.constant 0 : index
    %c0_138 = arith.constant 0 : index
    %308 = vector.load %arg11[%c1_136, %c0_137, %c0_138] : memref<2x1x32xf32, #tpu.memory_space<vmem>>, vector<1x1x32xf32>
    %309 = vector.shape_cast %308 : vector<1x1x32xf32> to vector<1x32xf32>
    %310 = vector.broadcast %309 : vector<1x32xf32> to vector<64x32xf32>
    %311 = arith.addf %307, %310 : vector<64x32xf32>
    %c0_139 = arith.constant 0 : index
    %c0_140 = arith.constant 0 : index
    %312 = vector.load %arg12[%c0_139, %c0_140] : memref<1x32xf32, #tpu.memory_space<vmem>>, vector<1x32xf32>
    %c0_141 = arith.constant 0 : index
    %c0_142 = arith.constant 0 : index
    %313 = vector.load %arg13[%c0_141, %c0_142] : memref<1x32xf32, #tpu.memory_space<vmem>>, vector<1x32xf32>
    %cst_143 = arith.constant dense<0.000000e+00> : vector<64xf32>
    %314 = vector.multi_reduction <add>, %311, %cst_143 [1] : vector<64x32xf32> to vector<64xf32>
    %315 = vector.shape_cast %314 : vector<64xf32> to vector<64x1xf32>
    %cst_144 = arith.constant 3.200000e+01 : f32
    %316 = vector.broadcast %cst_144 : f32 to vector<64x1xf32>
    %317 = arith.divf %315, %316 : vector<64x1xf32>
    %318 = vector.broadcast %317 : vector<64x1xf32> to vector<64x32xf32>
    %319 = arith.subf %311, %318 : vector<64x32xf32>
    %320 = arith.mulf %319, %319 : vector<64x32xf32>
    %cst_145 = arith.constant dense<0.000000e+00> : vector<64xf32>
    %321 = vector.multi_reduction <add>, %320, %cst_145 [1] : vector<64x32xf32> to vector<64xf32>
    %322 = vector.shape_cast %321 : vector<64xf32> to vector<64x1xf32>
    %cst_146 = arith.constant 3.200000e+01 : f32
    %323 = vector.broadcast %cst_146 : f32 to vector<64x1xf32>
    %324 = arith.divf %322, %323 : vector<64x1xf32>
    %325 = math.sqrt %324 : vector<64x1xf32>
    %cst_147 = arith.constant 9.99999974E-6 : f32
    %326 = vector.broadcast %cst_147 : f32 to vector<64x1xf32>
    %327 = arith.addf %325, %326 : vector<64x1xf32>
    %328 = tpu.reciprocal %327 : vector<64x1xf32> -> vector<64x1xf32>
    %329 = vector.broadcast %328 : vector<64x1xf32> to vector<64x32xf32>
    %330 = arith.mulf %319, %329 : vector<64x32xf32>
    %331 = vector.broadcast %312 : vector<1x32xf32> to vector<64x32xf32>
    %332 = arith.mulf %331, %330 : vector<64x32xf32>
    %333 = vector.broadcast %313 : vector<1x32xf32> to vector<64x32xf32>
    %334 = arith.addf %332, %333 : vector<64x32xf32>
    %c0_148 = arith.constant 0 : index
    %c0_149 = arith.constant 0 : index
    %335 = vector.load %arg14[%c0_148, %c0_149] : memref<32x128xf32, #tpu.memory_space<vmem>>, vector<32x128xf32>
    %cst_150 = arith.constant dense<0.000000e+00> : vector<64x128xf32>
    %336 = tpu.matmul %334, %335, %cst_150 {dimension_numbers = #tpu.dot_dimension_numbers<[1], [0], [0], [1], [0, 0, 1, 1], [], []>} : vector<64x32xf32>, vector<32x128xf32>, vector<64x128xf32> -> vector<64x128xf32>
    %c0_151 = arith.constant 0 : index
    %c0_152 = arith.constant 0 : index
    %337 = vector.load %arg15[%c0_151, %c0_152] : memref<64x128xf32, #tpu.memory_space<vmem>>, vector<64x128xf32>
    tpu.vector_store %arg15[%c0_151, %c0_152], %336 {strides = array<i32>} : memref<64x128xf32, #tpu.memory_space<vmem>>, vector<64x128xf32>,
    return
  }
}

</mosaic_0001>

<bundles_post_ra>
// kernel: transformer_forward.1
= control target key start
LH: loop header
LB: loop body
LE: loop exit
PB: predicated region body
PF: predicated region fallthrough
CT: control target
= control target key end

     0   :  { %vm77_vm0 = vcmask 261120   ;;  %s7207_s0 = inlined_call_operand.vmem [shape: f32[64,32], index: 0, kind: input, shape index: {}]   ;;  %s7208_s1 = inlined_call_operand.vmem [shape: f32[128,128], index: 1, kind: input, shape index: {}]   ;;  %s7209_s2 = inlined_call_operand.vmem [shape: f32[2,1,32], index: 2, kind: input, shape index: {}]   ;;  %s7210_s3 = inlined_call_operand.vmem [shape: f32[2,1,32], index: 3, kind: input, shape index: {}]   ;;  %s7211_s4 = inlined_call_operand.vmem [shape: f32[2,6,32,32], index: 4, kind: input, shape index: {}]   ;;  %s7212_s5 = inlined_call_operand.vmem [shape: f32[2,2,32,32], index: 5, kind: input, shape index: {}]   ;;  %s7213_s6 = inlined_call_operand.vmem [shape: f32[2,1,32], index: 6, kind: input, shape index: {}]   ;;  %s7214_s7 = inlined_call_operand.vmem [shape: f32[2,1,32], index: 7, kind: input, shape index: {}]   ;;  %s7215_s8 = inlined_call_operand.vmem [shape: f32[2,32,64], index: 8, kind: input, shape index: {}]   ;;  %s7216_s9 = inlined_call_operand.vmem [shape: f32[2,1,64], index: 9, kind: input, shape index: {}]   ;;  %s7217_s10 = inlined_call_operand.vmem [shape: f32[2,64,32], index: 10, kind: input, shape index: {}]   ;;  %s7218_s11 = inlined_call_operand.vmem [shape: f32[2,1,32], index: 11, kind: input, shape index: {}]   ;;  %s7219_s12 = inlined_call_operand.vmem [shape: f32[1,32], index: 12, kind: input, shape index: {}]   ;;  %s7220_s13 = inlined_call_operand.vmem [shape: f32[1,32], index: 13, kind: input, shape index: {}]   ;;  %s7221_s14 = inlined_call_operand.vmem [shape: f32[32,128], index: 14, kind: input, shape index: {}]   ;;  %s7222_s15 = inlined_call_operand.hbm [shape: f32[64,128], index: 15, kind: output, shape index: {}]  }
   0x1   :  { %v51_v0 = vld [vmem:[%s7207_s0] sm:$0xff]  ;;  %v53_v1 = vld [vmem:[%s7207_s0 + $0x10] sm:$0xff]  ;;  %v52_v2 = vld [vmem:[%s7207_s0 + $0x8] sm:$0xff] }
   0x2   :  { %v78_v3 = vsel %vm77_vm0, %v51_v0, 0.0  ;;  %v84_v4 = vsel %vm77_vm0, %v53_v1, 0.0  ;;  %v54_v5 = vld [vmem:[%s7207_s0 + $0x18] sm:$0xff]  ;;  %v81_v6 = vsel %vm77_vm0, %v52_v2, 0.0 }
   0x3   :  { %79 = vadd.xlane.f32.xlu0 %v78_v3  ;;  %85 = vadd.xlane.f32.xlu1 %v84_v4  ;;  %v87_v7 = vsel %vm77_vm0, %v54_v5, 0.0 }
   0x4   :  { %20 = vsyncpa [#allocation3], 0  ;;  %v55_v8 = vld [vmem:[%s7207_s0 + $0x20] sm:$0xff]  ;;  %v56_v9 = vld [vmem:[%s7207_s0 + $0x28] sm:$0xff] }
   0x5   :  { %v90_v10 = vsel %vm77_vm0, %v55_v8, 0.0  ;;  %v93_v11 = vsel %vm77_vm0, %v56_v9, 0.0  ;;  %v57_v12 = vld [vmem:[%s7207_s0 + $0x30] sm:$0xff]  ;;  %v58_v13 = vld [vmem:[%s7207_s0 + $0x38] sm:$0xff] }
   0x6   :  { %v96_v14 = vsel %vm77_vm0, %v57_v12, 0.0  ;;  %v99_v15 = vsel %vm77_vm0, %v58_v13, 0.0 }
   0x7   :  { %82 = vadd.xlane.f32.xlu0 %v81_v6  ;;  %88 = vadd.xlane.f32.xlu1 %v87_v7 }
   0xb   :  { %91 = vadd.xlane.f32.xlu0 %v90_v10  ;;  %94 = vadd.xlane.f32.xlu1 %v93_v11 }
   0xf   :  { %97 = vadd.xlane.f32.xlu0 %v96_v14  ;;  %100 = vadd.xlane.f32.xlu1 %v99_v15 }
  0x90   :  { %v80_v16 = vpop.xlane.xlu0 %79  ;;  %v86_v17 = vpop.xlane.xlu1 %85 }
  0x91   :  { %v103_v18 = vmul.f32 0.03125, %v80_v16  ;;  %v105_v19 = vmul.f32 0.03125, %v86_v17 }
  0x93   :  { %v5157_v20 = vsub.f32 %v51_v0, %v103_v18  ;;  %v5159_v21 = vsub.f32 %v53_v1, %v105_v19 }
  0x94   :  { %v83_v22 = vpop.xlane.xlu0 %82  ;;  %v89_v23 = vpop.xlane.xlu1 %88 }
  0x95   :  { %v104_v24 = vmul.f32 0.03125, %v83_v22  ;;  %v106_v25 = vmul.f32 0.03125, %v89_v23  ;;  %v119_v26 = vmul.f32 %v5157_v20, %v5157_v20  ;;  %v121_v27 = vmul.f32 %v5159_v21, %v5159_v21 }
  0x97   :  { %v5165_v28 = vsub.f32 %v52_v2, %v104_v24  ;;  %v5167_v29 = vsub.f32 %v54_v5, %v106_v25  ;;  %v127_v30 = vsel %vm77_vm0, %v119_v26, 0.0  ;;  %v133_v33 = vsel %vm77_vm0, %v121_v27, 0.0 }
  0x98   :  { %128 = vadd.xlane.f32.xlu0 %v127_v30  ;;  %v92_v31 = vpop.xlane.xlu0 %91  ;;  %v95_v32 = vpop.xlane.xlu1 %94 }
  0x99   :  { %v107_v34 = vmul.f32 0.03125, %v92_v31  ;;  %v108_v35 = vmul.f32 0.03125, %v95_v32  ;;  %v120_v36 = vmul.f32 %v5165_v28, %v5165_v28  ;;  %v122_v37 = vmul.f32 %v5167_v29, %v5167_v29 }
  0x9b   :  { %v5175_v38 = vsub.f32 %v55_v8, %v107_v34  ;;  %v5177_v39 = vsub.f32 %v56_v9, %v108_v35  ;;  %v130_v40 = vsel %vm77_vm0, %v120_v36, 0.0  ;;  %v136_v43 = vsel %vm77_vm0, %v122_v37, 0.0 }
  0x9c   :  { %134 = vadd.xlane.f32.xlu0 %v133_v33  ;;  %131 = vadd.xlane.f32.xlu1 %v130_v40  ;;  %v98_v41 = vpop.xlane.xlu0 %97  ;;  %v101_v42 = vpop.xlane.xlu1 %100 }
  0x9d   :  { %v109_v44 = vmul.f32 0.03125, %v98_v41  ;;  %v110_v45 = vmul.f32 0.03125, %v101_v42  ;;  %v123_v46 = vmul.f32 %v5175_v38, %v5175_v38  ;;  %v124_v47 = vmul.f32 %v5177_v39, %v5177_v39 }
  0x9f   :  { %v5185_v48 = vsub.f32 %v57_v12, %v109_v44  ;;  %v5187_v49 = vsub.f32 %v58_v13, %v110_v45  ;;  %v139_v50 = vsel %vm77_vm0, %v123_v46, 0.0  ;;  %v142_v51 = vsel %vm77_vm0, %v124_v47, 0.0 }
  0xa0   :  { %137 = vadd.xlane.f32.xlu1 %v136_v43  ;;  %140 = vadd.xlane.f32.xlu0 %v139_v50 }
  0xa1   :  { %v125_v52 = vmul.f32 %v5185_v48, %v5185_v48  ;;  %v126_v53 = vmul.f32 %v5187_v49, %v5187_v49 }
  0xa3   :  { %v145_v54 = vsel %vm77_vm0, %v125_v52, 0.0  ;;  %v148_v55 = vsel %vm77_vm0, %v126_v53, 0.0 }
  0xa4   :  { %143 = vadd.xlane.f32.xlu1 %v142_v51  ;;  %146 = vadd.xlane.f32.xlu0 %v145_v54 }
  0xa8   :  { %149 = vadd.xlane.f32.xlu1 %v148_v55 }
 0x125   :  { %v129_v56 = vpop.xlane.xlu0 %128 }
 0x126   :  { %v151_v57 = vmul.f32 0.03125, %v129_v56 }
 0x128   :  { %4642 = vrsqrt.f32 %v151_v57  ;;  %vm161_vm1 = vcmp.eq.f32.partialorder %v151_v57, inf  ;;  %v164_v8 = vand.u32 2147483648, %v151_v57  ;;  %vm163_vm2 = vcmp.eq.f32.partialorder %v151_v57, 0.0 }
 0x129   :  { %v132_v58 = vpop.xlane.xlu1 %131  ;;  %v135_v59 = vpop.xlane.xlu0 %134 }
 0x12a   :  { %v152_v60 = vmul.f32 0.03125, %v132_v58  ;;  %v153_v61 = vmul.f32 0.03125, %v135_v59 }
 0x12c   :  { %4644 = vrsqrt.f32 %v152_v60  ;;  %vm168_vm3 = vcmp.eq.f32.partialorder %v152_v60, inf  ;;  %vm170_vm4 = vcmp.eq.f32.partialorder %v152_v60, 0.0  ;;  %v171_v17 = vand.u32 2147483648, %v152_v60 }
 0x12d   :  { %4646 = vrsqrt.f32 %v153_v61  ;;  %v138_v62 = vpop.xlane.xlu1 %137  ;;  %v141_v63 = vpop.xlane.xlu0 %140  ;;  %vm175_vm5 = vcmp.eq.f32.partialorder %v153_v61, inf  ;;  %vm177_vm6 = vcmp.eq.f32.partialorder %v153_v61, 0.0  ;;  %v178_v19 = vand.u32 2147483648, %v153_v61 }
 0x12e   :  { %v154_v0 = vmul.f32 0.03125, %v138_v62  ;;  %v155_v1 = vmul.f32 0.03125, %v141_v63 }
 0x130   :  { %4648 = vrsqrt.f32 %v154_v0  ;;  %vm182_vm7 = vcmp.eq.f32.partialorder %v154_v0, inf  ;;  %vm184_vm8 = vcmp.eq.f32.partialorder %v154_v0, 0.0  ;;  %v185_v26 = vand.u32 2147483648, %v154_v0 }
 0x131   :  { %4650 = vrsqrt.f32 %v155_v1  ;;  %v144_v2 = vpop.xlane.xlu1 %143  ;;  %v147_v3 = vpop.xlane.xlu0 %146  ;;  %vm189_vm9 = vcmp.eq.f32.partialorder %v155_v1, inf  ;;  %v192_v33 = vand.u32 2147483648, %v155_v1  ;;  %vm191_vm10 = vcmp.eq.f32.partialorder %v155_v1, 0.0 }
 0x132   :  { %v4643_v4 = vpop.eup %4642  ;;  %v5197_v5 = vmul.f32 0.03125, %v144_v2  ;;  %v5199_v6 = vmul.f32 0.03125, %v147_v3 }
 0x133   :  { %v160_v7 = vmul.f32 %v4643_v4, %v151_v57 }
 0x134   :  { %4652 = vrsqrt.f32 %v5197_v5  ;;  %vm196_vm11 = vcmp.eq.f32.partialorder %v5197_v5, inf  ;;  %vm198_vm12 = vcmp.eq.f32.partialorder %v5197_v5, 0.0  ;;  %v199_v37 = vand.u32 2147483648, %v5197_v5 }
 0x135   :  { %v162_v9 = vsel %vm161_vm1, %v151_v57, %v160_v7  ;;  %4654 = vrsqrt.f32 %v5199_v6  ;;  %v150_v10 = vpop.xlane.xlu1 %149  ;;  %vm203_vm13 = vcmp.eq.f32.partialorder %v5199_v6, inf  ;;  %v206_v47 = vand.u32 2147483648, %v5199_v6 }
 0x136   :  { %v4645_v11 = vpop.eup %4644  ;;  %v165_v12 = vsel %vm163_vm2, %v164_v8, %v162_v9  ;;  %v5203_v13 = vmul.f32 0.03125, %v150_v10  ;;  %vm205_vm14 = vcmp.eq.f32.partialorder %v5199_v6, 0.0  ;;  %vm5305_vm2 = vmpackc.low %vm77_vm0, %vm77_vm0 }
 0x137   :  { %v4647_v14 = vpop.eup %4646  ;;  %v215_v15 = vadd.f32 1e-05, %v165_v12  ;;  %v167_v16 = vmul.f32 %v4645_v11, %v152_v60  ;;  %v5254_v12 = vld [vmem:[%s7211_s4 + $0x40] sm:$0xff] }
 0x138   :  { %v174_v18 = vmul.f32 %v4647_v14, %v153_v61  ;;  %4656 = vrsqrt.f32 %v5203_v13  ;;  %vm210_vm15 = vcmp.eq.f32.partialorder %v5203_v13, inf  ;;  %v213_v56 = vand.u32 2147483648, %v5203_v13  ;;  %v5259_v14 = vld [vmem:[%s7211_s4 + $0x48] sm:$0xff] }
 0x139   :  { %4658 = vrcp.f32 %v215_v15  ;;  %v169_v22 = vsel %vm168_vm3, %v152_v60, %v167_v16  ;;  %vm212_vm1 = vcmp.eq.f32.partialorder %v5203_v13, 0.0 }
 0x13a   :  { %v4649_v23 = vpop.eup %4648  ;;  %v172_v24 = vsel %vm170_vm4, %v171_v17, %v169_v22  ;;  %v176_v25 = vsel %vm175_vm5, %v153_v61, %v174_v18  ;;  %v5231_v61 = vld [vmem:[%s7209_s2] ss:$0 sm:$0xff] }
 0x13b   :  { %v4651_v27 = vpop.eup %4650  ;;  %v216_v30 = vadd.f32 1e-05, %v172_v24  ;;  %v179_v31 = vsel %vm177_vm6, %v178_v19, %v176_v25  ;;  %v181_v32 = vmul.f32 %v4649_v23, %v154_v0 }
 0x13c   :  { %v217_v34 = vadd.f32 1e-05, %v179_v31  ;;  %v188_v35 = vmul.f32 %v4651_v27, %v155_v1 }
 0x13d   :  { %4660 = vrcp.f32 %v216_v30  ;;  %v183_v36 = vsel %vm182_vm7, %v154_v0, %v181_v32  ;;  %v5300_v30 = vld [vmem:[%s7211_s4 + $0xa8] sm:$0xff] }
 0x13e   :  { %v4653_v40 = vpop.eup %4652  ;;  %4662 = vrcp.f32 %v217_v34  ;;  %v186_v41 = vsel %vm184_vm8, %v185_v26, %v183_v36  ;;  %v190_v42 = vsel %vm189_vm9, %v155_v1, %v188_v35  ;;  %v5238_v1 = vld [vmem:[%s7210_s3] ss:$0 sm:$0xff]  ;;  %v5312_v34 = vld [vmem:[%s7211_s4 + $0x58] sm:$0xff] }
 0x13f   :  { %v4655_v43 = vpop.eup %4654  ;;  %v218_v44 = vadd.f32 1e-05, %v186_v41  ;;  %v193_v45 = vsel %vm191_vm10, %v192_v33, %v190_v42  ;;  %v195_v46 = vmul.f32 %v4653_v40, %v5197_v5  ;;  %v286_v35 = vld [vmem:[%s7211_s4 + $0x98] sm:$0xff]  ;;  %v3773_v33 = vld [vmem:[%s7211_s4 + $0xe0] sm:$0xff] }
 0x140   :  { %v219_v50 = vadd.f32 1e-05, %v193_v45  ;;  %v202_v51 = vmul.f32 %v4655_v43, %v5199_v6  ;;  %v287_v45 = vld [vmem:[%s7211_s4 + $0xa0] sm:$0xff] }
 0x141   :  { %4664 = vrcp.f32 %v218_v44  ;;  %v197_v52 = vsel %vm196_vm11, %v5197_v5, %v195_v46 }
 0x142   :  { %v4657_v53 = vpop.eup %4656  ;;  %4666 = vrcp.f32 %v219_v50  ;;  %v200_v54 = vsel %vm198_vm12, %v199_v37, %v197_v52  ;;  %v204_v55 = vsel %vm203_vm13, %v5199_v6, %v202_v51  ;;  %v267_v6 = vld [vmem:[%s7211_s4] sm:$0xff]  ;;  %v5342_v52 = vld [vmem:[%s7211_s4 + $0x68] sm:$0xff] }
 0x143   :  { %v4659_v57 = vpop.eup %4658  ;;  %v220_v58 = vadd.f32 1e-05, %v200_v54  ;;  %v207_v59 = vsel %vm205_vm14, %v206_v47, %v204_v55  ;;  %v209_v60 = vmul.f32 %v4657_v53, %v5203_v13  ;;  %v290_v55 = vld [vmem:[%s7211_s4 + $0xb8] sm:$0xff] }
 0x144   :  { %v221_v62 = vadd.f32 1e-05, %v207_v59  ;;  %v231_v63 = vmul.f32 %v4659_v57, %v5157_v20  ;;  %v5356_v59 = vld [vmem:[%s7211_s4 + $0x60] sm:$0xff] }
 0x145   :  { %4668 = vrcp.f32 %v220_v58  ;;  %v211_v0 = vsel %vm210_vm15, %v5203_v13, %v209_v60 }
 0x146   :  { %v214_v2 = vsel %vm212_vm1, %v213_v56, %v211_v0  ;;  %v245_v3 = vmul.f32 %v5231_v61, %v231_v63  ;;  %4670 = vrcp.f32 %v221_v62  ;;  %v289_v62 = vld [vmem:[%s7211_s4 + $0xb0] sm:$0xff] }
 0x147   :  { %v4661_v4 = vpop.eup %4660  ;;  %v222_v5 = vadd.f32 1e-05, %v214_v2 }
 0x148   :  { %v4663_v7 = vpop.eup %4662  ;;  %v5245_v20 = vadd.f32 %v5238_v1, %v245_v3  ;;  %v232_v8 = vmul.f32 %v4661_v4, %v5165_v28  ;;  %v5264_v28 = vld [vmem:[%s7211_s4 + $0x80] sm:$0xff] }
 0x149   :  { %4672 = vrcp.f32 %v222_v5  ;;  %v233_v9 = vmul.f32 %v4663_v7, %v5159_v21  ;;  %v284_v21 = vld [vmem:[%s7211_s4 + $0x88] sm:$0xff] }
 0x14a   :  { %v291_v10 = vmul.f32 %v267_v6, %v5245_v20  ;;  %v246_v11 = vmul.f32 %v5231_v61, %v232_v8  ;;  %v299_v22 = vmul.f32 %v5254_v12, %v5245_v20  ;;  %v307_v25 = vmul.f32 %v5264_v28, %v5245_v20 }
 0x14b   :  { %v4665_v13 = vpop.eup %4664  ;;  %v247_v15 = vmul.f32 %v5231_v61, %v233_v9  ;;  %v311_v58 = vmul.f32 %v287_v45, %v5245_v20 }
 0x14c   :  { %v4667_v16 = vpop.eup %4666  ;;  %4115 = vmatprep.mubr.msk.f32.mxu0 %vm77_vm0, %v291_v10  ;;  %v5272_v17 = vadd.f32 %v5238_v1, %v246_v11  ;;  %v234_v18 = vmul.f32 %v4665_v13, %v5167_v29  ;;  %v5290_v29 = vld [vmem:[%s7211_s4 + $0x50] sm:$0xff]  ;;  %v282_v11 = vld [vmem:[%s7211_s4 + $0x78] sm:$0xff] }
 0x14d   :  { %v235_v19 = vmul.f32 %v4667_v16, %v5175_v38  ;;  %v5279_v23 = vadd.f32 %v5238_v1, %v247_v15  ;;  %v5295_v38 = vld [vmem:[%s7211_s4 + $0x90] sm:$0xff] }
 0x14e   :  { %v300_v24 = vmul.f32 %v5259_v14, %v5272_v17  ;;  %v308_v26 = vmul.f32 %v284_v21, %v5272_v17  ;;  %v248_v27 = vmul.f32 %v5231_v61, %v234_v18  ;;  %v304_v60 = vmul.f32 %v5342_v52, %v5272_v17 }
 0x14f   :  { %v4669_v31 = vpop.eup %4668  ;;  %v249_v32 = vmul.f32 %v5231_v61, %v235_v19  ;;  %v301_v43 = vmul.f32 %v5290_v29, %v5279_v23  ;;  %v309_v44 = vmul.f32 %v5295_v38, %v5279_v23 }
 0x150   :  { %v236_v36 = vmul.f32 %v4669_v31, %v5177_v39  ;;  %v4423_v37 = vpack.c.bf16 %v300_v24, %v299_v22  ;;  %v4471_v40 = vpack.c.bf16 %v308_v26, %v307_v25  ;;  %v5319_v41 = vadd.f32 %v5238_v1, %v248_v27  ;;  %v4671_v46 = vpop.eup %4670 }
 0x151   :  { %v5322_v42 = vadd.f32 %v5238_v1, %v249_v32  ;;  %v312_v39 = vmul.f32 %v5300_v30, %v5272_v17  ;;  %v237_v63 = vmul.f32 %v4671_v46, %v5185_v48  ;;  %v313_v48 = vmul.f32 %v289_v62, %v5279_v23 }
 0x152   :  { %v250_v47 = vmul.f32 %v5231_v61, %v236_v36  ;;  %4425 = vmatprep.subr.msk.bf16.mxu0 %vm5305_vm2, %v4423_v37  ;;  %4472 = vmatprep.subr.bf16.mxu1 %v4471_v40  ;;  %v302_v50 = vmul.f32 %v5312_v34, %v5319_v41  ;;  %v310_v51 = vmul.f32 %v286_v35, %v5319_v41 }
 0x153   :  { %v4673_v53 = vpop.eup %4672  ;;  %v5345_v54 = vmul.f32 %v267_v6, %v5322_v42  ;;  %4428 = vmatpush3.bf16.xpose.msk.msra.mxu0 %vm5305_vm2, %v4423_v37  ;;  %4474 = vmatpush3.bf16.msra.mxu1 %v4471_v40  ;;  %v4479_v3 = vpack.c.bf16 %v312_v39, %v311_v58  ;;  %v314_v4 = vmul.f32 %v290_v55, %v5319_v41  ;;  %v269_v39 = vld [vmem:[%s7211_s4 + $0x10] sm:$0xff] }
 0x154   :  { %v4429_v56 = vpack.c.bf16 %v302_v50, %v301_v43  ;;  %v4475_v57 = vpack.c.bf16 %v310_v51, %v309_v44  ;;  %v238_v0 = vmul.f32 %v4673_v53, %v5187_v49  ;;  %v5366_v2 = vadd.f32 %v5238_v1, %v250_v47  ;;  %v270_v50 = vld [vmem:[%s7211_s4 + $0x18] sm:$0xff]  ;;  %v271_v51 = vld [vmem:[%s7211_s4 + $0x20] sm:$0xff] }
 0x155   :  { %v303_v6 = vmul.f32 %v5356_v59, %v5245_v20  ;;  %v251_v49 = vmul.f32 %v5231_v61, %v237_v63  ;;  %v4483_v9 = vpack.c.bf16 %v314_v4, %v313_v48  ;;  %v331_v13 = vmul.f32 %v5264_v28, %v5322_v42  ;;  %v61_v48 = vld [vmem:[%s7208_s1 + $0x10] sm:$0xff] }
 0x156   :  { %4431 = vmatprep.subr.msk.bf16.mxu0 %vm5305_vm2, %v4429_v56  ;;  %4476 = vmatprep.subr.bf16.mxu1 %v4475_v57  ;;  %v252_v5 = vmul.f32 %v5231_v61, %v238_v0  ;;  %v332_v7 = vmul.f32 %v284_v21, %v5366_v2  ;;  %v281_v21 = vld [vmem:[%s7211_s4 + $0x70] sm:$0xff]  ;;  %v306_v16 = vmul.f32 %v282_v11, %v5319_v41  ;;  %v59_v0 = vld [vmem:[%s7208_s1] sm:$0xff] }
 0x157   :  { %4478 = vmatpush3.bf16.msra.mxu1 %v4475_v57  ;;  %v4435_v8 = vpack.c.bf16 %v304_v60, %v303_v6  ;;  %v5390_v61 = vadd.f32 %v5238_v1, %v251_v49  ;;  %v305_v28 = vmul.f32 %v281_v21, %v5279_v23  ;;  %v335_v25 = vmul.f32 %v287_v45, %v5322_v42  ;;  %v268_v45 = vld [vmem:[%s7211_s4 + $0x8] sm:$0xff]  ;;  %v62_v6 = vld [vmem:[%s7208_s1 + $0x18] sm:$0xff] }
 0x158   :  { %4480 = vmatprep.subr.bf16.mxu1 %v4479_v3  ;;  %v5378_v10 = vadd.f32 %v5238_v1, %v252_v5  ;;  %v4487_v15 = vpack.c.bf16 %v332_v7, %v331_v13  ;;  %v336_v1 = vmul.f32 %v5300_v30, %v5366_v2  ;;  %v324_v26 = vmul.f32 %v5259_v14, %v5366_v2 }
 0x159   :  { %v333_v19 = vmul.f32 %v5295_v38, %v5390_v61  ;;  %v4441_v22 = vpack.c.bf16 %v306_v16, %v305_v28  ;;  %v323_v30 = vmul.f32 %v5254_v12, %v5322_v42  ;;  %v337_v31 = vmul.f32 %v289_v62, %v5390_v61  ;;  %v66_v16 = vld [vmem:[%s7208_s1 + $0x38] sm:$0xff] }
 0x15a   :  { %v334_v18 = vmul.f32 %v286_v35, %v5378_v10  ;;  %v4495_v27 = vpack.c.bf16 %v336_v1, %v335_v25  ;;  %v338_v38 = vmul.f32 %v290_v55, %v5378_v10  ;;  %v326_v14 = vmul.f32 %v5312_v34, %v5378_v10  ;;  %v272_v55 = vld [vmem:[%s7211_s4 + $0x28] sm:$0xff]  ;;  %v67_v25 = vld [vmem:[%s7208_s1 + $0x40] sm:$0xff] }
 0x15b   :  { %4434 = vmatpush3.bf16.xpose.msk.msra.mxu0 %vm5305_vm2, %v4429_v56  ;;  %4482 = vmatpush3.bf16.msra.mxu1 %v4479_v3  ;;  %v4447_v32 = vpack.c.bf16 %v324_v26, %v323_v30  ;;  %v325_v12 = vmul.f32 %v5290_v29, %v5390_v61  ;;  %v328_v37 = vmul.f32 %v5342_v52, %v5366_v2  ;;  %v273_v56 = vld [vmem:[%s7211_s4 + $0x30] sm:$0xff]  ;;  %v68_v1 = vld [vmem:[%s7208_s1 + $0x48] sm:$0xff] }
 0x15c   :  { %4437 = vmatprep.subr.msk.bf16.mxu0 %vm5305_vm2, %v4435_v8  ;;  %4484 = vmatprep.subr.bf16.mxu1 %v4483_v9  ;;  %v4491_v24 = vpack.c.bf16 %v334_v18, %v333_v19  ;;  %v4499_v35 = vpack.c.bf16 %v338_v38, %v337_v31  ;;  %v327_v40 = vmul.f32 %v5356_v59, %v5322_v42  ;;  %v65_v18 = vld [vmem:[%s7208_s1 + $0x30] sm:$0xff]  ;;  %v70_v31 = vld [vmem:[%s7208_s1 + $0x58] sm:$0xff] }
 0x15d   :  { %v4453_v36 = vpack.c.bf16 %v326_v14, %v325_v12  ;;  %v330_v29 = vmul.f32 %v282_v11, %v5378_v10  ;;  %v329_v34 = vmul.f32 %v281_v21, %v5390_v61  ;;  %v292_v46 = vmul.f32 %v268_v45, %v5272_v17  ;;  %v63_v11 = vld [vmem:[%s7208_s1 + $0x20] sm:$0xff] }
 0x15e   :  { %v4459_v43 = vpack.c.bf16 %v328_v37, %v327_v40  ;;  %v293_v47 = vmul.f32 %v269_v39, %v5279_v23  ;;  %v294_v52 = vmul.f32 %v270_v50, %v5319_v41  ;;  %v295_v53 = vmul.f32 %v271_v51, %v5245_v20  ;;  %v274_v20 = vld [vmem:[%s7211_s4 + $0x38] sm:$0xff]  ;;  %v72_v37 = vld [vmem:[%s7208_s1 + $0x68] sm:$0xff]  ;;  %v71_v40 = vld [vmem:[%s7208_s1 + $0x60] sm:$0xff] }
 0x15f   :  { %4486 = vmatpush3.bf16.msra.mxu1 %v4483_v9  ;;  %v4465_v44 = vpack.c.bf16 %v330_v29, %v329_v34  ;;  %v296_v57 = vmul.f32 %v272_v55, %v5272_v17  ;;  %v297_v58 = vmul.f32 %v273_v56, %v5279_v23  ;;  %v298_v59 = vmul.f32 %v274_v20, %v5319_v41 }
 0x160   :  { %4488 = vmatprep.subr.bf16.mxu1 %v4487_v15  ;;  %v316_v60 = vmul.f32 %v268_v45, %v5366_v2  ;;  %v317_v17 = vmul.f32 %v269_v39, %v5390_v61  ;;  %v318_v23 = vmul.f32 %v270_v50, %v5378_v10  ;;  %v319_v62 = vmul.f32 %v271_v51, %v5322_v42  ;;  %v60_v42 = vld [vmem:[%s7208_s1 + $0x8] sm:$0xff]  ;;  %v74_v45 = vld [vmem:[%s7208_s1 + $0x78] sm:$0xff]  ;;  %v73_v39 = vld [vmem:[%s7208_s1 + $0x70] sm:$0xff] }
 0x161   :  { %v320_v41 = vmul.f32 %v272_v55, %v5366_v2  ;;  %v322_v63 = vmul.f32 %v274_v20, %v5378_v10  ;;  %v64_v10 = vld [vmem:[%s7208_s1 + $0x28] sm:$0xff] }
 0x163   :  { %4440 = vmatpush3.bf16.xpose.msk.msra.mxu0 %vm5305_vm2, %v4435_v8  ;;  %4490 = vmatpush3.bf16.msra.mxu1 %v4487_v15 }
 0x164   :  { %4443 = vmatprep.subr.msk.bf16.mxu0 %vm5305_vm2, %v4441_v22  ;;  %4492 = vmatprep.subr.bf16.mxu1 %v4491_v24 }
 0x167   :  { %4494 = vmatpush3.bf16.msra.mxu1 %v4491_v24 }
 0x168   :  { %4496 = vmatprep.subr.bf16.mxu1 %v4495_v27 }
 0x16b   :  { %4446 = vmatpush3.bf16.xpose.msk.msra.mxu0 %vm5305_vm2, %v4441_v22  ;;  %4498 = vmatpush3.bf16.msra.mxu1 %v4495_v27 }
 0x16c   :  { %4449 = vmatprep.subr.msk.bf16.mxu0 %vm5305_vm2, %v4447_v32  ;;  %4500 = vmatprep.subr.bf16.mxu1 %v4499_v35 }
 0x16f   :  { %4502 = vmatpush3.bf16.msra.mxu1 %v4499_v35 }
 0x173   :  { %4452 = vmatpush3.bf16.xpose.msk.msra.mxu0 %vm5305_vm2, %v4447_v32  ;;  %v69_v32 = vld [vmem:[%s7208_s1 + $0x50] sm:$0xff] }
 0x174   :  { %4455 = vmatprep.subr.msk.bf16.mxu0 %vm5305_vm2, %v4453_v36 }
 0x17b   :  { %4458 = vmatpush3.bf16.xpose.msk.msra.mxu0 %vm5305_vm2, %v4453_v36 }
 0x17c   :  { %4461 = vmatprep.subr.msk.bf16.mxu0 %vm5305_vm2, %v4459_v43 }
 0x183   :  { %4464 = vmatpush3.bf16.xpose.msk.msra.mxu0 %vm5305_vm2, %v4459_v43 }
 0x184   :  { %4467 = vmatprep.subr.msk.bf16.mxu0 %vm5305_vm2, %v4465_v44 }
 0x18b   :  { %4470 = vmatpush3.bf16.xpose.msk.msra.mxu0 %vm5305_vm2, %v4465_v44 }
 0x192   :  { %4116 = vmatmul.mubr.msk.f32.vlgmr.msra.gmra.mrb[0].mxu0 %vm77_vm0, %v292_v46 }
 0x193   :  { %4118 = vmatprep.mubr.msk.f32.mxu0 %vm77_vm0, %v293_v47 }
 0x196   :  { %4119 = vmatmul.mubr.msk.f32.gmra.mrb[2].mxu0 %vm77_vm0, %v294_v52 }
 0x197   :  { %4121 = vmatprep.mubr.msk.f32.mxu0 %vm77_vm0, %v295_v53 }
 0x19a   :  { %4122 = vmatmul.mubr.msk.f32.gmra.mrb[4].mxu0 %vm77_vm0, %v296_v57 }
 0x19b   :  { %4124 = vmatprep.mubr.msk.f32.mxu0 %vm77_vm0, %v297_v58 }
 0x19e   :  { %4125 = vmatmul.mubr.msk.f32.gmra.mrb[6].mxu0 %vm77_vm0, %v298_v59 }
 0x19f   :  { %4127 = vmatprep.mubr.msk.f32.mxu0 %vm77_vm0, %v5345_v54  ;;  %v321_v54 = vmul.f32 %v273_v56, %v5390_v61 }
 0x1a2   :  { %4128 = vmatmul.mubr.msk.f32.gmra.mrb[8].mxu0 %vm77_vm0, %v316_v60 }
 0x1a3   :  { %4130 = vmatprep.mubr.msk.f32.mxu0 %vm77_vm0, %v317_v17 }
 0x1a6   :  { %4131 = vmatmul.mubr.msk.f32.gmra.mrb[10].mxu0 %vm77_vm0, %v318_v23 }
 0x1a7   :  { %4133 = vmatprep.mubr.msk.f32.mxu0 %vm77_vm0, %v319_v62 }
 0x1aa   :  { %4134 = vmatmul.mubr.msk.f32.gmra.mrb[12].mxu0 %vm77_vm0, %v320_v41 }
 0x1ab   :  { %4136 = vmatprep.mubr.msk.f32.mxu0 %vm77_vm0, %v321_v54 }
 0x1ae   :  { %4137 = vmatmul.mubr.msk.f32.gmra.mrb[14].mxu0 %vm77_vm0, %v322_v63 }
 0x265   :  { %v4117_v3 = vpop.f32.mrb[0].mxu0 }
 0x266   :  { %v5498_v2 = vadd.f32 %v4117_v3, %v60_v42  ;;  %v501_v4 = vpop.f32.mrb[1].mxu0 }
 0x267   :  { %v5500_v5 = vadd.f32 %v501_v4, %v59_v0 }
 0x268   :  { %582 = vmax.xlane.f32.xlu1 %v5498_v2 }
 0x269   :  { %v4120_v49 = vpop.f32.mrb[2].mxu0  ;;  %580 = vmax.xlane.f32.xlu0 %v5500_v5 }
 0x26a   :  { %v5510_v7 = vadd.f32 %v4120_v49, %v62_v6  ;;  %v511_v8 = vpop.f32.mrb[3].mxu0 }
 0x26b   :  { %v5512_v9 = vadd.f32 %v511_v8, %v61_v48 }
 0x26c   :  { %586 = vmax.xlane.f32.xlu1 %v5510_v7 }
 0x26d   :  { %v4123_v13 = vpop.f32.mrb[4].mxu0  ;;  %584 = vmax.xlane.f32.xlu0 %v5512_v9 }
 0x26e   :  { %v5522_v61 = vadd.f32 %v4123_v13, %v64_v10  ;;  %v521_v21 = vpop.f32.mrb[5].mxu0 }
 0x26f   :  { %v5524_v15 = vadd.f32 %v521_v21, %v63_v11 }
 0x270   :  { %590 = vmax.xlane.f32.xlu1 %v5522_v61 }
 0x271   :  { %v4126_v28 = vpop.f32.mrb[6].mxu0  ;;  %588 = vmax.xlane.f32.xlu0 %v5524_v15 }
 0x272   :  { %v5534_v19 = vadd.f32 %v4126_v28, %v66_v16  ;;  %v531_v22 = vpop.f32.mrb[7].mxu0 }
 0x273   :  { %v5536_v24 = vadd.f32 %v531_v22, %v65_v18 }
 0x274   :  { %594 = vmax.xlane.f32.xlu1 %v5534_v19 }
 0x275   :  { %v4129_v26 = vpop.f32.mrb[8].mxu0  ;;  %592 = vmax.xlane.f32.xlu0 %v5536_v24 }
 0x276   :  { %v5546_v27 = vadd.f32 %v4129_v26, %v68_v1  ;;  %v541_v38 = vpop.f32.mrb[9].mxu0 }
 0x277   :  { %v5548_v30 = vadd.f32 %v541_v38, %v67_v25 }
 0x278   :  { %598 = vmax.xlane.f32.xlu1 %v5546_v27 }
 0x279   :  { %596 = vmax.xlane.f32.xlu0 %v5548_v30  ;;  %v4132_v35 = vpop.f32.mrb[10].mxu0 }
 0x27a   :  { %v5558_v14 = vadd.f32 %v4132_v35, %v70_v31  ;;  %v551_v12 = vpop.f32.mrb[11].mxu0 }
 0x27b   :  { %v5560_v36 = vadd.f32 %v551_v12, %v69_v32 }
 0x27c   :  { %602 = vmax.xlane.f32.xlu1 %v5558_v14 }
 0x27d   :  { %v4135_v43 = vpop.f32.mrb[12].mxu0  ;;  %600 = vmax.xlane.f32.xlu0 %v5560_v36 }
 0x27e   :  { %v5570_v29 = vadd.f32 %v4135_v43, %v72_v37  ;;  %v561_v34 = vpop.f32.mrb[13].mxu0 }
 0x27f   :  { %v5572_v44 = vadd.f32 %v561_v34, %v71_v40 }
 0x280   :  { %606 = vmax.xlane.f32.xlu1 %v5570_v29 }
 0x281   :  { %v4138_v46 = vpop.f32.mrb[14].mxu0  ;;  %604 = vmax.xlane.f32.xlu0 %v5572_v44 }
 0x282   :  { %v5582_v47 = vadd.f32 %v4138_v46, %v74_v45  ;;  %v571_v50 = vpop.f32.mrb[15].mxu0 }
 0x283   :  { %v5584_v51 = vadd.f32 %v571_v50, %v73_v39 }
 0x284   :  { %610 = vmax.xlane.f32.xlu1 %v5582_v47 }
 0x285   :  { %608 = vmax.xlane.f32.xlu0 %v5584_v51 }
 0x2f5   :  { %v583_v52 = vpop.xlane.xlu1 %582 }
 0x2f6   :  { %v613_v53 = vsub.f32 %v5498_v2, %v583_v52  ;;  %v581_v55 = vpop.xlane.xlu0 %580 }
 0x2f7   :  { %v612_v56 = vsub.f32 %v5500_v5, %v581_v55 }
 0x2f8   :  { %v630_v57 = vmul.f32 1.442695, %v613_v53 }
 0x2f9   :  { %v628_v58 = vmul.f32 1.442695, %v612_v56  ;;  %v587_v20 = vpop.xlane.xlu1 %586 }
 0x2fa   :  { %4674 = vpow2.f32 %v630_v57  ;;  %v615_v59 = vsub.f32 %v5510_v7, %v587_v20  ;;  %v585_v60 = vpop.xlane.xlu0 %584 }
 0x2fb   :  { %4676 = vpow2.f32 %v628_v58  ;;  %v614_v17 = vsub.f32 %v5512_v9, %v585_v60 }
 0x2fc   :  { %v634_v23 = vmul.f32 1.442695, %v615_v59 }
 0x2fd   :  { %v632_v62 = vmul.f32 1.442695, %v614_v17  ;;  %v591_v41 = vpop.xlane.xlu1 %590 }
 0x2fe   :  { %4678 = vpow2.f32 %v634_v23  ;;  %v617_v54 = vsub.f32 %v5522_v61, %v591_v41  ;;  %v589_v63 = vpop.xlane.xlu0 %588 }
 0x2ff   :  { %4680 = vpow2.f32 %v632_v62  ;;  %v616_v42 = vsub.f32 %v5524_v15, %v589_v63 }
 0x300   :  { %v638_v0 = vmul.f32 1.442695, %v617_v54 }
 0x301   :  { %v636_v3 = vmul.f32 1.442695, %v616_v42  ;;  %v595_v2 = vpop.xlane.xlu1 %594 }
 0x302   :  { %4682 = vpow2.f32 %v638_v0  ;;  %v619_v4 = vsub.f32 %v5534_v19, %v595_v2  ;;  %v593_v5 = vpop.xlane.xlu0 %592 }
 0x303   :  { %4684 = vpow2.f32 %v636_v3  ;;  %v618_v6 = vsub.f32 %v5536_v24, %v593_v5 }
 0x304   :  { %v5596_v48 = vpop.eup %4674  ;;  %v642_v49 = vmul.f32 1.442695, %v619_v4 }
 0x305   :  { %v5598_v7 = vpop.eup %4676  ;;  %v640_v8 = vmul.f32 1.442695, %v618_v6  ;;  %v599_v9 = vpop.xlane.xlu1 %598  ;;  %662 = vadd.xlane.f32.xlu1 %v5596_v48 }
 0x306   :  { %4686 = vpow2.f32 %v642_v49  ;;  %v621_v10 = vsub.f32 %v5546_v27, %v599_v9  ;;  %v597_v11 = vpop.xlane.xlu0 %596  ;;  %660 = vadd.xlane.f32.xlu0 %v5598_v7 }
 0x307   :  { %4688 = vpow2.f32 %v640_v8  ;;  %v620_v13 = vsub.f32 %v5548_v30, %v597_v11 }
 0x308   :  { %v5604_v61 = vpop.eup %4678  ;;  %v646_v21 = vmul.f32 1.442695, %v621_v10 }
 0x309   :  { %v5606_v15 = vpop.eup %4680  ;;  %v644_v16 = vmul.f32 1.442695, %v620_v13  ;;  %v603_v18 = vpop.xlane.xlu1 %602  ;;  %666 = vadd.xlane.f32.xlu1 %v5604_v61 }
 0x30a   :  { %4690 = vpow2.f32 %v646_v21  ;;  %v623_v28 = vsub.f32 %v5558_v14, %v603_v18  ;;  %664 = vadd.xlane.f32.xlu0 %v5606_v15  ;;  %v601_v19 = vpop.xlane.xlu0 %600 }
 0x30b   :  { %4692 = vpow2.f32 %v644_v16  ;;  %v622_v22 = vsub.f32 %v5560_v36, %v601_v19 }
 0x30c   :  { %v5612_v24 = vpop.eup %4682  ;;  %v650_v1 = vmul.f32 1.442695, %v623_v28 }
 0x30d   :  { %v5614_v25 = vpop.eup %4684  ;;  %v648_v26 = vmul.f32 1.442695, %v622_v22  ;;  %v607_v27 = vpop.xlane.xlu1 %606  ;;  %670 = vadd.xlane.f32.xlu1 %v5612_v24 }
 0x30e   :  { %4694 = vpow2.f32 %v650_v1  ;;  %v625_v38 = vsub.f32 %v5570_v29, %v607_v27  ;;  %668 = vadd.xlane.f32.xlu0 %v5614_v25  ;;  %v605_v30 = vpop.xlane.xlu0 %604 }
 0x30f   :  { %4696 = vpow2.f32 %v648_v26  ;;  %v624_v31 = vsub.f32 %v5572_v44, %v605_v30 }
 0x310   :  { %v5620_v32 = vpop.eup %4686  ;;  %v654_v35 = vmul.f32 1.442695, %v625_v38 }
 0x311   :  { %v5622_v14 = vpop.eup %4688  ;;  %v652_v12 = vmul.f32 1.442695, %v624_v31  ;;  %674 = vadd.xlane.f32.xlu1 %v5620_v32  ;;  %v611_v36 = vpop.xlane.xlu1 %610 }
 0x312   :  { %4698 = vpow2.f32 %v654_v35  ;;  %v627_v37 = vsub.f32 %v5582_v47, %v611_v36  ;;  %672 = vadd.xlane.f32.xlu0 %v5622_v14  ;;  %v609_v40 = vpop.xlane.xlu0 %608 }
 0x313   :  { %4700 = vpow2.f32 %v652_v12  ;;  %v626_v43 = vsub.f32 %v5584_v51, %v609_v40 }
 0x314   :  { %v5628_v29 = vpop.eup %4690  ;;  %v658_v34 = vmul.f32 1.442695, %v627_v37  ;;  %v870_v37 = vld [vmem:[%s7212_s5 + $0x8] sm:$0xff] }
 0x315   :  { %v5630_v44 = vpop.eup %4692  ;;  %v656_v45 = vmul.f32 1.442695, %v626_v43  ;;  %678 = vadd.xlane.f32.xlu1 %v5628_v29  ;;  %v869_v43 = vld [vmem:[%s7212_s5] sm:$0xff] }
 0x316   :  { %4702 = vpow2.f32 %v658_v34  ;;  %676 = vadd.xlane.f32.xlu0 %v5630_v44  ;;  %v874_v34 = vld [vmem:[%s7212_s5 + $0x28] sm:$0xff] }
 0x317   :  { %4704 = vpow2.f32 %v656_v45  ;;  %v873_v45 = vld [vmem:[%s7212_s5 + $0x20] sm:$0xff] }
 0x318   :  { %v5634_v39 = vpop.eup %4694 }
 0x319   :  { %v5636_v46 = vpop.eup %4696  ;;  %682 = vadd.xlane.f32.xlu1 %v5634_v39 }
 0x31a   :  { %680 = vadd.xlane.f32.xlu0 %v5636_v46 }
 0x31c   :  { %v5640_v47 = vpop.eup %4698 }
 0x31d   :  { %v5642_v50 = vpop.eup %4700  ;;  %686 = vadd.xlane.f32.xlu1 %v5640_v47 }
 0x31e   :  { %684 = vadd.xlane.f32.xlu0 %v5642_v50 }
 0x320   :  { %v5646_v51 = vpop.eup %4702 }
 0x321   :  { %v5648_v52 = vpop.eup %4704  ;;  %690 = vadd.xlane.f32.xlu1 %v5646_v51 }
 0x322   :  { %688 = vadd.xlane.f32.xlu0 %v5648_v52 }
 0x392   :  { %v663_v53 = vpop.xlane.xlu1 %662 }
 0x393   :  { %4706 = vrcp.f32 %v663_v53  ;;  %v661_v55 = vpop.xlane.xlu0 %660 }
 0x394   :  { %4708 = vrcp.f32 %v661_v55  ;;  %v876_v55 = vld [vmem:[%s7212_s5 + $0x38] sm:$0xff] }
 0x396   :  { %v667_v56 = vpop.xlane.xlu1 %666 }
 0x397   :  { %4710 = vrcp.f32 %v667_v56  ;;  %v665_v57 = vpop.xlane.xlu0 %664 }
 0x398   :  { %4712 = vrcp.f32 %v665_v57 }
 0x39a   :  { %v671_v58 = vpop.xlane.xlu1 %670 }
 0x39b   :  { %4714 = vrcp.f32 %v671_v58  ;;  %v669_v20 = vpop.xlane.xlu0 %668 }
 0x39c   :  { %4716 = vrcp.f32 %v669_v20  ;;  %v875_v20 = vld [vmem:[%s7212_s5 + $0x30] sm:$0xff] }
 0x39d   :  { %v4707_v59 = vpop.eup %4706 }
 0x39e   :  { %v4709_v60 = vpop.eup %4708  ;;  %v675_v17 = vpop.xlane.xlu1 %674  ;;  %v709_v41 = vmul.f32 %v4707_v59, %v5596_v48 }
 0x39f   :  { %4718 = vrcp.f32 %v675_v17  ;;  %v673_v23 = vpop.xlane.xlu0 %672  ;;  %v708_v62 = vmul.f32 %v4709_v60, %v5598_v7 }
 0x3a0   :  { %4720 = vrcp.f32 %v673_v23 }
 0x3a1   :  { %v4711_v54 = vpop.eup %4710  ;;  %4171 = vmatprep.mubr.f32.mxu1 %v708_v62 }
 0x3a2   :  { %v4713_v63 = vpop.eup %4712  ;;  %v679_v42 = vpop.xlane.xlu1 %678  ;;  %4172 = vmatmul.mubr.f32.vlgmr.msra.gmra.mrb[0].mxu1 %v709_v41  ;;  %v711_v2 = vmul.f32 %v4711_v54, %v5604_v61 }
 0x3a3   :  { %4722 = vrcp.f32 %v679_v42  ;;  %v677_v0 = vpop.xlane.xlu0 %676  ;;  %v710_v3 = vmul.f32 %v4713_v63, %v5606_v15 }
 0x3a4   :  { %4724 = vrcp.f32 %v677_v0  ;;  %v4994_v0 = vld [vmem:[%s7207_s0 + $0x8] sm:$0xff] }
 0x3a5   :  { %v4715_v4 = vpop.eup %4714  ;;  %4174 = vmatprep.mubr.f32.mxu1 %v710_v3 }
 0x3a6   :  { %v4717_v5 = vpop.eup %4716  ;;  %v683_v6 = vpop.xlane.xlu1 %682  ;;  %4175 = vmatmul.mubr.f32.gmra.mrb[2].mxu1 %v711_v2  ;;  %v713_v7 = vmul.f32 %v4715_v4, %v5612_v24 }
 0x3a7   :  { %4726 = vrcp.f32 %v683_v6  ;;  %v681_v49 = vpop.xlane.xlu0 %680  ;;  %v712_v48 = vmul.f32 %v4717_v5, %v5614_v25  ;;  %v4995_v5 = vld [vmem:[%s7207_s0] sm:$0xff] }
 0x3a8   :  { %4728 = vrcp.f32 %v681_v49 }
 0x3a9   :  { %v4719_v8 = vpop.eup %4718  ;;  %4177 = vmatprep.mubr.f32.mxu1 %v712_v48 }
 0x3aa   :  { %v4721_v9 = vpop.eup %4720  ;;  %v687_v10 = vpop.xlane.xlu1 %686  ;;  %4178 = vmatmul.mubr.f32.gmra.mrb[4].mxu1 %v713_v7  ;;  %v715_v61 = vmul.f32 %v4719_v8, %v5620_v32 }
 0x3ab   :  { %4730 = vrcp.f32 %v687_v10  ;;  %v685_v11 = vpop.xlane.xlu0 %684  ;;  %v714_v13 = vmul.f32 %v4721_v9, %v5622_v14 }
 0x3ac   :  { %4732 = vrcp.f32 %v685_v11 }
 0x3ad   :  { %v4723_v21 = vpop.eup %4722  ;;  %4180 = vmatprep.mubr.f32.mxu1 %v714_v13 }
 0x3ae   :  { %v4725_v15 = vpop.eup %4724  ;;  %v691_v16 = vpop.xlane.xlu1 %690  ;;  %4181 = vmatmul.mubr.f32.gmra.mrb[6].mxu1 %v715_v61  ;;  %v717_v19 = vmul.f32 %v4723_v21, %v5628_v29  ;;  %v4996_v61 = vld [vmem:[%s7207_s0 + $0x18] sm:$0xff] }
 0x3af   :  { %4734 = vrcp.f32 %v691_v16  ;;  %v689_v18 = vpop.xlane.xlu0 %688  ;;  %v716_v28 = vmul.f32 %v4725_v15, %v5630_v44  ;;  %v4997_v15 = vld [vmem:[%s7207_s0 + $0x10] sm:$0xff] }
 0x3b0   :  { %4736 = vrcp.f32 %v689_v18 }
 0x3b1   :  { %v4727_v22 = vpop.eup %4726  ;;  %4183 = vmatprep.mubr.f32.mxu1 %v716_v28 }
 0x3b2   :  { %v4729_v24 = vpop.eup %4728  ;;  %4184 = vmatmul.mubr.f32.gmra.mrb[8].mxu1 %v717_v19  ;;  %v719_v25 = vmul.f32 %v4727_v22, %v5634_v39 }
 0x3b3   :  { %v718_v1 = vmul.f32 %v4729_v24, %v5636_v46  ;;  %v872_v46 = vld [vmem:[%s7212_s5 + $0x18] sm:$0xff] }
 0x3b5   :  { %v4731_v26 = vpop.eup %4730  ;;  %4186 = vmatprep.mubr.f32.mxu1 %v718_v1 }
 0x3b6   :  { %v4733_v27 = vpop.eup %4732  ;;  %4187 = vmatmul.mubr.f32.gmra.mrb[10].mxu1 %v719_v25  ;;  %v721_v30 = vmul.f32 %v4731_v26, %v5640_v47 }
 0x3b7   :  { %v720_v38 = vmul.f32 %v4733_v27, %v5642_v50  ;;  %v871_v50 = vld [vmem:[%s7212_s5 + $0x10] sm:$0xff] }
 0x3b9   :  { %v4735_v31 = vpop.eup %4734  ;;  %4189 = vmatprep.mubr.f32.mxu1 %v720_v38 }
 0x3ba   :  { %v4737_v32 = vpop.eup %4736  ;;  %4190 = vmatmul.mubr.f32.gmra.mrb[12].mxu1 %v721_v30  ;;  %v723_v14 = vmul.f32 %v4735_v31, %v5646_v51 }
 0x3bb   :  { %v722_v35 = vmul.f32 %v4737_v32, %v5648_v52 }
 0x3bd   :  { %4192 = vmatprep.mubr.f32.mxu1 %v722_v35 }
 0x3be   :  { %4193 = vmatmul.mubr.f32.gmra.mrb[14].mxu1 %v723_v14 }
 0x475   :  { %v4173_v12 = vpop.f32.mrb[0].mxu1 }
 0x476   :  { %v790_v36 = vpop.f32.mrb[1].mxu1  ;;  %v878_v44 = vmul.f32 %v4173_v12, %v870_v37 }
 0x477   :  { %v877_v39 = vmul.f32 %v869_v43, %v790_v36 }
 0x478   :  { %v896_v56 = vsel %vm77_vm0, %v878_v44, 0.0 }
 0x479   :  { %v4176_v40 = vpop.f32.mrb[2].mxu1  ;;  %v893_v59 = vsel %vm77_vm0, %v877_v39, 0.0 }
 0x47a   :  { %v800_v29 = vpop.f32.mrb[3].mxu1  ;;  %v880_v57 = vmul.f32 %v4176_v40, %v872_v46 }
 0x47b   :  { %v879_v60 = vmul.f32 %v871_v50, %v800_v29 }
 0x47c   :  { %v902_v2 = vsel %vm77_vm0, %v880_v57, 0.0 }
 0x47d   :  { %v4179_v47 = vpop.f32.mrb[4].mxu1  ;;  %v899_v49 = vsel %vm77_vm0, %v879_v60, 0.0 }
 0x47e   :  { %v882_v51 = vmul.f32 %v4179_v47, %v874_v34  ;;  %v810_v52 = vpop.f32.mrb[5].mxu1  ;;  %v4999_v47 = vld [vmem:[%s7207_s0 + $0x20] sm:$0xff] }
 0x47f   :  { %v881_v53 = vmul.f32 %v873_v45, %v810_v52 }
 0x480   :  { %v897_v58 = vsel %vm77_vm0, %v882_v51, 0.0 }
 0x481   :  { %v898_v17 = vadd.f32 %v897_v58, %v896_v56  ;;  %v894_v23 = vsel %vm77_vm0, %v881_v53, 0.0  ;;  %v4182_v62 = vpop.f32.mrb[6].mxu1  ;;  %v5000_v58 = vld [vmem:[%s7207_s0 + $0x38] sm:$0xff] }
 0x482   :  { %v895_v41 = vadd.f32 %v894_v23, %v893_v59  ;;  %v884_v54 = vmul.f32 %v4182_v62, %v876_v55  ;;  %v820_v63 = vpop.f32.mrb[7].mxu1  ;;  %v5001_v59 = vld [vmem:[%s7207_s0 + $0x30] sm:$0xff] }
 0x483   :  { %v883_v42 = vmul.f32 %v875_v20, %v820_v63  ;;  %v5699_v3 = vadd.f32 %v4994_v0, %v898_v17 }
 0x484   :  { %v903_v4 = vsel %vm77_vm0, %v884_v54, 0.0  ;;  %v5706_v6 = vadd.f32 %v4995_v5, %v895_v41 }
 0x485   :  { %v904_v48 = vadd.f32 %v903_v4, %v902_v2  ;;  %v900_v7 = vsel %vm77_vm0, %v883_v42, 0.0  ;;  %v4185_v8 = vpop.f32.mrb[8].mxu1  ;;  %v930_v9 = vsel %vm77_vm0, %v5699_v3, 0.0 }
 0x486   :  { %v901_v10 = vadd.f32 %v900_v7, %v899_v49  ;;  %931 = vadd.xlane.f32.xlu1 %v930_v9  ;;  %v830_v11 = vpop.f32.mrb[9].mxu1  ;;  %v927_v13 = vsel %vm77_vm0, %v5706_v6, 0.0  ;;  %v886_v24 = vmul.f32 %v4185_v8, %v870_v37 }
 0x487   :  { %928 = vadd.xlane.f32.xlu0 %v927_v13  ;;  %v5717_v21 = vadd.f32 %v4996_v61, %v904_v48  ;;  %v885_v1 = vmul.f32 %v869_v43, %v830_v11 }
 0x488   :  { %v5722_v16 = vadd.f32 %v4997_v15, %v901_v10  ;;  %v908_v30 = vsel %vm77_vm0, %v886_v24, 0.0 }
 0x489   :  { %v4188_v18 = vpop.f32.mrb[10].mxu1  ;;  %v936_v28 = vsel %vm77_vm0, %v5717_v21, 0.0  ;;  %v905_v35 = vsel %vm77_vm0, %v885_v1, 0.0 }
 0x48a   :  { %937 = vadd.xlane.f32.xlu1 %v936_v28  ;;  %v840_v19 = vpop.f32.mrb[11].mxu1  ;;  %v933_v22 = vsel %vm77_vm0, %v5722_v16, 0.0  ;;  %v888_v31 = vmul.f32 %v4188_v18, %v872_v46 }
 0x48b   :  { %934 = vadd.xlane.f32.xlu0 %v933_v22  ;;  %v887_v14 = vmul.f32 %v871_v50, %v840_v19 }
 0x48c   :  { %v914_v39 = vsel %vm77_vm0, %v888_v31, 0.0 }
 0x48d   :  { %v4191_v25 = vpop.f32.mrb[12].mxu1  ;;  %v911_v51 = vsel %vm77_vm0, %v887_v14, 0.0 }
 0x48e   :  { %v890_v26 = vmul.f32 %v4191_v25, %v874_v34  ;;  %v850_v27 = vpop.f32.mrb[13].mxu1  ;;  %v4998_v34 = vld [vmem:[%s7207_s0 + $0x28] sm:$0xff] }
 0x48f   :  { %v889_v38 = vmul.f32 %v873_v45, %v850_v27 }
 0x490   :  { %v909_v32 = vsel %vm77_vm0, %v890_v26, 0.0 }
 0x491   :  { %v910_v12 = vadd.f32 %v909_v32, %v908_v30  ;;  %v906_v36 = vsel %vm77_vm0, %v889_v38, 0.0  ;;  %v4194_v40 = vpop.f32.mrb[14].mxu1 }
 0x492   :  { %v907_v29 = vadd.f32 %v906_v36, %v905_v35  ;;  %v892_v44 = vmul.f32 %v4194_v40, %v876_v55  ;;  %v860_v37 = vpop.f32.mrb[15].mxu1 }
 0x493   :  { %v891_v43 = vmul.f32 %v875_v20, %v860_v37  ;;  %v5735_v45 = vadd.f32 %v4998_v34, %v910_v12  ;;  %v1116_v34 = vld [vmem:[%s7215_s8 + $0x8] sm:$0xff] }
 0x494   :  { %v915_v46 = vsel %vm77_vm0, %v892_v44, 0.0  ;;  %v5742_v50 = vadd.f32 %v4999_v47, %v907_v29  ;;  %v1118_v47 = vld [vmem:[%s7215_s8 + $0x18] sm:$0xff] }
 0x495   :  { %v916_v52 = vadd.f32 %v915_v46, %v914_v39  ;;  %v912_v53 = vsel %vm77_vm0, %v891_v43, 0.0  ;;  %v942_v55 = vsel %vm77_vm0, %v5735_v45, 0.0  ;;  %v1115_v43 = vld [vmem:[%s7215_s8] sm:$0xff]  ;;  %v1117_v46 = vld [vmem:[%s7215_s8 + $0x10] sm:$0xff] }
 0x496   :  { %v913_v56 = vadd.f32 %v912_v53, %v911_v51  ;;  %943 = vadd.xlane.f32.xlu1 %v942_v55  ;;  %v939_v57 = vsel %vm77_vm0, %v5742_v50, 0.0  ;;  %v4503_v39 = vpack.c.bf16 %v1116_v34, %v1115_v43  ;;  %v4507_v51 = vpack.c.bf16 %v1118_v47, %v1117_v46 }
 0x497   :  { %940 = vadd.xlane.f32.xlu0 %v939_v57  ;;  %v5753_v20 = vadd.f32 %v5000_v58, %v916_v52 }
 0x498   :  { %v5758_v60 = vadd.f32 %v5001_v59, %v913_v56  ;;  %4504 = vmatprep.subr.bf16.mxu1 %v4503_v39 }
 0x499   :  { %v948_v17 = vsel %vm77_vm0, %v5753_v20, 0.0  ;;  %4506 = vmatpush3.bf16.msra.mxu1 %v4503_v39  ;;  %v5829_v39 = vld [vmem:[%s7213_s6] ss:$0 sm:$0xff] }
 0x49a   :  { %949 = vadd.xlane.f32.xlu1 %v948_v17  ;;  %v945_v23 = vsel %vm77_vm0, %v5758_v60, 0.0  ;;  %4508 = vmatprep.subr.bf16.mxu1 %v4507_v51 }
 0x49b   :  { %946 = vadd.xlane.f32.xlu0 %v945_v23 }
 0x49d   :  { %4510 = vmatpush3.bf16.msra.mxu1 %v4507_v51 }
 0x513   :  { %v932_v62 = vpop.xlane.xlu1 %931 }
 0x514   :  { %v952_v41 = vmul.f32 0.03125, %v932_v62  ;;  %v929_v54 = vpop.xlane.xlu0 %928 }
 0x515   :  { %v951_v63 = vmul.f32 0.03125, %v929_v54 }
 0x516   :  { %v5765_v42 = vsub.f32 %v5699_v3, %v952_v41 }
 0x517   :  { %v5768_v0 = vsub.f32 %v5706_v6, %v951_v63  ;;  %v938_v2 = vpop.xlane.xlu1 %937 }
 0x518   :  { %v954_v4 = vmul.f32 0.03125, %v938_v2  ;;  %v935_v5 = vpop.xlane.xlu0 %934  ;;  %v968_v49 = vmul.f32 %v5765_v42, %v5765_v42 }
 0x519   :  { %v953_v48 = vmul.f32 0.03125, %v935_v5  ;;  %v967_v7 = vmul.f32 %v5768_v0, %v5768_v0 }
 0x51a   :  { %v5775_v8 = vsub.f32 %v5717_v21, %v954_v4  ;;  %v978_v9 = vsel %vm77_vm0, %v968_v49, 0.0 }
 0x51b   :  { %v5779_v10 = vsub.f32 %v5722_v16, %v953_v48  ;;  %979 = vadd.xlane.f32.xlu1 %v978_v9  ;;  %v975_v11 = vsel %vm77_vm0, %v967_v7, 0.0 }
 0x51c   :  { %976 = vadd.xlane.f32.xlu0 %v975_v11  ;;  %v970_v13 = vmul.f32 %v5775_v8, %v5775_v8 }
 0x51d   :  { %v969_v61 = vmul.f32 %v5779_v10, %v5779_v10 }
 0x51e   :  { %v984_v15 = vsel %vm77_vm0, %v970_v13, 0.0 }
 0x51f   :  { %985 = vadd.xlane.f32.xlu1 %v984_v15  ;;  %v981_v18 = vsel %vm77_vm0, %v969_v61, 0.0 }
 0x520   :  { %982 = vadd.xlane.f32.xlu0 %v981_v18 }
 0x523   :  { %v944_v28 = vpop.xlane.xlu1 %943 }
 0x524   :  { %v956_v19 = vmul.f32 0.03125, %v944_v28  ;;  %v941_v22 = vpop.xlane.xlu0 %940 }
 0x525   :  { %v955_v24 = vmul.f32 0.03125, %v941_v22 }
 0x526   :  { %v5789_v1 = vsub.f32 %v5735_v45, %v956_v19 }
 0x527   :  { %v5792_v25 = vsub.f32 %v5742_v50, %v955_v24  ;;  %v950_v26 = vpop.xlane.xlu1 %949 }
 0x528   :  { %v958_v27 = vmul.f32 0.03125, %v950_v26  ;;  %v947_v38 = vpop.xlane.xlu0 %946  ;;  %v972_v30 = vmul.f32 %v5789_v1, %v5789_v1 }
 0x529   :  { %v957_v31 = vmul.f32 0.03125, %v947_v38  ;;  %v971_v32 = vmul.f32 %v5792_v25, %v5792_v25 }
 0x52a   :  { %v5799_v35 = vsub.f32 %v5753_v20, %v958_v27  ;;  %v990_v14 = vsel %vm77_vm0, %v972_v30, 0.0 }
 0x52b   :  { %v5803_v12 = vsub.f32 %v5758_v60, %v957_v31  ;;  %991 = vadd.xlane.f32.xlu1 %v990_v14  ;;  %v987_v36 = vsel %vm77_vm0, %v971_v32, 0.0 }
 0x52c   :  { %988 = vadd.xlane.f32.xlu0 %v987_v36  ;;  %v974_v40 = vmul.f32 %v5799_v35, %v5799_v35 }
 0x52d   :  { %v973_v29 = vmul.f32 %v5803_v12, %v5803_v12 }
 0x52e   :  { %v996_v44 = vsel %vm77_vm0, %v974_v40, 0.0 }
 0x52f   :  { %997 = vadd.xlane.f32.xlu1 %v996_v44  ;;  %v993_v37 = vsel %vm77_vm0, %v973_v29, 0.0 }
 0x530   :  { %994 = vadd.xlane.f32.xlu0 %v993_v37 }
 0x5a8   :  { %v980_v52 = vpop.xlane.xlu1 %979 }
 0x5a9   :  { %v1000_v53 = vmul.f32 0.03125, %v980_v52  ;;  %v977_v55 = vpop.xlane.xlu0 %976 }
 0x5aa   :  { %v999_v56 = vmul.f32 0.03125, %v977_v55 }
 0x5ab   :  { %4738 = vrsqrt.f32 %v1000_v53  ;;  %vm1016_vm3 = vcmp.eq.f32.partialorder %v1000_v53, inf  ;;  %vm1018_vm4 = vcmp.eq.f32.partialorder %v1000_v53, 0.0  ;;  %v1019_v54 = vand.u32 2147483648, %v1000_v53 }
 0x5ac   :  { %4740 = vrsqrt.f32 %v999_v56  ;;  %v986_v57 = vpop.xlane.xlu1 %985  ;;  %vm1009_vm5 = vcmp.eq.f32.partialorder %v999_v56, inf  ;;  %vm1011_vm6 = vcmp.eq.f32.partialorder %v999_v56, 0.0  ;;  %v1012_v4 = vand.u32 2147483648, %v999_v56 }
 0x5ad   :  { %v1002_v58 = vmul.f32 0.03125, %v986_v57  ;;  %v983_v59 = vpop.xlane.xlu0 %982 }
 0x5ae   :  { %v1001_v17 = vmul.f32 0.03125, %v983_v59 }
 0x5af   :  { %4742 = vrsqrt.f32 %v1002_v58  ;;  %vm1030_vm7 = vcmp.eq.f32.partialorder %v1002_v58, inf  ;;  %vm1032_vm8 = vcmp.eq.f32.partialorder %v1002_v58, 0.0  ;;  %v1033_v22 = vand.u32 2147483648, %v1002_v58 }
 0x5b0   :  { %4744 = vrsqrt.f32 %v1001_v17  ;;  %vm1023_vm9 = vcmp.eq.f32.partialorder %v1001_v17, inf  ;;  %v1026_v27 = vand.u32 2147483648, %v1001_v17  ;;  %vm1025_vm10 = vcmp.eq.f32.partialorder %v1001_v17, 0.0 }
 0x5b5   :  { %v4739_v23 = vpop.eup %4738 }
 0x5b6   :  { %v4741_v62 = vpop.eup %4740  ;;  %v1015_v41 = vmul.f32 %v4739_v23, %v1000_v53 }
 0x5b7   :  { %v1008_v63 = vmul.f32 %v4741_v62, %v999_v56 }
 0x5b8   :  { %v1017_v2 = vsel %vm1016_vm3, %v1000_v53, %v1015_v41  ;;  %v992_v5 = vpop.xlane.xlu1 %991 }
 0x5b9   :  { %v4743_v49 = vpop.eup %4742  ;;  %v1020_v48 = vsel %vm1018_vm4, %v1019_v54, %v1017_v2  ;;  %v1010_v7 = vsel %vm1009_vm5, %v999_v56, %v1008_v63  ;;  %v1004_v9 = vmul.f32 0.03125, %v992_v5  ;;  %v989_v11 = vpop.xlane.xlu0 %988 }
 0x5ba   :  { %v4745_v13 = vpop.eup %4744  ;;  %v1064_v61 = vadd.f32 1e-05, %v1020_v48  ;;  %v1013_v15 = vsel %vm1011_vm6, %v1012_v4, %v1010_v7  ;;  %v1029_v18 = vmul.f32 %v4743_v49, %v1002_v58  ;;  %v1003_v28 = vmul.f32 0.03125, %v989_v11 }
 0x5bb   :  { %v1063_v19 = vadd.f32 1e-05, %v1013_v15  ;;  %v1022_v24 = vmul.f32 %v4745_v13, %v1001_v17  ;;  %4746 = vrsqrt.f32 %v1004_v9  ;;  %vm1044_vm11 = vcmp.eq.f32.partialorder %v1004_v9, inf }
 0x5bc   :  { %4748 = vrcp.f32 %v1064_v61  ;;  %v1031_v26 = vsel %vm1030_vm7, %v1002_v58, %v1029_v18  ;;  %v998_v38 = vpop.xlane.xlu1 %997  ;;  %v1047_v47 = vand.u32 2147483648, %v1004_v9  ;;  %vm1046_vm12 = vcmp.eq.f32.partialorder %v1004_v9, 0.0  ;;  %v3738_v58 = vld [vmem:[%s7214_s7] ss:$0 sm:$0xff] }
 0x5bd   :  { %4750 = vrcp.f32 %v1063_v19  ;;  %v1034_v30 = vsel %vm1032_vm8, %v1033_v22, %v1031_v26  ;;  %v1024_v31 = vsel %vm1023_vm9, %v1001_v17, %v1022_v24  ;;  %v995_v32 = vpop.xlane.xlu0 %994  ;;  %v1006_v29 = vmul.f32 0.03125, %v998_v38 }
 0x5be   :  { %v1066_v14 = vadd.f32 1e-05, %v1034_v30  ;;  %v1027_v36 = vsel %vm1025_vm10, %v1026_v27, %v1024_v31  ;;  %4752 = vrsqrt.f32 %v1003_v28  ;;  %v1005_v44 = vmul.f32 0.03125, %v995_v32 }
 0x5bf   :  { %v1065_v40 = vadd.f32 1e-05, %v1027_v36  ;;  %vm1037_vm13 = vcmp.eq.f32.partialorder %v1003_v28, inf  ;;  %v1040_v62 = vand.u32 2147483648, %v1003_v28  ;;  %vm1039_vm14 = vcmp.eq.f32.partialorder %v1003_v28, 0.0 }
 0x5c0   :  { %4754 = vrcp.f32 %v1066_v14  ;;  %vm1058_vm15 = vcmp.eq.f32.partialorder %v1006_v29, inf  ;;  %vm1060_vm1 = vcmp.eq.f32.partialorder %v1006_v29, 0.0  ;;  %v1061_v13 = vand.u32 2147483648, %v1006_v29 }
 0x5c1   :  { %4756 = vrcp.f32 %v1065_v40  ;;  %vm1051_vm3 = vcmp.eq.f32.partialorder %v1005_v44, inf  ;;  %v1054_v18 = vand.u32 2147483648, %v1005_v44  ;;  %vm1053_vm4 = vcmp.eq.f32.partialorder %v1005_v44, 0.0 }
 0x5c2   :  { %4758 = vrsqrt.f32 %v1006_v29  ;;  %vm1559_vm8 = vcmask 523264  }
 0x5c3   :  { %4760 = vrsqrt.f32 %v1005_v44 }
 0x5c5   :  { %v4747_v37 = vpop.eup %4746 }
 0x5c6   :  { %v4749_v43 = vpop.eup %4748  ;;  %v1043_v34 = vmul.f32 %v4747_v37, %v1004_v9 }
 0x5c7   :  { %v4751_v46 = vpop.eup %4750  ;;  %v1080_v51 = vmul.f32 %v4749_v43, %v5765_v42 }
 0x5c8   :  { %v4753_v52 = vpop.eup %4752  ;;  %v1045_v53 = vsel %vm1044_vm11, %v1004_v9, %v1043_v34  ;;  %v1079_v55 = vmul.f32 %v4751_v46, %v5768_v0 }
 0x5c9   :  { %v1048_v56 = vsel %vm1046_vm12, %v1047_v47, %v1045_v53  ;;  %v1036_v57 = vmul.f32 %v4753_v52, %v1003_v28  ;;  %v1094_v59 = vmul.f32 %v5829_v39, %v1080_v51  ;;  %v1554_v52 = vld [vmem:[%s7217_s10 + $0x18] sm:$0xff] }
 0x5ca   :  { %v4755_v17 = vpop.eup %4754  ;;  %v1068_v23 = vadd.f32 1e-05, %v1048_v56  ;;  %v1093_v41 = vmul.f32 %v5829_v39, %v1079_v55  ;;  %v1555_v55 = vld [vmem:[%s7217_s10 + $0x20] sm:$0xff]  ;;  %v1556_v56 = vld [vmem:[%s7217_s10 + $0x28] sm:$0xff] }
 0x5cb   :  { %v4757_v42 = vpop.eup %4756  ;;  %v1038_v54 = vsel %vm1037_vm13, %v1003_v28, %v1036_v57  ;;  %v1082_v0 = vmul.f32 %v4755_v17, %v5775_v8  ;;  %v1108_v9 = vadd.f32 %v3738_v58, %v1094_v59  ;;  %v4519_v57 = vpack.c.bf16 %v1556_v56, %v1555_v55  ;;  %v1558_v59 = vld [vmem:[%s7217_s10 + $0x38] sm:$0xff] }
 0x5cc   :  { %v4759_v63 = vpop.eup %4758  ;;  %4762 = vrcp.f32 %v1068_v23  ;;  %v1041_v2 = vsel %vm1039_vm14, %v1040_v62, %v1038_v54  ;;  %v1107_v4 = vadd.f32 %v3738_v58, %v1093_v41  ;;  %v1081_v5 = vmul.f32 %v4757_v42, %v5779_v10  ;;  %v3739_v23 = vld [vmem:[%s7216_s9] ss:$0 sm:$0xff] }
 0x5cd   :  { %v4761_v49 = vpop.eup %4760  ;;  %v1067_v48 = vadd.f32 1e-05, %v1041_v2  ;;  %v1057_v7 = vmul.f32 %v4759_v63, %v1006_v29  ;;  %v1096_v11 = vmul.f32 %v5829_v39, %v1082_v0 }
 0x5ce   :  { %v1050_v61 = vmul.f32 %v4761_v49, %v1005_v44  ;;  %4203 = vmatprep.mubr.msk.f32.mxu1 %vm77_vm0, %v1107_v4  ;;  %v1095_v15 = vmul.f32 %v5829_v39, %v1081_v5 }
 0x5cf   :  { %4764 = vrcp.f32 %v1067_v48  ;;  %v1059_v8 = vsel %vm1058_vm15, %v1006_v29, %v1057_v7  ;;  %4204 = vmatmul.mubr.msk.f32.vlgmr.msra.gmra.mrb[16].mxu1 %vm77_vm0, %v1108_v9  ;;  %v1110_v26 = vadd.f32 %v3738_v58, %v1096_v11 }
 0x5d0   :  { %v1062_v10 = vsel %vm1060_vm1, %v1061_v13, %v1059_v8  ;;  %v1052_v28 = vsel %vm1051_vm3, %v1005_v44, %v1050_v61  ;;  %v1109_v19 = vadd.f32 %v3738_v58, %v1095_v15 }
 0x5d1   :  { %v1070_v22 = vadd.f32 1e-05, %v1062_v10  ;;  %v1055_v24 = vsel %vm1053_vm4, %v1054_v18, %v1052_v28 }
 0x5d2   :  { %v1069_v27 = vadd.f32 1e-05, %v1055_v24  ;;  %4206 = vmatprep.mubr.msk.f32.mxu1 %vm77_vm0, %v1109_v19 }
 0x5d3   :  { %4766 = vrcp.f32 %v1070_v22  ;;  %4207 = vmatmul.mubr.msk.f32.gmra.mrb[18].mxu1 %vm77_vm0, %v1110_v26 }
 0x5d4   :  { %4768 = vrcp.f32 %v1069_v27 }
 0x5d6   :  { %v4763_v38 = vpop.eup %4762 }
 0x5d7   :  { %v1084_v30 = vmul.f32 %v4763_v38, %v5789_v1 }
 0x5d9   :  { %v4765_v31 = vpop.eup %4764  ;;  %v1098_v14 = vmul.f32 %v5829_v39, %v1084_v30 }
 0x5da   :  { %v1083_v32 = vmul.f32 %v4765_v31, %v5792_v25 }
 0x5db   :  { %v1112_v43 = vadd.f32 %v3738_v58, %v1098_v14 }
 0x5dc   :  { %v1097_v36 = vmul.f32 %v5829_v39, %v1083_v32 }
 0x5dd   :  { %v4767_v40 = vpop.eup %4766 }
 0x5de   :  { %v4769_v29 = vpop.eup %4768  ;;  %v1111_v44 = vadd.f32 %v3738_v58, %v1097_v36  ;;  %v1086_v37 = vmul.f32 %v4767_v40, %v5799_v35  ;;  %v1551_v35 = vld [vmem:[%s7217_s10] sm:$0xff] }
 0x5df   :  { %v1085_v34 = vmul.f32 %v4769_v29, %v5803_v12  ;;  %v1552_v12 = vld [vmem:[%s7217_s10 + $0x8] sm:$0xff] }
 0x5e0   :  { %4209 = vmatprep.mubr.msk.f32.mxu1 %vm77_vm0, %v1111_v44  ;;  %v1100_v46 = vmul.f32 %v5829_v39, %v1086_v37  ;;  %v4511_v51 = vpack.c.bf16 %v1552_v12, %v1551_v35 }
 0x5e1   :  { %4210 = vmatmul.mubr.msk.f32.gmra.mrb[20].mxu1 %vm77_vm0, %v1112_v43  ;;  %v1099_v1 = vmul.f32 %v5829_v39, %v1085_v34  ;;  %v1553_v39 = vld [vmem:[%s7217_s10 + $0x10] sm:$0xff] }
 0x5e2   :  { %v1114_v47 = vadd.f32 %v3738_v58, %v1100_v46  ;;  %4512 = vmatprep.subr.bf16.mxu1 %v4511_v51  ;;  %v4515_v53 = vpack.c.bf16 %v1554_v52, %v1553_v39 }
 0x5e3   :  { %v1113_v25 = vadd.f32 %v3738_v58, %v1099_v1  ;;  %4514 = vmatpush3.bf16.msra.mxu1 %v4511_v51  ;;  %v1557_v58 = vld [vmem:[%s7217_s10 + $0x30] sm:$0xff] }
 0x5e4   :  { %4516 = vmatprep.subr.bf16.mxu1 %v4515_v53  ;;  %v4523_v17 = vpack.c.bf16 %v1558_v59, %v1557_v58 }
 0x5e5   :  { %4212 = vmatprep.mubr.msk.f32.mxu1 %vm77_vm0, %v1113_v25 }
 0x5e6   :  { %4213 = vmatmul.mubr.msk.f32.gmra.mrb[22].mxu1 %vm77_vm0, %v1114_v47 }
 0x5e7   :  { %4518 = vmatpush3.bf16.msra.mxu1 %v4515_v53 }
 0x5e8   :  { %4520 = vmatprep.subr.bf16.mxu1 %v4519_v57 }
 0x5eb   :  { %4522 = vmatpush3.bf16.msra.mxu1 %v4519_v57 }
 0x5ec   :  { %4524 = vmatprep.subr.bf16.mxu1 %v4523_v17 }
 0x5ef   :  { %4526 = vmatpush3.bf16.msra.mxu1 %v4523_v17 }
 0x6a2   :  { %v4205_v62 = vpop.f32.mrb[16].mxu1 }
 0x6a3   :  { %v5886_v41 = vadd.f32 %v4205_v62, %v3739_v23  ;;  %v1216_v42 = vpop.f32.mrb[17].mxu1 }
 0x6a4   :  { %v5888_v54 = vadd.f32 %v3739_v23, %v1216_v42 }
 0x6a5   :  { %v5891_v0 = vmul.f32 0.70710677, %v5886_v41 }
 0x6a6   :  { %v5894_v63 = vmul.f32 0.70710677, %v5888_v54  ;;  %v4208_v2 = vpop.f32.mrb[18].mxu1 }
 0x6a7   :  { %v5897_v4 = vand.u32 2147483647, %v5891_v0  ;;  %v5899_v5 = vadd.f32 %v4208_v2, %v3739_v23  ;;  %v1226_v49 = vpop.f32.mrb[19].mxu1  ;;  %vm1504_vm5 = vcmp.ge.f32.partialorder %v5891_v0, 0.0 }
 0x6a8   :  { %v5902_v48 = vand.u32 2147483647, %v5894_v63  ;;  %v5904_v7 = vadd.f32 %v3739_v23, %v1226_v49  ;;  %vm1503_vm6 = vcmp.ge.f32.partialorder %v5894_v63, 0.0 }
 0x6a9   :  { %v1280_v9 = vmul.f32 0.5, %v5897_v4  ;;  %v5908_v11 = vmul.f32 0.70710677, %v5899_v5  ;;  %v1258_v63 = vmul.f32 0.5, %v5899_v5 }
 0x6aa   :  { %v1279_v13 = vmul.f32 0.5, %v5902_v48  ;;  %v5912_v61 = vmul.f32 0.70710677, %v5904_v7 }
 0x6ab   :  { %v1288_v15 = vadd.f32 1.0, %v1280_v9  ;;  %v5915_v8 = vand.u32 2147483647, %v5908_v11  ;;  %vm1506_vm7 = vcmp.ge.f32.partialorder %v5908_v11, 0.0 }
 0x6ac   :  { %v1287_v18 = vadd.f32 1.0, %v1279_v13  ;;  %v5918_v10 = vand.u32 2147483647, %v5912_v61  ;;  %vm1505_vm9 = vcmp.ge.f32.partialorder %v5912_v61, 0.0 }
 0x6ad   :  { %4770 = vrcp.f32 %v1288_v15  ;;  %v1282_v28 = vmul.f32 0.5, %v5915_v8 }
 0x6ae   :  { %4772 = vrcp.f32 %v1287_v18  ;;  %v1281_v19 = vmul.f32 0.5, %v5918_v10 }
 0x6af   :  { %v1290_v22 = vadd.f32 1.0, %v1282_v28 }
 0x6b0   :  { %v1289_v24 = vadd.f32 1.0, %v1281_v19 }
 0x6b1   :  { %4774 = vrcp.f32 %v1290_v22 }
 0x6b2   :  { %4776 = vrcp.f32 %v1289_v24 }
 0x6b4   :  { %v4211_v26 = vpop.f32.mrb[20].mxu1 }
 0x6b5   :  { %v5922_v27 = vadd.f32 %v4211_v26, %v3739_v23  ;;  %v1236_v38 = vpop.f32.mrb[21].mxu1 }
 0x6b6   :  { %v5924_v30 = vadd.f32 %v3739_v23, %v1236_v38 }
 0x6b7   :  { %v5926_v31 = vpop.eup %4770  ;;  %v5929_v32 = vmul.f32 0.70710677, %v5922_v27 }
 0x6b8   :  { %v5931_v14 = vpop.eup %4772  ;;  %v1312_v36 = vmul.f32 0.17087276, %v5926_v31  ;;  %v5935_v40 = vmul.f32 0.70710677, %v5924_v30 }
 0x6b9   :  { %v1311_v29 = vmul.f32 0.17087276, %v5931_v14  ;;  %v5939_v44 = vand.u32 2147483647, %v5929_v32  ;;  %v4214_v37 = vpop.f32.mrb[22].mxu1  ;;  %vm1508_vm10 = vcmp.ge.f32.partialorder %v5929_v32, 0.0 }
 0x6ba   :  { %v1320_v43 = vadd.f32 -0.82215226, %v1312_v36  ;;  %v5942_v34 = vand.u32 2147483647, %v5935_v40  ;;  %v1246_v46 = vpop.f32.mrb[23].mxu1  ;;  %v5952_v52 = vadd.f32 %v4214_v37, %v3739_v23  ;;  %vm1507_vm11 = vcmp.ge.f32.partialorder %v5935_v40, 0.0 }
 0x6bb   :  { %v5944_v1 = vpop.eup %4774  ;;  %v1319_v25 = vadd.f32 -0.82215226, %v1311_v29  ;;  %v1284_v47 = vmul.f32 0.5, %v5939_v44  ;;  %v5956_v57 = vadd.f32 %v3739_v23, %v1246_v46 }
 0x6bc   :  { %v5947_v35 = vpop.eup %4776  ;;  %v1328_v12 = vmul.f32 %v5926_v31, %v1320_v43  ;;  %v1314_v51 = vmul.f32 0.17087276, %v5944_v1  ;;  %v1283_v39 = vmul.f32 0.5, %v5942_v34  ;;  %v5961_v9 = vmul.f32 0.70710677, %v5952_v52 }
 0x6bd   :  { %v1327_v53 = vmul.f32 %v5931_v14, %v1319_v25  ;;  %v1313_v55 = vmul.f32 0.17087276, %v5947_v35  ;;  %v1292_v56 = vadd.f32 1.0, %v1284_v47  ;;  %v5966_v23 = vmul.f32 0.70710677, %v5956_v57 }
 0x6be   :  { %v1336_v58 = vadd.f32 1.4885159, %v1328_v12  ;;  %v1322_v59 = vadd.f32 -0.82215226, %v1314_v51  ;;  %v1291_v17 = vadd.f32 1.0, %v1283_v39  ;;  %vm1510_vm12 = vcmp.ge.f32.partialorder %v5961_v9, 0.0 }
 0x6bf   :  { %v1335_v62 = vadd.f32 1.4885159, %v1327_v53  ;;  %v1321_v42 = vadd.f32 -0.82215226, %v1313_v55  ;;  %4778 = vrcp.f32 %v1292_v56  ;;  %v5969_v19 = vand.u32 2147483647, %v5961_v9 }
 0x6c0   :  { %v1344_v2 = vmul.f32 %v5926_v31, %v1336_v58  ;;  %v1330_v49 = vmul.f32 %v5944_v1, %v1322_v59  ;;  %4780 = vrcp.f32 %v1291_v17  ;;  %v5977_v43 = vand.u32 2147483647, %v5966_v23 }
 0x6c1   :  { %v1343_v13 = vmul.f32 %v5931_v14, %v1335_v62  ;;  %v1329_v15 = vmul.f32 %v5947_v35, %v1321_v42  ;;  %v1286_v36 = vmul.f32 0.5, %v5969_v19  ;;  %v1456_v58 = vsub.f32 0.0, %v5897_v4 }
 0x6c2   :  { %v1352_v18 = vadd.f32 -1.135204, %v1344_v2  ;;  %v1338_v28 = vadd.f32 1.4885159, %v1330_v49  ;;  %v1285_v39 = vmul.f32 0.5, %v5977_v43  ;;  %v1461_v61 = vsub.f32 0.0, %v5977_v43 }
 0x6c3   :  { %v1351_v22 = vadd.f32 -1.135204, %v1343_v13  ;;  %v1337_v24 = vadd.f32 1.4885159, %v1329_v15  ;;  %v1294_v47 = vadd.f32 1.0, %v1286_v36  ;;  %v1455_v36 = vsub.f32 0.0, %v5902_v48 }
 0x6c4   :  { %v1360_v26 = vmul.f32 %v5926_v31, %v1352_v18  ;;  %v1346_v38 = vmul.f32 %v5944_v1, %v1338_v28  ;;  %v1293_v62 = vadd.f32 1.0, %v1285_v39  ;;  %vm1509_vm13 = vcmp.ge.f32.partialorder %v5966_v23, 0.0 }
 0x6c5   :  { %v1359_v29 = vmul.f32 %v5931_v14, %v1351_v22  ;;  %v1345_v37 = vmul.f32 %v5947_v35, %v1337_v24  ;;  %4782 = vrcp.f32 %v1294_v47  ;;  %v1458_v47 = vsub.f32 0.0, %v5915_v8 }
 0x6c6   :  { %v1368_v46 = vadd.f32 0.27886808, %v1360_v26  ;;  %v1354_v25 = vadd.f32 -1.135204, %v1346_v38  ;;  %4784 = vrcp.f32 %v1293_v62  ;;  %v1457_v62 = vsub.f32 0.0, %v5918_v10 }
 0x6c7   :  { %v1367_v12 = vadd.f32 0.27886808, %v1359_v29  ;;  %v1353_v51 = vadd.f32 -1.135204, %v1345_v37 }
 0x6c8   :  { %v1376_v53 = vmul.f32 %v5926_v31, %v1368_v46  ;;  %v1362_v55 = vmul.f32 %v5944_v1, %v1354_v25 }
 0x6c9   :  { %v5982_v56 = vpop.eup %4778  ;;  %v1375_v59 = vmul.f32 %v5931_v14, %v1367_v12  ;;  %v1361_v17 = vmul.f32 %v5947_v35, %v1353_v51  ;;  %v1464_v51 = vmul.f32 %v1456_v58, %v5897_v4 }
 0x6ca   :  { %v5987_v42 = vpop.eup %4780  ;;  %v1384_v2 = vadd.f32 -0.18628806, %v1376_v53  ;;  %v1370_v49 = vadd.f32 0.27886808, %v1362_v55  ;;  %v1316_v13 = vmul.f32 0.17087276, %v5982_v56 }
 0x6cb   :  { %v1383_v15 = vadd.f32 -0.18628806, %v1375_v59  ;;  %v1369_v18 = vadd.f32 0.27886808, %v1361_v17  ;;  %v1315_v28 = vmul.f32 0.17087276, %v5987_v42 }
 0x6cc   :  { %v1392_v22 = vmul.f32 %v5926_v31, %v1384_v2  ;;  %v1378_v24 = vmul.f32 %v5944_v1, %v1370_v49  ;;  %v1324_v26 = vadd.f32 -0.82215226, %v1316_v13  ;;  %v1463_v13 = vmul.f32 %v1455_v36, %v5902_v48 }
 0x6cd   :  { %v1391_v38 = vmul.f32 %v5931_v14, %v1383_v15  ;;  %v1377_v29 = vmul.f32 %v5947_v35, %v1369_v18  ;;  %v1323_v37 = vadd.f32 -0.82215226, %v1315_v28  ;;  %v1465_v36 = vmul.f32 %v1457_v62, %v5918_v10 }
 0x6ce   :  { %v1400_v46 = vadd.f32 0.09678418, %v1392_v22  ;;  %v1386_v25 = vadd.f32 -0.18628806, %v1378_v24  ;;  %v1332_v12 = vmul.f32 %v5982_v56, %v1324_v26  ;;  %v1466_v22 = vmul.f32 %v1458_v47, %v5915_v8 }
 0x6cf   :  { %v1399_v39 = vadd.f32 0.09678418, %v1391_v38  ;;  %v1385_v53 = vadd.f32 -0.18628806, %v1377_v29  ;;  %v1331_v55 = vmul.f32 %v5987_v42, %v1323_v37  ;;  %v6006_v28 = vpop.eup %4782 }
 0x6d0   :  { %v1408_v59 = vmul.f32 %v5926_v31, %v1400_v46  ;;  %v1394_v17 = vmul.f32 %v5944_v1, %v1386_v25  ;;  %v1340_v2 = vadd.f32 1.4885159, %v1332_v12  ;;  %v1318_v37 = vmul.f32 0.17087276, %v6006_v28  ;;  %v6015_v12 = vpop.eup %4784 }
 0x6d1   :  { %v1407_v49 = vmul.f32 %v5931_v14, %v1399_v39  ;;  %v1393_v15 = vmul.f32 %v5947_v35, %v1385_v53  ;;  %v1339_v18 = vadd.f32 1.4885159, %v1331_v55 }
 0x6d2   :  { %v1416_v4 = vadd.f32 0.37409195, %v1408_v59  ;;  %v1402_v58 = vadd.f32 0.09678418, %v1394_v17  ;;  %v1348_v24 = vmul.f32 %v5982_v56, %v1340_v2  ;;  %v1326_v53 = vadd.f32 -0.82215226, %v1318_v37 }
 0x6d3   :  { %v1415_v26 = vadd.f32 0.37409195, %v1407_v49  ;;  %v1401_v38 = vadd.f32 0.09678418, %v1393_v15  ;;  %v1347_v29 = vmul.f32 %v5987_v42, %v1339_v18  ;;  %v1317_v2 = vmul.f32 0.17087276, %v6015_v12 }
 0x6d4   :  { %v1424_v46 = vmul.f32 %v5926_v31, %v1416_v4  ;;  %v1410_v48 = vmul.f32 %v5944_v1, %v1402_v58  ;;  %v1356_v25 = vadd.f32 -1.135204, %v1348_v24  ;;  %v1334_v10 = vmul.f32 %v6006_v28, %v1326_v53 }
 0x6d5   :  { %v1423_v39 = vmul.f32 %v5931_v14, %v1415_v26  ;;  %v1409_v8 = vmul.f32 %v5947_v35, %v1401_v38  ;;  %v1355_v47 = vadd.f32 -1.135204, %v1347_v29  ;;  %v1325_v24 = vadd.f32 -0.82215226, %v1317_v2 }
 0x6d6   :  { %v1432_v55 = vadd.f32 1.0000237, %v1424_v46  ;;  %v1418_v59 = vadd.f32 0.37409195, %v1410_v48  ;;  %v1364_v17 = vmul.f32 %v5982_v56, %v1356_v25  ;;  %v1342_v37 = vadd.f32 1.4885159, %v1334_v10 }
 0x6d7   :  { %v1431_v49 = vadd.f32 1.0000237, %v1423_v39  ;;  %v1417_v15 = vadd.f32 0.37409195, %v1409_v8  ;;  %v1363_v18 = vmul.f32 %v5987_v42, %v1355_v47  ;;  %v1333_v39 = vmul.f32 %v6015_v12, %v1325_v24 }
 0x6d8   :  { %v1440_v62 = vmul.f32 %v5926_v31, %v1432_v55  ;;  %v1426_v4 = vmul.f32 %v5944_v1, %v1418_v59  ;;  %v1372_v58 = vadd.f32 0.27886808, %v1364_v17  ;;  %v1350_v55 = vmul.f32 %v6006_v28, %v1342_v37 }
 0x6d9   :  { %v1439_v26 = vmul.f32 %v5931_v14, %v1431_v49  ;;  %v1425_v38 = vmul.f32 %v5947_v35, %v1417_v15  ;;  %v1371_v29 = vadd.f32 0.27886808, %v1363_v18  ;;  %v1341_v49 = vadd.f32 1.4885159, %v1333_v39 }
 0x6da   :  { %v1448_v46 = vadd.f32 -1.2655122, %v1440_v62  ;;  %v1434_v48 = vadd.f32 1.0000237, %v1426_v4  ;;  %v1380_v25 = vmul.f32 %v5982_v56, %v1372_v58  ;;  %v1358_v62 = vadd.f32 -1.135204, %v1350_v55 }
 0x6db   :  { %v1447_v8 = vadd.f32 -1.2655122, %v1439_v26  ;;  %v1433_v47 = vadd.f32 1.0000237, %v1425_v38  ;;  %v1379_v53 = vmul.f32 %v5987_v42, %v1371_v29  ;;  %v1349_v26 = vmul.f32 %v6015_v12, %v1341_v49 }
 0x6dc   :  { %v1472_v59 = vadd.f32 %v1464_v51, %v1448_v46  ;;  %v1442_v17 = vmul.f32 %v5944_v1, %v1434_v48  ;;  %v1388_v2 = vadd.f32 -0.18628806, %v1380_v25  ;;  %v1366_v51 = vmul.f32 %v6006_v28, %v1358_v62 }
 0x6dd   :  { %v1471_v15 = vadd.f32 %v1463_v13, %v1447_v8  ;;  %v1441_v18 = vmul.f32 %v5947_v35, %v1433_v47  ;;  %v1387_v10 = vadd.f32 -0.18628806, %v1379_v53  ;;  %v1357_v13 = vadd.f32 -1.135204, %v1349_v26 }
 0x6de   :  { %v1481_v4 = vmul.f32 1.442695, %v1472_v59  ;;  %v1450_v58 = vadd.f32 -1.2655122, %v1442_v17  ;;  %v1396_v24 = vmul.f32 %v5982_v56, %v1388_v2  ;;  %v1374_v8 = vadd.f32 0.27886808, %v1366_v51 }
 0x6df   :  { %v1479_v38 = vmul.f32 1.442695, %v1471_v15  ;;  %v1449_v29 = vadd.f32 -1.2655122, %v1441_v18  ;;  %v1395_v37 = vmul.f32 %v5987_v42, %v1387_v10  ;;  %v1365_v55 = vmul.f32 %v6015_v12, %v1357_v13 }
 0x6e0   :  { %4786 = vpow2.f32 %v1481_v4  ;;  %v1474_v46 = vadd.f32 %v1466_v22, %v1450_v58  ;;  %v1404_v48 = vadd.f32 0.09678418, %v1396_v24  ;;  %v1382_v2 = vmul.f32 %v6006_v28, %v1374_v8 }
 0x6e1   :  { %4788 = vpow2.f32 %v1479_v38  ;;  %v1473_v25 = vadd.f32 %v1465_v36, %v1449_v29  ;;  %v1403_v39 = vadd.f32 0.09678418, %v1395_v37  ;;  %v1373_v15 = vadd.f32 0.27886808, %v1365_v55 }
 0x6e2   :  { %v1485_v47 = vmul.f32 1.442695, %v1474_v46  ;;  %v1412_v53 = vmul.f32 %v5982_v56, %v1404_v48  ;;  %v1390_v18 = vadd.f32 -0.18628806, %v1382_v2  ;;  %v1460_v10 = vsub.f32 0.0, %v5939_v44 }
 0x6e3   :  { %v1483_v59 = vmul.f32 1.442695, %v1473_v25  ;;  %v1411_v17 = vmul.f32 %v5987_v42, %v1403_v39  ;;  %v1381_v62 = vmul.f32 %v6015_v12, %v1373_v15  ;;  %v1459_v58 = vsub.f32 0.0, %v5942_v34 }
 0x6e4   :  { %4790 = vpow2.f32 %v1485_v47  ;;  %v1420_v49 = vadd.f32 0.37409195, %v1412_v53  ;;  %v1398_v24 = vmul.f32 %v6006_v28, %v1390_v18  ;;  %v1256_v26 = vmul.f32 0.5, %v5886_v41 }
 0x6e5   :  { %4792 = vpow2.f32 %v1483_v59  ;;  %v1419_v22 = vadd.f32 0.37409195, %v1411_v17  ;;  %v1255_v38 = vmul.f32 0.5, %v5888_v54  ;;  %v1389_v37 = vadd.f32 -0.18628806, %v1381_v62 }
 0x6e6   :  { %v1428_v36 = vmul.f32 %v5982_v56, %v1420_v49  ;;  %v1406_v46 = vadd.f32 0.09678418, %v1398_v24  ;;  %v1468_v25 = vmul.f32 %v1460_v10, %v5939_v44  ;;  %v1467_v47 = vmul.f32 %v1459_v58, %v5942_v34 }
 0x6e7   :  { %v1427_v4 = vmul.f32 %v5987_v42, %v1419_v22  ;;  %v1397_v39 = vmul.f32 %v6015_v12, %v1389_v37  ;;  %v1462_v17 = vsub.f32 0.0, %v5969_v19 }
 0x6e8   :  { %v1436_v29 = vadd.f32 1.0000237, %v1428_v36  ;;  %v1414_v53 = vmul.f32 %v6006_v28, %v1406_v46 }
 0x6e9   :  { %v1435_v51 = vadd.f32 1.0000237, %v1427_v4  ;;  %v1405_v44 = vadd.f32 0.09678418, %v1397_v39  ;;  %v1470_v5 = vmul.f32 %v1462_v17, %v5969_v19 }
 0x6ea   :  { %v4787_v48 = vpop.eup %4786  ;;  %v1444_v13 = vmul.f32 %v5982_v56, %v1436_v29  ;;  %v1422_v22 = vadd.f32 0.37409195, %v1414_v53 }
 0x6eb   :  { %v4789_v41 = vpop.eup %4788  ;;  %v1496_v54 = vmul.f32 %v4787_v48, %v5926_v31  ;;  %v1443_v8 = vmul.f32 %v5987_v42, %v1435_v51  ;;  %v1413_v62 = vmul.f32 %v6015_v12, %v1405_v44 }
 0x6ec   :  { %v1495_v55 = vmul.f32 %v4789_v41, %v5931_v14  ;;  %v1452_v59 = vadd.f32 -1.2655122, %v1444_v13  ;;  %v1430_v24 = vmul.f32 %v6006_v28, %v1422_v22 }
 0x6ed   :  { %v1512_v2 = vsub.f32 1.0, %v1496_v54  ;;  %v3749_v49 = vadd.f32 -1.0, %v1496_v54  ;;  %v1451_v15 = vadd.f32 -1.2655122, %v1443_v8 }
 0x6ee   :  { %v4791_v18 = vpop.eup %4790  ;;  %v1511_v31 = vsub.f32 1.0, %v1495_v55  ;;  %v3748_v36 = vadd.f32 -1.0, %v1495_v55  ;;  %v1476_v10 = vadd.f32 %v1468_v25, %v1452_v59  ;;  %v1421_v55 = vadd.f32 0.37409195, %v1413_v62 }
 0x6ef   :  { %v4793_v4 = vpop.eup %4792  ;;  %v1528_v34 = vsel %vm1504_vm5, %v1512_v2, %v3749_v49  ;;  %v1498_v14 = vmul.f32 %v4791_v18, %v5944_v1  ;;  %v1475_v58 = vadd.f32 %v1467_v47, %v1451_v15  ;;  %v1438_v47 = vadd.f32 1.0000237, %v1430_v24 }
 0x6f0   :  { %v1536_v29 = vadd.f32 1.0, %v1528_v34  ;;  %v1527_v37 = vsel %vm1503_vm6, %v1511_v31, %v3748_v36  ;;  %v1497_v51 = vmul.f32 %v4793_v4, %v5947_v35  ;;  %v1489_v46 = vmul.f32 1.442695, %v1476_v10 }
 0x6f1   :  { %v1535_v48 = vadd.f32 1.0, %v1527_v37  ;;  %v1514_v13 = vsub.f32 1.0, %v1498_v14  ;;  %v3751_v25 = vadd.f32 -1.0, %v1498_v14  ;;  %v1487_v39 = vmul.f32 1.442695, %v1475_v58 }
 0x6f2   :  { %v1544_v41 = vmul.f32 %v1536_v29, %v1256_v26  ;;  %v1513_v54 = vsub.f32 1.0, %v1497_v51  ;;  %v3750_v0 = vadd.f32 -1.0, %v1497_v51  ;;  %4794 = vpow2.f32 %v1489_v46 }
 0x6f3   :  { %v1543_v8 = vmul.f32 %v1535_v48, %v1255_v38  ;;  %v1530_v1 = vsel %vm1506_vm7, %v1514_v13, %v3751_v25  ;;  %4796 = vpow2.f32 %v1487_v39  ;;  %v1257_v59 = vmul.f32 0.5, %v5904_v7 }
 0x6f4   :  { %v1538_v53 = vadd.f32 1.0, %v1530_v1  ;;  %v1529_v35 = vsel %vm1505_vm9, %v1513_v54, %v3750_v0  ;;  %v1446_v26 = vmul.f32 %v6006_v28, %v1438_v47  ;;  %v1429_v11 = vmul.f32 %v6015_v12, %v1421_v55 }
 0x6f5   :  { %v1537_v44 = vadd.f32 1.0, %v1529_v35  ;;  %4231 = vmatprep.mubr.msk.f32.mxu1 %vm1559_vm8, %v1543_v8  ;;  %v1469_v10 = vmul.f32 %v1461_v61, %v5977_v43  ;;  %v1260_v51 = vmul.f32 0.5, %v5922_v27  ;;  %v1262_v54 = vmul.f32 0.5, %v5952_v52  ;;  %v3764_v52 = vld [vmem:[%s7218_s11] ss:$0 sm:$0xff] }
 0x6f6   :  { %v1546_v38 = vmul.f32 %v1538_v53, %v1258_v63  ;;  %4232 = vmatmul.mubr.msk.f32.vlgmr.msra.gmra.mrb[24].mxu1 %vm1559_vm8, %v1544_v41  ;;  %v1454_v49 = vadd.f32 -1.2655122, %v1446_v26  ;;  %v1437_v15 = vadd.f32 1.0000237, %v1429_v11 }
 0x6f7   :  { %v1545_v2 = vmul.f32 %v1537_v44, %v1257_v59 }
 0x6f8   :  { %v1478_v22 = vadd.f32 %v1470_v5, %v1454_v49  ;;  %v1445_v7 = vmul.f32 %v6015_v12, %v1437_v15 }
 0x6f9   :  { %4234 = vmatprep.mubr.msk.f32.mxu1 %vm1559_vm8, %v1545_v2 }
 0x6fa   :  { %4235 = vmatmul.mubr.msk.f32.gmra.mrb[26].mxu1 %vm1559_vm8, %v1546_v38  ;;  %v1493_v18 = vmul.f32 1.442695, %v1478_v22  ;;  %v1453_v36 = vadd.f32 -1.2655122, %v1445_v7 }
 0x6fc   :  { %v4795_v31 = vpop.eup %4794  ;;  %4798 = vpow2.f32 %v1493_v18  ;;  %v1477_v17 = vadd.f32 %v1469_v10, %v1453_v36 }
 0x6fd   :  { %v4797_v62 = vpop.eup %4796  ;;  %v1500_v4 = vmul.f32 %v4795_v31, %v5982_v56  ;;  %v1259_v56 = vmul.f32 0.5, %v5924_v30 }
 0x6fe   :  { %v1499_v19 = vmul.f32 %v4797_v62, %v5987_v42  ;;  %v1491_v29 = vmul.f32 1.442695, %v1477_v17 }
 0x6ff   :  { %v1516_v34 = vsub.f32 1.0, %v1500_v4  ;;  %v3753_v14 = vadd.f32 -1.0, %v1500_v4 }
 0x700   :  { %v1515_v58 = vsub.f32 1.0, %v1499_v19  ;;  %v3752_v24 = vadd.f32 -1.0, %v1499_v19  ;;  %4800 = vpow2.f32 %v1491_v29 }
 0x701   :  { %v1532_v37 = vsel %vm1508_vm10, %v1516_v34, %v3753_v14 }
 0x702   :  { %v1540_v43 = vadd.f32 1.0, %v1532_v37  ;;  %v1531_v46 = vsel %vm1507_vm11, %v1515_v58, %v3752_v24 }
 0x703   :  { %v1539_v48 = vadd.f32 1.0, %v1531_v46 }
 0x704   :  { %v1548_v42 = vmul.f32 %v1540_v43, %v1260_v51 }
 0x705   :  { %v1547_v13 = vmul.f32 %v1539_v48, %v1259_v56 }
 0x706   :  { %v4799_v25 = vpop.eup %4798 }
 0x707   :  { %4237 = vmatprep.mubr.msk.f32.mxu1 %vm1559_vm8, %v1547_v13  ;;  %v1502_v32 = vmul.f32 %v4799_v25, %v6006_v28  ;;  %v1261_v28 = vmul.f32 0.5, %v5956_v57 }
 0x708   :  { %4238 = vmatmul.mubr.msk.f32.gmra.mrb[28].mxu1 %vm1559_vm8, %v1548_v42 }
 0x709   :  { %v1518_v39 = vsub.f32 1.0, %v1502_v32  ;;  %v3755_v41 = vadd.f32 -1.0, %v1502_v32 }
 0x70a   :  { %v4801_v27 = vpop.eup %4800 }
 0x70b   :  { %v1534_v40 = vsel %vm1510_vm12, %v1518_v39, %v3755_v41  ;;  %v1501_v30 = vmul.f32 %v4801_v27, %v6015_v12 }
 0x70c   :  { %v1542_v0 = vadd.f32 1.0, %v1534_v40 }
 0x70d   :  { %v1517_v1 = vsub.f32 1.0, %v1501_v30  ;;  %v3754_v47 = vadd.f32 -1.0, %v1501_v30 }
 0x70e   :  { %v1550_v8 = vmul.f32 %v1542_v0, %v1262_v54 }
 0x70f   :  { %v1533_v63 = vsel %vm1509_vm13, %v1517_v1, %v3754_v47 }
 0x710   :  { %v1541_v53 = vadd.f32 1.0, %v1533_v63 }
 0x712   :  { %v1549_v35 = vmul.f32 %v1541_v53, %v1261_v28 }
 0x714   :  { %4240 = vmatprep.mubr.msk.f32.mxu1 %vm1559_vm8, %v1549_v35 }
 0x715   :  { %4241 = vmatmul.mubr.msk.f32.gmra.mrb[30].mxu1 %vm1559_vm8, %v1550_v8 }
 0x7c9   :  { %v4233_v9 = vpop.f32.mrb[24].mxu1 }
 0x7ca   :  { %v1690_v12 = vadd.f32 %v4233_v9, %v5699_v3  ;;  %v1650_v55 = vpop.f32.mrb[25].mxu1 }
 0x7cb   :  { %v1689_v59 = vadd.f32 %v1650_v55, %v5706_v6 }
 0x7cc   :  { %v6107_v23 = vadd.f32 %v3764_v52, %v1690_v12 }
 0x7cd   :  { %v6109_v44 = vadd.f32 %v3764_v52, %v1689_v59  ;;  %v4236_v57 = vpop.f32.mrb[26].mxu1 }
 0x7ce   :  { %v1692_v26 = vadd.f32 %v4236_v57, %v5717_v21  ;;  %v1660_v38 = vpop.f32.mrb[27].mxu1  ;;  %v1719_v11 = vsel %vm77_vm0, %v6107_v23, 0.0 }
 0x7cf   :  { %v1691_v2 = vadd.f32 %v1660_v38, %v5722_v16  ;;  %1720 = vadd.xlane.f32.xlu1 %v1719_v11  ;;  %v1716_v3 = vsel %vm77_vm0, %v6109_v44, 0.0 }
 0x7d0   :  { %v6117_v49 = vadd.f32 %v3764_v52, %v1692_v26  ;;  %1717 = vadd.xlane.f32.xlu0 %v1716_v3 }
 0x7d1   :  { %v6119_v6 = vadd.f32 %v3764_v52, %v1691_v2 }
 0x7d2   :  { %v1725_v5 = vsel %vm77_vm0, %v6117_v49, 0.0 }
 0x7d3   :  { %1726 = vadd.xlane.f32.xlu1 %v1725_v5  ;;  %v1722_v21 = vsel %vm77_vm0, %v6119_v6, 0.0 }
 0x7d4   :  { %1723 = vadd.xlane.f32.xlu0 %v1722_v21 }
 0x7db   :  { %v4239_v15 = vpop.f32.mrb[28].mxu1 }
 0x7dc   :  { %v1694_v16 = vadd.f32 %v4239_v15, %v5735_v45  ;;  %v1670_v61 = vpop.f32.mrb[29].mxu1 }
 0x7dd   :  { %v1693_v22 = vadd.f32 %v1670_v61, %v5742_v50 }
 0x7de   :  { %v6127_v7 = vadd.f32 %v3764_v52, %v1694_v16 }
 0x7df   :  { %v6129_v18 = vadd.f32 %v3764_v52, %v1693_v22 }
 0x7e0   :  { %v1731_v31 = vsel %vm77_vm0, %v6127_v7, 0.0 }
 0x7e1   :  { %1732 = vadd.xlane.f32.xlu1 %v1731_v31  ;;  %v1728_v36 = vsel %vm77_vm0, %v6129_v18, 0.0 }
 0x7e2   :  { %1729 = vadd.xlane.f32.xlu0 %v1728_v36 }
 0x7e8   :  { %v4242_v10 = vpop.f32.mrb[30].mxu1 }
 0x7e9   :  { %v1696_v62 = vadd.f32 %v4242_v10, %v5753_v20  ;;  %v1680_v4 = vpop.f32.mrb[31].mxu1 }
 0x7ea   :  { %v1695_v45 = vadd.f32 %v1680_v4, %v5758_v60 }
 0x7eb   :  { %v6137_v19 = vadd.f32 %v3764_v52, %v1696_v62 }
 0x7ec   :  { %v6139_v50 = vadd.f32 %v3764_v52, %v1695_v45 }
 0x7ed   :  { %v1737_v17 = vsel %vm77_vm0, %v6137_v19, 0.0 }
 0x7ee   :  { %1738 = vadd.xlane.f32.xlu1 %v1737_v17  ;;  %v1734_v34 = vsel %vm77_vm0, %v6139_v50, 0.0 }
 0x7ef   :  { %1735 = vadd.xlane.f32.xlu0 %v1734_v34 }
 0x85c   :  { %v1721_v14 = vpop.xlane.xlu1 %1720 }
 0x85d   :  { %v1741_v58 = vmul.f32 0.03125, %v1721_v14  ;;  %v1718_v24 = vpop.xlane.xlu0 %1717 }
 0x85e   :  { %v1740_v29 = vmul.f32 0.03125, %v1718_v24 }
 0x85f   :  { %v6146_v20 = vsub.f32 %v6107_v23, %v1741_v58 }
 0x860   :  { %v6149_v60 = vsub.f32 %v6109_v44, %v1740_v29  ;;  %v1727_v37 = vpop.xlane.xlu1 %1726 }
 0x861   :  { %v1743_v51 = vmul.f32 0.03125, %v1727_v37  ;;  %v1724_v43 = vpop.xlane.xlu0 %1723  ;;  %v1757_v46 = vmul.f32 %v6146_v20, %v6146_v20 }
 0x862   :  { %v1742_v56 = vmul.f32 0.03125, %v1724_v43  ;;  %v1756_v48 = vmul.f32 %v6149_v60, %v6149_v60 }
 0x863   :  { %v6156_v42 = vsub.f32 %v6117_v49, %v1743_v51  ;;  %v1767_v13 = vsel %vm77_vm0, %v1757_v46, 0.0 }
 0x864   :  { %v6160_v25 = vsub.f32 %v6119_v6, %v1742_v56  ;;  %1768 = vadd.xlane.f32.xlu1 %v1767_v13  ;;  %v1764_v32 = vsel %vm77_vm0, %v1756_v48, 0.0 }
 0x865   :  { %1765 = vadd.xlane.f32.xlu0 %v1764_v32  ;;  %v1759_v39 = vmul.f32 %v6156_v42, %v6156_v42 }
 0x866   :  { %v1758_v41 = vmul.f32 %v6160_v25, %v6160_v25 }
 0x867   :  { %v1773_v27 = vsel %vm77_vm0, %v1759_v39, 0.0 }
 0x868   :  { %1774 = vadd.xlane.f32.xlu1 %v1773_v27  ;;  %v1770_v40 = vsel %vm77_vm0, %v1758_v41, 0.0 }
 0x869   :  { %1771 = vadd.xlane.f32.xlu0 %v1770_v40 }
 0x86e   :  { %v1733_v54 = vpop.xlane.xlu1 %1732 }
 0x86f   :  { %v1745_v0 = vmul.f32 0.03125, %v1733_v54  ;;  %v1730_v30 = vpop.xlane.xlu0 %1729 }
 0x870   :  { %v1744_v8 = vmul.f32 0.03125, %v1730_v30 }
 0x871   :  { %v6170_v1 = vsub.f32 %v6127_v7, %v1745_v0 }
 0x872   :  { %v6173_v47 = vsub.f32 %v6129_v18, %v1744_v8 }
 0x873   :  { %v1761_v63 = vmul.f32 %v6170_v1, %v6170_v1 }
 0x874   :  { %v1760_v28 = vmul.f32 %v6173_v47, %v6173_v47 }
 0x875   :  { %v1779_v53 = vsel %vm77_vm0, %v1761_v63, 0.0 }
 0x876   :  { %1780 = vadd.xlane.f32.xlu1 %v1779_v53  ;;  %v1776_v35 = vsel %vm77_vm0, %v1760_v28, 0.0  ;;  %v6197_v53 = vld [vmem:[%s7209_s2 + $0x1] ss:$0 sm:$0xff] }
 0x877   :  { %1777 = vadd.xlane.f32.xlu0 %v1776_v35 }
 0x87b   :  { %v1739_v9 = vpop.xlane.xlu1 %1738 }
 0x87c   :  { %v1747_v52 = vmul.f32 0.03125, %v1739_v9  ;;  %v1736_v12 = vpop.xlane.xlu0 %1735 }
 0x87d   :  { %v1746_v55 = vmul.f32 0.03125, %v1736_v12  ;;  %v6203_v12 = vld [vmem:[%s7210_s3 + $0x1] ss:$0 sm:$0xff] }
 0x87e   :  { %v6182_v59 = vsub.f32 %v6137_v19, %v1747_v52 }
 0x87f   :  { %v6185_v57 = vsub.f32 %v6139_v50, %v1746_v55 }
 0x880   :  { %v1763_v26 = vmul.f32 %v6182_v59, %v6182_v59 }
 0x881   :  { %v1762_v38 = vmul.f32 %v6185_v57, %v6185_v57 }
 0x882   :  { %v1785_v11 = vsel %vm77_vm0, %v1763_v26, 0.0 }
 0x883   :  { %1786 = vadd.xlane.f32.xlu1 %v1785_v11  ;;  %v1782_v2 = vsel %vm77_vm0, %v1762_v38, 0.0 }
 0x884   :  { %1783 = vadd.xlane.f32.xlu0 %v1782_v2 }
 0x8f1   :  { %v1769_v3 = vpop.xlane.xlu1 %1768 }
 0x8f2   :  { %v1789_v5 = vmul.f32 0.03125, %v1769_v3  ;;  %v1766_v21 = vpop.xlane.xlu0 %1765 }
 0x8f3   :  { %v1788_v15 = vmul.f32 0.03125, %v1766_v21 }
 0x8f4   :  { %4802 = vrsqrt.f32 %v1789_v5  ;;  %vm1805_vm14 = vcmp.eq.f32.partialorder %v1789_v5, inf  ;;  %vm1807_vm15 = vcmp.eq.f32.partialorder %v1789_v5, 0.0  ;;  %v1808_v4 = vand.u32 2147483648, %v1789_v5 }
 0x8f5   :  { %4804 = vrsqrt.f32 %v1788_v15  ;;  %v1775_v16 = vpop.xlane.xlu1 %1774  ;;  %vm1798_vm1 = vcmp.eq.f32.partialorder %v1788_v15, inf  ;;  %vm1800_vm3 = vcmp.eq.f32.partialorder %v1788_v15, 0.0  ;;  %v1801_v34 = vand.u32 2147483648, %v1788_v15 }
 0x8f6   :  { %v1791_v61 = vmul.f32 0.03125, %v1775_v16  ;;  %v1772_v22 = vpop.xlane.xlu0 %1771 }
 0x8f7   :  { %v1790_v31 = vmul.f32 0.03125, %v1772_v22 }
 0x8f8   :  { %4806 = vrsqrt.f32 %v1791_v61  ;;  %vm1819_vm4 = vcmp.eq.f32.partialorder %v1791_v61, inf  ;;  %vm1821_vm5 = vcmp.eq.f32.partialorder %v1791_v61, 0.0  ;;  %v1822_v46 = vand.u32 2147483648, %v1791_v61 }
 0x8f9   :  { %4808 = vrsqrt.f32 %v1790_v31  ;;  %vm1812_vm6 = vcmp.eq.f32.partialorder %v1790_v31, inf  ;;  %v1815_v27 = vand.u32 2147483648, %v1790_v31  ;;  %vm1814_vm7 = vcmp.eq.f32.partialorder %v1790_v31, 0.0 }
 0x8fe   :  { %v4803_v36 = vpop.eup %4802 }
 0x8ff   :  { %v4805_v10 = vpop.eup %4804  ;;  %v1804_v62 = vmul.f32 %v4803_v36, %v1789_v5 }
 0x900   :  { %v1797_v45 = vmul.f32 %v4805_v10, %v1788_v15 }
 0x901   :  { %v1806_v17 = vsel %vm1805_vm14, %v1789_v5, %v1804_v62  ;;  %v6221_v62 = vld [vmem:[%s7211_s4 + $0x108] sm:$0xff] }
 0x902   :  { %v4807_v14 = vpop.eup %4806  ;;  %v1809_v58 = vsel %vm1807_vm15, %v1808_v4, %v1806_v17  ;;  %v1799_v24 = vsel %vm1798_vm1, %v1788_v15, %v1797_v45 }
 0x903   :  { %v4809_v29 = vpop.eup %4808  ;;  %v1853_v37 = vadd.f32 1e-05, %v1809_v58  ;;  %v1802_v51 = vsel %vm1800_vm3, %v1801_v34, %v1799_v24  ;;  %v1818_v43 = vmul.f32 %v4807_v14, %v1791_v61  ;;  %v1781_v56 = vpop.xlane.xlu1 %1780  ;;  %v6227_v14 = vld [vmem:[%s7211_s4 + $0x148] sm:$0xff]  ;;  %v6233_v24 = vld [vmem:[%s7211_s4 + $0xc0] sm:$0xff] }
 0x904   :  { %v1852_v48 = vadd.f32 1e-05, %v1802_v51  ;;  %v1811_v13 = vmul.f32 %v4809_v29, %v1790_v31  ;;  %v1793_v32 = vmul.f32 0.03125, %v1781_v56  ;;  %v1778_v39 = vpop.xlane.xlu0 %1777  ;;  %v6243_v29 = vld [vmem:[%s7211_s4 + $0x140] sm:$0xff] }
 0x905   :  { %4810 = vrcp.f32 %v1853_v37  ;;  %v1820_v41 = vsel %vm1819_vm4, %v1791_v61, %v1818_v43  ;;  %v1792_v40 = vmul.f32 0.03125, %v1778_v39  ;;  %v6263_v39 = vld [vmem:[%s7211_s4 + $0x118] sm:$0xff] }
 0x906   :  { %4812 = vrcp.f32 %v1852_v48  ;;  %v1823_v54 = vsel %vm1821_vm5, %v1822_v46, %v1820_v41  ;;  %v1813_v0 = vsel %vm1812_vm6, %v1790_v31, %v1811_v13  ;;  %vm1833_vm9 = vcmp.eq.f32.partialorder %v1793_v32, inf }
 0x907   :  { %v1855_v30 = vadd.f32 1e-05, %v1823_v54  ;;  %v1816_v8 = vsel %vm1814_vm7, %v1815_v27, %v1813_v0  ;;  %4814 = vrsqrt.f32 %v1793_v32  ;;  %vm1835_vm10 = vcmp.eq.f32.partialorder %v1793_v32, 0.0  ;;  %v6282_v54 = vld [vmem:[%s7211_s4 + $0x168] sm:$0xff] }
 0x908   :  { %v1854_v63 = vadd.f32 1e-05, %v1816_v8  ;;  %4816 = vrsqrt.f32 %v1792_v40  ;;  %v1836_v11 = vand.u32 2147483648, %v1793_v32  ;;  %vm1826_vm11 = vcmp.eq.f32.partialorder %v1792_v40, inf  ;;  %v6288_v8 = vld [vmem:[%s7211_s4 + $0x110] sm:$0xff] }
 0x909   :  { %4818 = vrcp.f32 %v1855_v30  ;;  %vm1828_vm12 = vcmp.eq.f32.partialorder %v1792_v40, 0.0 }
 0x90a   :  { %4820 = vrcp.f32 %v1854_v63  ;;  %v6293_v63 = vld [vmem:[%s7211_s4 + $0x150] sm:$0xff] }
 0x90f   :  { %v4811_v28 = vpop.eup %4810 }
 0x910   :  { %v4813_v35 = vpop.eup %4812  ;;  %v1869_v9 = vmul.f32 %v4811_v28, %v6146_v20  ;;  %v1787_v2 = vpop.xlane.xlu1 %1786  ;;  %v1829_v20 = vand.u32 2147483648, %v1792_v40 }
 0x911   :  { %v4815_v52 = vpop.eup %4814  ;;  %v1868_v55 = vmul.f32 %v4813_v35, %v6149_v60  ;;  %v6207_v15 = vmul.f32 0.03125, %v1787_v2  ;;  %v1784_v16 = vpop.xlane.xlu0 %1783 }
 0x912   :  { %v4817_v26 = vpop.eup %4816  ;;  %v1832_v38 = vmul.f32 %v4815_v52, %v1793_v32  ;;  %v1883_v3 = vmul.f32 %v6197_v53, %v1869_v9  ;;  %v6210_v22 = vmul.f32 0.03125, %v1784_v16  ;;  %v6337_v16 = vld [vmem:[%s7211_s4 + $0x170] sm:$0xff] }
 0x913   :  { %v4819_v5 = vpop.eup %4818  ;;  %v1825_v21 = vmul.f32 %v4817_v26, %v1792_v40  ;;  %v1882_v60 = vmul.f32 %v6197_v53, %v1868_v55  ;;  %4822 = vrsqrt.f32 %v6207_v15  ;;  %v6311_v26 = vld [vmem:[%s7211_s4 + $0x120] sm:$0xff]  ;;  %vm1847_vm13 = vcmp.eq.f32.partialorder %v6207_v15, inf }
 0x914   :  { %v1834_v61 = vsel %vm1833_vm9, %v1793_v32, %v1832_v38  ;;  %v6214_v31 = vadd.f32 %v6203_v12, %v1883_v3  ;;  %v1871_v4 = vmul.f32 %v4819_v5, %v6156_v42  ;;  %v4821_v45 = vpop.eup %4820  ;;  %4824 = vrsqrt.f32 %v6210_v22  ;;  %v6238_v42 = vld [vmem:[%s7211_s4 + $0x100] sm:$0xff]  ;;  %v6316_v38 = vld [vmem:[%s7211_s4 + $0x128] sm:$0xff]  ;;  %v6328_v5 = vld [vmem:[%s7211_s4 + $0x178] sm:$0xff] }
 0x915   :  { %v1837_v36 = vsel %vm1835_vm10, %v1836_v11, %v1834_v61  ;;  %v1827_v10 = vsel %vm1826_vm11, %v1792_v40, %v1825_v21  ;;  %v6246_v37 = vadd.f32 %v6203_v12, %v1882_v60  ;;  %v1870_v46 = vmul.f32 %v4821_v45, %v6160_v25  ;;  %v6268_v25 = vld [vmem:[%s7211_s4 + $0x158] sm:$0xff]  ;;  %v6277_v40 = vld [vmem:[%s7211_s4 + $0x160] sm:$0xff] }
 0x916   :  { %v1857_v17 = vadd.f32 1e-05, %v1837_v36  ;;  %v1830_v34 = vsel %vm1828_vm12, %v1829_v20, %v1827_v10  ;;  %v1938_v51 = vmul.f32 %v6221_v62, %v6214_v31  ;;  %v1946_v43 = vmul.f32 %v6227_v14, %v6214_v31 }
 0x917   :  { %v1856_v58 = vadd.f32 1e-05, %v1830_v34  ;;  %v1885_v56 = vmul.f32 %v6197_v53, %v1871_v4  ;;  %v1929_v48 = vmul.f32 %v6233_v24, %v6246_v37  ;;  %v1937_v13 = vmul.f32 %v6238_v42, %v6246_v37 }
 0x918   :  { %4826 = vrcp.f32 %v1857_v17  ;;  %v1945_v32 = vmul.f32 %v6243_v29, %v6246_v37  ;;  %v1884_v41 = vmul.f32 %v6197_v53, %v1870_v46  ;;  %v1949_v52 = vmul.f32 %v6277_v40, %v6246_v37 }
 0x919   :  { %4828 = vrcp.f32 %v1856_v58  ;;  %v6272_v27 = vadd.f32 %v6203_v12, %v1885_v56  ;;  %4275 = vmatprep.mubr.msk.f32.mxu0 %vm77_vm0, %v1929_v48  ;;  %v4527_v0 = vpack.c.bf16 %v1938_v51, %v1937_v13  ;;  %v1950_v55 = vmul.f32 %v6282_v54, %v6214_v31 }
 0x91a   :  { %v4575_v30 = vpack.c.bf16 %v1946_v43, %v1945_v32  ;;  %v6296_v28 = vadd.f32 %v6203_v12, %v1884_v41  ;;  %vm1849_vm14 = vcmp.eq.f32.partialorder %v6207_v15, 0.0  ;;  %v1850_v20 = vand.u32 2147483648, %v6207_v15 }
 0x91b   :  { %v1940_v35 = vmul.f32 %v6263_v39, %v6272_v27  ;;  %v1948_v9 = vmul.f32 %v6268_v25, %v6272_v27  ;;  %4529 = vmatprep.subr.msk.bf16.mxu0 %vm5305_vm2, %v4527_v0  ;;  %vm1840_vm15 = vcmp.eq.f32.partialorder %v6210_v22, inf  ;;  %v1941_v10 = vmul.f32 %v6311_v26, %v6246_v37 }
 0x91c   :  { %4576 = vmatprep.subr.bf16.mxu1 %v4575_v30  ;;  %4532 = vmatpush3.bf16.xpose.msk.msra.mxu0 %vm5305_vm2, %v4527_v0  ;;  %v1939_v2 = vmul.f32 %v6288_v8, %v6296_v28  ;;  %v1947_v3 = vmul.f32 %v6293_v63, %v6296_v28  ;;  %v1942_v4 = vmul.f32 %v6316_v38, %v6214_v31  ;;  %v1843_v56 = vand.u32 2147483648, %v6210_v22 }
 0x91d   :  { %v4823_v11 = vpop.eup %4822  ;;  %4578 = vmatpush3.bf16.msra.mxu1 %v4575_v30  ;;  %v4583_v58 = vpack.c.bf16 %v1950_v55, %v1949_v52  ;;  %v1952_v51 = vmul.f32 %v6328_v5, %v6272_v27  ;;  %v1951_v48 = vmul.f32 %v6337_v16, %v6296_v28  ;;  %vm1842_vm1 = vcmp.eq.f32.partialorder %v6210_v22, 0.0 }
 0x91e   :  { %v1846_v21 = vmul.f32 %v4823_v11, %v6207_v15  ;;  %v4825_v61 = vpop.eup %4824  ;;  %v4533_v60 = vpack.c.bf16 %v1940_v35, %v1939_v2  ;;  %v4579_v36 = vpack.c.bf16 %v1948_v9, %v1947_v3  ;;  %v4539_v9 = vpack.c.bf16 %v1942_v4, %v1941_v10 }
 0x91f   :  { %v1839_v34 = vmul.f32 %v4825_v61, %v6210_v22 }
 0x920   :  { %v1848_v17 = vsel %vm1847_vm13, %v6207_v15, %v1846_v21  ;;  %4535 = vmatprep.subr.msk.bf16.mxu0 %vm5305_vm2, %v4533_v60  ;;  %4580 = vmatprep.subr.bf16.mxu1 %v4579_v36 }
 0x921   :  { %v1851_v46 = vsel %vm1849_vm14, %v1850_v20, %v1848_v17  ;;  %v1841_v32 = vsel %vm1840_vm15, %v6210_v22, %v1839_v34  ;;  %4582 = vmatpush3.bf16.msra.mxu1 %v4579_v36  ;;  %v3784_v22 = vld [vmem:[%s7211_s4 + $0x138] sm:$0xff] }
 0x922   :  { %v4827_v45 = vpop.eup %4826  ;;  %v1859_v15 = vadd.f32 1e-05, %v1851_v46  ;;  %v1844_v0 = vsel %vm1842_vm1, %v1843_v56, %v1841_v32  ;;  %4584 = vmatprep.subr.bf16.mxu1 %v4583_v58  ;;  %v1944_v20 = vmul.f32 %v3784_v22, %v6272_v27 }
 0x923   :  { %v4829_v43 = vpop.eup %4828  ;;  %v1873_v13 = vmul.f32 %v4827_v45, %v6170_v1  ;;  %v1858_v35 = vadd.f32 1e-05, %v1844_v0  ;;  %v4587_v1 = vpack.c.bf16 %v1952_v51, %v1951_v48 }
 0x924   :  { %v1872_v41 = vmul.f32 %v4829_v43, %v6173_v47  ;;  %4830 = vrcp.f32 %v1859_v15  ;;  %4538 = vmatpush3.bf16.xpose.msk.msra.mxu0 %vm5305_vm2, %v4533_v60  ;;  %v3783_v47 = vld [vmem:[%s7211_s4 + $0x130] sm:$0xff] }
 0x925   :  { %v1887_v30 = vmul.f32 %v6197_v53, %v1873_v13  ;;  %4832 = vrcp.f32 %v1858_v35  ;;  %4586 = vmatpush3.bf16.msra.mxu1 %v4583_v58  ;;  %4541 = vmatprep.subr.msk.bf16.mxu0 %vm5305_vm2, %v4539_v9  ;;  %v1943_v21 = vmul.f32 %v3783_v47, %v6296_v28  ;;  %v3774_v35 = vld [vmem:[%s7211_s4 + $0xe8] sm:$0xff] }
 0x926   :  { %v1886_v52 = vmul.f32 %v6197_v53, %v1872_v41  ;;  %4588 = vmatprep.subr.bf16.mxu1 %v4587_v1  ;;  %v3772_v41 = vld [vmem:[%s7211_s4 + $0xd8] sm:$0xff] }
 0x927   :  { %v6365_v55 = vadd.f32 %v6203_v12, %v1887_v30  ;;  %v4545_v36 = vpack.c.bf16 %v1944_v20, %v1943_v21  ;;  %v1932_v0 = vmul.f32 %v3772_v41, %v6272_v27  ;;  %v1933_v30 = vmul.f32 %v3773_v33, %v6246_v37  ;;  %v3776_v37 = vld [vmem:[%s7211_s4 + $0xf8] sm:$0xff] }
 0x928   :  { %v6376_v11 = vadd.f32 %v6203_v12, %v1886_v52  ;;  %v1934_v52 = vmul.f32 %v3774_v35, %v6214_v31 }
 0x929   :  { %v1970_v2 = vmul.f32 %v6227_v14, %v6365_v55  ;;  %4590 = vmatpush3.bf16.msra.mxu1 %v4587_v1 }
 0x92a   :  { %v1969_v3 = vmul.f32 %v6243_v29, %v6376_v11  ;;  %v6386_v61 = vmul.f32 %v6233_v24, %v6376_v11  ;;  %v1961_v4 = vmul.f32 %v6238_v42, %v6376_v11  ;;  %v1962_v24 = vmul.f32 %v6221_v62, %v6365_v55 }
 0x92b   :  { %v1974_v62 = vmul.f32 %v6282_v54, %v6365_v55 }
 0x92c   :  { %v4591_v60 = vpack.c.bf16 %v1970_v2, %v1969_v3  ;;  %4544 = vmatpush3.bf16.xpose.msk.msra.mxu0 %vm5305_vm2, %v4539_v9  ;;  %v4551_v51 = vpack.c.bf16 %v1962_v24, %v1961_v4  ;;  %v3775_v9 = vld [vmem:[%s7211_s4 + $0xf0] sm:$0xff]  ;;  %v1957_v2 = vmul.f32 %v3773_v33, %v6376_v11  ;;  %v5015_v33 = vld [vmem:[%s7208_s1 + $0x60] sm:$0xff] }
 0x92d   :  { %4547 = vmatprep.subr.msk.bf16.mxu0 %vm5305_vm2, %v4545_v36  ;;  %v1935_v1 = vmul.f32 %v3775_v9, %v6296_v28  ;;  %v5005_v24 = vld [vmem:[%s7208_s1 + $0x10] sm:$0xff] }
 0x92e   :  { %4592 = vmatprep.subr.bf16.mxu1 %v4591_v60  ;;  %v4831_v10 = vpop.eup %4830 }
 0x92f   :  { %4594 = vmatpush3.bf16.msra.mxu1 %v4591_v60  ;;  %v1875_v14 = vmul.f32 %v4831_v10, %v6182_v59  ;;  %v4833_v29 = vpop.eup %4832 }
 0x930   :  { %v1874_v45 = vmul.f32 %v4833_v29, %v6185_v57 }
 0x931   :  { %v1889_v17 = vmul.f32 %v6197_v53, %v1875_v14  ;;  %v5004_v14 = vld [vmem:[%s7208_s1 + $0x18] sm:$0xff] }
 0x932   :  { %v1888_v34 = vmul.f32 %v6197_v53, %v1874_v45  ;;  %v1973_v53 = vmul.f32 %v6277_v40, %v6376_v11 }
 0x933   :  { %v6401_v58 = vadd.f32 %v6203_v12, %v1889_v17 }
 0x934   :  { %v6404_v43 = vadd.f32 %v6203_v12, %v1888_v34  ;;  %4550 = vmatpush3.bf16.xpose.msk.msra.mxu0 %vm5305_vm2, %v4545_v36  ;;  %v4599_v46 = vpack.c.bf16 %v1974_v62, %v1973_v53  ;;  %v5006_v34 = vld [vmem:[%s7208_s1 + $0x28] sm:$0xff]  ;;  %v5008_v53 = vld [vmem:[%s7208_s1 + $0x38] sm:$0xff] }
 0x935   :  { %v1972_v59 = vmul.f32 %v6268_v25, %v6401_v58  ;;  %4553 = vmatprep.subr.msk.bf16.mxu0 %vm5305_vm2, %v4551_v51  ;;  %v1964_v42 = vmul.f32 %v6263_v39, %v6401_v58  ;;  %v1965_v39 = vmul.f32 %v6311_v26, %v6376_v11  ;;  %v1968_v48 = vmul.f32 %v3784_v22, %v6401_v58  ;;  %v3770_v26 = vld [vmem:[%s7211_s4 + $0xc8] sm:$0xff] }
 0x936   :  { %v1971_v57 = vmul.f32 %v6293_v63, %v6404_v43  ;;  %v1963_v12 = vmul.f32 %v6288_v8, %v6404_v43  ;;  %v1975_v56 = vmul.f32 %v6337_v16, %v6404_v43  ;;  %v1976_v63 = vmul.f32 %v6328_v5, %v6401_v58  ;;  %v5002_v11 = vld [vmem:[%s7208_s1 + $0x8] sm:$0xff] }
 0x937   :  { %v1966_v8 = vmul.f32 %v6316_v38, %v6365_v55  ;;  %v1967_v16 = vmul.f32 %v3783_v47, %v6404_v43  ;;  %v3771_v38 = vld [vmem:[%s7211_s4 + $0xd0] sm:$0xff]  ;;  %v1930_v15 = vmul.f32 %v3770_v26, %v6214_v31  ;;  %v1936_v47 = vmul.f32 %v3776_v37, %v6272_v27 }
 0x938   :  { %v4595_v25 = vpack.c.bf16 %v1972_v59, %v1971_v57  ;;  %v4557_v40 = vpack.c.bf16 %v1964_v42, %v1963_v12  ;;  %v4603_v54 = vpack.c.bf16 %v1976_v63, %v1975_v56  ;;  %v1931_v32 = vmul.f32 %v3771_v38, %v6296_v28  ;;  %v5009_v42 = vld [vmem:[%s7208_s1 + $0x30] sm:$0xff]  ;;  %v5010_v56 = vld [vmem:[%s7208_s1 + $0x48] sm:$0xff] }
 0x939   :  { %v4563_v5 = vpack.c.bf16 %v1966_v8, %v1965_v39  ;;  %v4569_v13 = vpack.c.bf16 %v1968_v48, %v1967_v16  ;;  %v1954_v22 = vmul.f32 %v3770_v26, %v6365_v55  ;;  %v1955_v31 = vmul.f32 %v3771_v38, %v6404_v43 }
 0x93a   :  { %4596 = vmatprep.subr.bf16.mxu1 %v4595_v25  ;;  %v1956_v28 = vmul.f32 %v3772_v41, %v6401_v58  ;;  %v1958_v27 = vmul.f32 %v3774_v35, %v6365_v55  ;;  %v1959_v3 = vmul.f32 %v3775_v9, %v6404_v43  ;;  %v1960_v21 = vmul.f32 %v3776_v37, %v6401_v58  ;;  %v5003_v55 = vld [vmem:[%s7208_s1] sm:$0xff]  ;;  %v5016_v35 = vld [vmem:[%s7208_s1 + $0x78] sm:$0xff] }
 0x93b   :  { %4598 = vmatpush3.bf16.msra.mxu1 %v4595_v25  ;;  %v5007_v43 = vld [vmem:[%s7208_s1 + $0x20] sm:$0xff] }
 0x93c   :  { %4600 = vmatprep.subr.bf16.mxu1 %v4599_v46  ;;  %4556 = vmatpush3.bf16.xpose.msk.msra.mxu0 %vm5305_vm2, %v4551_v51 }
 0x93d   :  { %4559 = vmatprep.subr.msk.bf16.mxu0 %vm5305_vm2, %v4557_v40 }
 0x93f   :  { %4602 = vmatpush3.bf16.msra.mxu1 %v4599_v46 }
 0x940   :  { %4604 = vmatprep.subr.bf16.mxu1 %v4603_v54 }
 0x943   :  { %4606 = vmatpush3.bf16.msra.mxu1 %v4603_v54  ;;  %v5011_v54 = vld [vmem:[%s7208_s1 + $0x40] sm:$0xff] }
 0x944   :  { %4562 = vmatpush3.bf16.xpose.msk.msra.mxu0 %vm5305_vm2, %v4557_v40 }
 0x945   :  { %4565 = vmatprep.subr.msk.bf16.mxu0 %vm5305_vm2, %v4563_v5 }
 0x94c   :  { %4568 = vmatpush3.bf16.xpose.msk.msra.mxu0 %vm5305_vm2, %v4563_v5  ;;  %v5012_v5 = vld [vmem:[%s7208_s1 + $0x58] sm:$0xff] }
 0x94d   :  { %4571 = vmatprep.subr.msk.bf16.mxu0 %vm5305_vm2, %v4569_v13 }
 0x954   :  { %4574 = vmatpush3.bf16.xpose.msk.msra.mxu0 %vm5305_vm2, %v4569_v13  ;;  %v5013_v13 = vld [vmem:[%s7208_s1 + $0x50] sm:$0xff] }
 0x95b   :  { %4276 = vmatmul.mubr.msk.f32.vlgmr.msra.gmra.mrb[16].mxu0 %vm77_vm0, %v1930_v15  ;;  %v5014_v15 = vld [vmem:[%s7208_s1 + $0x68] sm:$0xff] }
 0x95c   :  { %4278 = vmatprep.mubr.msk.f32.mxu0 %vm77_vm0, %v1931_v32 }
 0x95f   :  { %4279 = vmatmul.mubr.msk.f32.gmra.mrb[18].mxu0 %vm77_vm0, %v1932_v0 }
 0x960   :  { %4281 = vmatprep.mubr.msk.f32.mxu0 %vm77_vm0, %v1933_v30 }
 0x963   :  { %4282 = vmatmul.mubr.msk.f32.gmra.mrb[20].mxu0 %vm77_vm0, %v1934_v52 }
 0x964   :  { %4284 = vmatprep.mubr.msk.f32.mxu0 %vm77_vm0, %v1935_v1  ;;  %v5017_v1 = vld [vmem:[%s7208_s1 + $0x70] sm:$0xff] }
 0x967   :  { %4285 = vmatmul.mubr.msk.f32.gmra.mrb[22].mxu0 %vm77_vm0, %v1936_v47 }
 0x968   :  { %4287 = vmatprep.mubr.msk.f32.mxu0 %vm77_vm0, %v6386_v61 }
 0x96b   :  { %4288 = vmatmul.mubr.msk.f32.gmra.mrb[24].mxu0 %vm77_vm0, %v1954_v22 }
 0x96c   :  { %4290 = vmatprep.mubr.msk.f32.mxu0 %vm77_vm0, %v1955_v31 }
 0x96f   :  { %4291 = vmatmul.mubr.msk.f32.gmra.mrb[26].mxu0 %vm77_vm0, %v1956_v28 }
 0x970   :  { %4293 = vmatprep.mubr.msk.f32.mxu0 %vm77_vm0, %v1957_v2 }
 0x973   :  { %4294 = vmatmul.mubr.msk.f32.gmra.mrb[28].mxu0 %vm77_vm0, %v1958_v27 }
 0x974   :  { %4296 = vmatprep.mubr.msk.f32.mxu0 %vm77_vm0, %v1959_v3 }
 0x977   :  { %4297 = vmatmul.mubr.msk.f32.gmra.mrb[30].mxu0 %vm77_vm0, %v1960_v21 }
 0xa2e   :  { %v4277_v20 = vpop.f32.mrb[16].mxu0 }
 0xa2f   :  { %v6500_v61 = vadd.f32 %v5002_v11, %v4277_v20  ;;  %v2139_v60 = vpop.f32.mrb[17].mxu0 }
 0xa30   :  { %v6505_v36 = vadd.f32 %v5003_v55, %v2139_v60 }
 0xa31   :  { %2220 = vmax.xlane.f32.xlu1 %v6500_v61 }
 0xa32   :  { %v4280_v10 = vpop.f32.mrb[18].mxu0  ;;  %2218 = vmax.xlane.f32.xlu0 %v6505_v36 }
 0xa33   :  { %v6512_v29 = vadd.f32 %v5004_v14, %v4280_v10  ;;  %v2149_v4 = vpop.f32.mrb[19].mxu0 }
 0xa34   :  { %v6517_v45 = vadd.f32 %v5005_v24, %v2149_v4 }
 0xa35   :  { %2224 = vmax.xlane.f32.xlu1 %v6512_v29 }
 0xa36   :  { %v4283_v17 = vpop.f32.mrb[20].mxu0  ;;  %2222 = vmax.xlane.f32.xlu0 %v6517_v45 }
 0xa37   :  { %v6524_v58 = vadd.f32 %v5006_v34, %v4283_v17  ;;  %v2159_v51 = vpop.f32.mrb[21].mxu0 }
 0xa38   :  { %v6529_v59 = vadd.f32 %v5007_v43, %v2159_v51 }
 0xa39   :  { %2228 = vmax.xlane.f32.xlu1 %v6524_v58 }
 0xa3a   :  { %v4286_v57 = vpop.f32.mrb[22].mxu0  ;;  %2226 = vmax.xlane.f32.xlu0 %v6529_v59 }
 0xa3b   :  { %v6536_v62 = vadd.f32 %v5008_v53, %v4286_v57  ;;  %v2169_v12 = vpop.f32.mrb[23].mxu0 }
 0xa3c   :  { %v6541_v25 = vadd.f32 %v5009_v42, %v2169_v12 }
 0xa3d   :  { %2232 = vmax.xlane.f32.xlu1 %v6536_v62 }
 0xa3e   :  { %v4289_v46 = vpop.f32.mrb[24].mxu0  ;;  %2230 = vmax.xlane.f32.xlu0 %v6541_v25 }
 0xa3f   :  { %v6548_v63 = vadd.f32 %v5010_v56, %v4289_v46  ;;  %v2179_v40 = vpop.f32.mrb[25].mxu0 }
 0xa40   :  { %v6553_v39 = vadd.f32 %v5011_v54, %v2179_v40 }
 0xa41   :  { %2236 = vmax.xlane.f32.xlu1 %v6548_v63 }
 0xa42   :  { %2234 = vmax.xlane.f32.xlu0 %v6553_v39  ;;  %v4292_v8 = vpop.f32.mrb[26].mxu0 }
 0xa43   :  { %v6560_v16 = vadd.f32 %v5012_v5, %v4292_v8  ;;  %v2189_v48 = vpop.f32.mrb[27].mxu0 }
 0xa44   :  { %v6565_v26 = vadd.f32 %v5013_v13, %v2189_v48 }
 0xa45   :  { %2240 = vmax.xlane.f32.xlu1 %v6560_v16 }
 0xa46   :  { %v4295_v38 = vpop.f32.mrb[28].mxu0  ;;  %2238 = vmax.xlane.f32.xlu0 %v6565_v26 }
 0xa47   :  { %v6572_v32 = vadd.f32 %v5014_v15, %v4295_v38  ;;  %v2199_v41 = vpop.f32.mrb[29].mxu0 }
 0xa48   :  { %v6577_v0 = vadd.f32 %v5015_v33, %v2199_v41 }
 0xa49   :  { %2244 = vmax.xlane.f32.xlu1 %v6572_v32 }
 0xa4a   :  { %v4298_v30 = vpop.f32.mrb[30].mxu0  ;;  %2242 = vmax.xlane.f32.xlu0 %v6577_v0 }
 0xa4b   :  { %v6584_v9 = vadd.f32 %v5016_v35, %v4298_v30  ;;  %v2209_v52 = vpop.f32.mrb[31].mxu0 }
 0xa4c   :  { %v6589_v37 = vadd.f32 %v5017_v1, %v2209_v52 }
 0xa4d   :  { %2248 = vmax.xlane.f32.xlu1 %v6584_v9 }
 0xa4e   :  { %2246 = vmax.xlane.f32.xlu0 %v6589_v37 }
 0xabe   :  { %v2221_v47 = vpop.xlane.xlu1 %2220 }
 0xabf   :  { %v2251_v22 = vsub.f32 %v6500_v61, %v2221_v47  ;;  %v2219_v31 = vpop.xlane.xlu0 %2218 }
 0xac0   :  { %v2250_v28 = vsub.f32 %v6505_v36, %v2219_v31 }
 0xac1   :  { %v2268_v2 = vmul.f32 1.442695, %v2251_v22 }
 0xac2   :  { %v2266_v27 = vmul.f32 1.442695, %v2250_v28  ;;  %v2225_v3 = vpop.xlane.xlu1 %2224 }
 0xac3   :  { %4834 = vpow2.f32 %v2268_v2  ;;  %v2253_v21 = vsub.f32 %v6512_v29, %v2225_v3  ;;  %v2223_v20 = vpop.xlane.xlu0 %2222 }
 0xac4   :  { %4836 = vpow2.f32 %v2266_v27  ;;  %v2252_v11 = vsub.f32 %v6517_v45, %v2223_v20 }
 0xac5   :  { %v2272_v60 = vmul.f32 1.442695, %v2253_v21 }
 0xac6   :  { %v2270_v55 = vmul.f32 1.442695, %v2252_v11  ;;  %v2229_v10 = vpop.xlane.xlu1 %2228 }
 0xac7   :  { %4838 = vpow2.f32 %v2272_v60  ;;  %v2255_v14 = vsub.f32 %v6524_v58, %v2229_v10  ;;  %v2227_v61 = vpop.xlane.xlu0 %2226 }
 0xac8   :  { %4840 = vpow2.f32 %v2270_v55  ;;  %v2254_v36 = vsub.f32 %v6529_v59, %v2227_v61 }
 0xac9   :  { %v2276_v4 = vmul.f32 1.442695, %v2255_v14 }
 0xaca   :  { %v2274_v24 = vmul.f32 1.442695, %v2254_v36  ;;  %v2233_v17 = vpop.xlane.xlu1 %2232 }
 0xacb   :  { %4842 = vpow2.f32 %v2276_v4  ;;  %v2257_v29 = vsub.f32 %v6536_v62, %v2233_v17  ;;  %v2231_v34 = vpop.xlane.xlu0 %2230 }
 0xacc   :  { %4844 = vpow2.f32 %v2274_v24  ;;  %v2256_v45 = vsub.f32 %v6541_v25, %v2231_v34 }
 0xacd   :  { %v6601_v51 = vpop.eup %4834  ;;  %v2280_v43 = vmul.f32 1.442695, %v2257_v29 }
 0xace   :  { %v6603_v57 = vpop.eup %4836  ;;  %v2278_v58 = vmul.f32 1.442695, %v2256_v45  ;;  %v2237_v53 = vpop.xlane.xlu1 %2236  ;;  %2300 = vadd.xlane.f32.xlu1 %v6601_v51 }
 0xacf   :  { %4846 = vpow2.f32 %v2280_v43  ;;  %v2259_v59 = vsub.f32 %v6548_v63, %v2237_v53  ;;  %v2235_v12 = vpop.xlane.xlu0 %2234  ;;  %2298 = vadd.xlane.f32.xlu0 %v6603_v57 }
 0xad0   :  { %4848 = vpow2.f32 %v2278_v58  ;;  %v2258_v62 = vsub.f32 %v6553_v39, %v2235_v12 }
 0xad1   :  { %v6609_v42 = vpop.eup %4838  ;;  %v2284_v25 = vmul.f32 1.442695, %v2259_v59 }
 0xad2   :  { %v6611_v46 = vpop.eup %4840  ;;  %v2282_v56 = vmul.f32 1.442695, %v2258_v62  ;;  %v2241_v40 = vpop.xlane.xlu1 %2240  ;;  %2304 = vadd.xlane.f32.xlu1 %v6609_v42 }
 0xad3   :  { %4850 = vpow2.f32 %v2284_v25  ;;  %v2261_v54 = vsub.f32 %v6560_v16, %v2241_v40  ;;  %2302 = vadd.xlane.f32.xlu0 %v6611_v46  ;;  %v2239_v63 = vpop.xlane.xlu0 %2238 }
 0xad4   :  { %4852 = vpow2.f32 %v2282_v56  ;;  %v2260_v8 = vsub.f32 %v6565_v26, %v2239_v63 }
 0xad5   :  { %v6617_v5 = vpop.eup %4842  ;;  %v2288_v39 = vmul.f32 1.442695, %v2261_v54 }
 0xad6   :  { %v6619_v48 = vpop.eup %4844  ;;  %v2286_v13 = vmul.f32 1.442695, %v2260_v8  ;;  %v2245_v38 = vpop.xlane.xlu1 %2244  ;;  %2308 = vadd.xlane.f32.xlu1 %v6617_v5 }
 0xad7   :  { %4854 = vpow2.f32 %v2288_v39  ;;  %v2263_v15 = vsub.f32 %v6572_v32, %v2245_v38  ;;  %2306 = vadd.xlane.f32.xlu0 %v6619_v48  ;;  %v2243_v16 = vpop.xlane.xlu0 %2242 }
 0xad8   :  { %4856 = vpow2.f32 %v2286_v13  ;;  %v2262_v41 = vsub.f32 %v6577_v0, %v2243_v16 }
 0xad9   :  { %v6625_v33 = vpop.eup %4846  ;;  %v2292_v26 = vmul.f32 1.442695, %v2263_v15 }
 0xada   :  { %v6627_v30 = vpop.eup %4848  ;;  %v2290_v35 = vmul.f32 1.442695, %v2262_v41  ;;  %2312 = vadd.xlane.f32.xlu1 %v6625_v33  ;;  %v2249_v52 = vpop.xlane.xlu1 %2248 }
 0xadb   :  { %4858 = vpow2.f32 %v2292_v26  ;;  %v2265_v1 = vsub.f32 %v6584_v9, %v2249_v52  ;;  %2310 = vadd.xlane.f32.xlu0 %v6627_v30  ;;  %v2247_v32 = vpop.xlane.xlu0 %2246 }
 0xadc   :  { %4860 = vpow2.f32 %v2290_v35  ;;  %v2264_v47 = vsub.f32 %v6589_v37, %v2247_v32 }
 0xadd   :  { %v6633_v22 = vpop.eup %4850  ;;  %v2296_v0 = vmul.f32 1.442695, %v2265_v1 }
 0xade   :  { %v6635_v31 = vpop.eup %4852  ;;  %v2294_v28 = vmul.f32 1.442695, %v2264_v47  ;;  %2316 = vadd.xlane.f32.xlu1 %v6633_v22 }
 0xadf   :  { %4862 = vpow2.f32 %v2296_v0  ;;  %2314 = vadd.xlane.f32.xlu0 %v6635_v31 }
 0xae0   :  { %4864 = vpow2.f32 %v2294_v28 }
 0xae1   :  { %v6639_v2 = vpop.eup %4854 }
 0xae2   :  { %v6641_v9 = vpop.eup %4856  ;;  %2320 = vadd.xlane.f32.xlu1 %v6639_v2 }
 0xae3   :  { %2318 = vadd.xlane.f32.xlu0 %v6641_v9 }
 0xae5   :  { %v6645_v37 = vpop.eup %4858 }
 0xae6   :  { %v6647_v27 = vpop.eup %4860  ;;  %2324 = vadd.xlane.f32.xlu1 %v6645_v37 }
 0xae7   :  { %2322 = vadd.xlane.f32.xlu0 %v6647_v27 }
 0xae9   :  { %v6651_v3 = vpop.eup %4862 }
 0xaea   :  { %v6653_v21 = vpop.eup %4864  ;;  %2328 = vadd.xlane.f32.xlu1 %v6651_v3 }
 0xaeb   :  { %2326 = vadd.xlane.f32.xlu0 %v6653_v21 }
 0xb5b   :  { %v2301_v20 = vpop.xlane.xlu1 %2300 }
 0xb5c   :  { %4866 = vrcp.f32 %v2301_v20  ;;  %v2299_v11 = vpop.xlane.xlu0 %2298 }
 0xb5d   :  { %4868 = vrcp.f32 %v2299_v11 }
 0xb5f   :  { %v2305_v60 = vpop.xlane.xlu1 %2304 }
 0xb60   :  { %4870 = vrcp.f32 %v2305_v60  ;;  %v2303_v55 = vpop.xlane.xlu0 %2302  ;;  %v3828_v60 = vld [vmem:[%s7212_s5 + $0x58] sm:$0xff] }
 0xb61   :  { %4872 = vrcp.f32 %v2303_v55 }
 0xb63   :  { %v2309_v10 = vpop.xlane.xlu1 %2308 }
 0xb64   :  { %4874 = vrcp.f32 %v2309_v10  ;;  %v2307_v14 = vpop.xlane.xlu0 %2306  ;;  %v3827_v10 = vld [vmem:[%s7212_s5 + $0x50] sm:$0xff] }
 0xb65   :  { %4876 = vrcp.f32 %v2307_v14 }
 0xb66   :  { %v4867_v61 = vpop.eup %4866 }
 0xb67   :  { %v4869_v36 = vpop.eup %4868  ;;  %v2313_v4 = vpop.xlane.xlu1 %2312  ;;  %v2347_v29 = vmul.f32 %v4867_v61, %v6601_v51 }
 0xb68   :  { %4878 = vrcp.f32 %v2313_v4  ;;  %v2311_v24 = vpop.xlane.xlu0 %2310  ;;  %v2346_v17 = vmul.f32 %v4869_v36, %v6603_v57  ;;  %v3832_v4 = vld [vmem:[%s7212_s5 + $0x78] sm:$0xff] }
 0xb69   :  { %4880 = vrcp.f32 %v2311_v24 }
 0xb6a   :  { %v4871_v34 = vpop.eup %4870  ;;  %4331 = vmatprep.mubr.f32.mxu1 %v2346_v17 }
 0xb6b   :  { %v4873_v45 = vpop.eup %4872  ;;  %v2317_v43 = vpop.xlane.xlu1 %2316  ;;  %4332 = vmatmul.mubr.f32.vlgmr.msra.gmra.mrb[32].mxu1 %v2347_v29  ;;  %v2349_v59 = vmul.f32 %v4871_v34, %v6609_v42  ;;  %v3831_v34 = vld [vmem:[%s7212_s5 + $0x70] sm:$0xff] }
 0xb6c   :  { %4882 = vrcp.f32 %v2317_v43  ;;  %v2315_v58 = vpop.xlane.xlu0 %2314  ;;  %v2348_v53 = vmul.f32 %v4873_v45, %v6611_v46 }
 0xb6d   :  { %4884 = vrcp.f32 %v2315_v58 }
 0xb6e   :  { %v4875_v12 = vpop.eup %4874  ;;  %4334 = vmatprep.mubr.f32.mxu1 %v2348_v53 }
 0xb6f   :  { %v4877_v62 = vpop.eup %4876  ;;  %v2321_v25 = vpop.xlane.xlu1 %2320  ;;  %4335 = vmatmul.mubr.f32.gmra.mrb[34].mxu1 %v2349_v59  ;;  %v2351_v56 = vmul.f32 %v4875_v12, %v6617_v5 }
 0xb70   :  { %4886 = vrcp.f32 %v2321_v25  ;;  %v2319_v51 = vpop.xlane.xlu0 %2318  ;;  %v2350_v57 = vmul.f32 %v4877_v62, %v6619_v48 }
 0xb71   :  { %4888 = vrcp.f32 %v2319_v51 }
 0xb72   :  { %v4879_v40 = vpop.eup %4878  ;;  %4337 = vmatprep.mubr.f32.mxu1 %v2350_v57 }
 0xb73   :  { %v4881_v54 = vpop.eup %4880  ;;  %v2325_v63 = vpop.xlane.xlu1 %2324  ;;  %4338 = vmatmul.mubr.f32.gmra.mrb[36].mxu1 %v2351_v56  ;;  %v2353_v8 = vmul.f32 %v4879_v40, %v6625_v33 }
 0xb74   :  { %4890 = vrcp.f32 %v2325_v63  ;;  %v2323_v46 = vpop.xlane.xlu0 %2322  ;;  %v2352_v42 = vmul.f32 %v4881_v54, %v6627_v30 }
 0xb75   :  { %4892 = vrcp.f32 %v2323_v46 }
 0xb76   :  { %v4883_v39 = vpop.eup %4882  ;;  %4340 = vmatprep.mubr.f32.mxu1 %v2352_v42 }
 0xb77   :  { %v4885_v13 = vpop.eup %4884  ;;  %v2329_v38 = vpop.xlane.xlu1 %2328  ;;  %4341 = vmatmul.mubr.f32.gmra.mrb[38].mxu1 %v2353_v8  ;;  %v2355_v15 = vmul.f32 %v4883_v39, %v6633_v22 }
 0xb78   :  { %4894 = vrcp.f32 %v2329_v38  ;;  %v2327_v48 = vpop.xlane.xlu0 %2326  ;;  %v2354_v5 = vmul.f32 %v4885_v13, %v6635_v31 }
 0xb79   :  { %4896 = vrcp.f32 %v2327_v48 }
 0xb7a   :  { %v4887_v16 = vpop.eup %4886  ;;  %4343 = vmatprep.mubr.f32.mxu1 %v2354_v5 }
 0xb7b   :  { %v4889_v41 = vpop.eup %4888  ;;  %4344 = vmatmul.mubr.f32.gmra.mrb[40].mxu1 %v2355_v15  ;;  %v2357_v33 = vmul.f32 %v4887_v16, %v6639_v2  ;;  %v3826_v2 = vld [vmem:[%s7212_s5 + $0x48] sm:$0xff] }
 0xb7c   :  { %v2356_v26 = vmul.f32 %v4889_v41, %v6641_v9 }
 0xb7e   :  { %v4891_v30 = vpop.eup %4890  ;;  %4346 = vmatprep.mubr.f32.mxu1 %v2356_v26 }
 0xb7f   :  { %v4893_v35 = vpop.eup %4892  ;;  %4347 = vmatmul.mubr.f32.gmra.mrb[42].mxu1 %v2357_v33  ;;  %v2359_v1 = vmul.f32 %v4891_v30, %v6645_v37  ;;  %v3825_v37 = vld [vmem:[%s7212_s5 + $0x40] sm:$0xff] }
 0xb80   :  { %v2358_v52 = vmul.f32 %v4893_v35, %v6647_v27 }
 0xb82   :  { %v4895_v32 = vpop.eup %4894  ;;  %4349 = vmatprep.mubr.f32.mxu1 %v2358_v52 }
 0xb83   :  { %v4897_v47 = vpop.eup %4896  ;;  %4350 = vmatmul.mubr.f32.gmra.mrb[44].mxu1 %v2359_v1  ;;  %v2361_v0 = vmul.f32 %v4895_v32, %v6651_v3  ;;  %v3829_v3 = vld [vmem:[%s7212_s5 + $0x60] sm:$0xff] }
 0xb84   :  { %v2360_v22 = vmul.f32 %v4897_v47, %v6653_v21  ;;  %v3830_v21 = vld [vmem:[%s7212_s5 + $0x68] sm:$0xff] }
 0xb86   :  { %4352 = vmatprep.mubr.f32.mxu1 %v2360_v22 }
 0xb87   :  { %4353 = vmatmul.mubr.f32.gmra.mrb[46].mxu1 %v2361_v0 }
 0xc3e   :  { %v4333_v31 = vpop.f32.mrb[32].mxu1 }
 0xc3f   :  { %v2428_v28 = vpop.f32.mrb[33].mxu1  ;;  %v2517_v20 = vmul.f32 %v4333_v31, %v3826_v2 }
 0xc40   :  { %v2516_v11 = vmul.f32 %v3825_v37, %v2428_v28 }
 0xc41   :  { %v2535_v24 = vsel %vm77_vm0, %v2517_v20, 0.0 }
 0xc42   :  { %v4336_v9 = vpop.f32.mrb[34].mxu1  ;;  %v2532_v45 = vsel %vm77_vm0, %v2516_v11, 0.0 }
 0xc43   :  { %v2438_v27 = vpop.f32.mrb[35].mxu1  ;;  %v2519_v17 = vmul.f32 %v4336_v9, %v3828_v60 }
 0xc44   :  { %v2518_v43 = vmul.f32 %v3827_v10, %v2438_v27 }
 0xc45   :  { %v2541_v56 = vsel %vm77_vm0, %v2519_v17, 0.0 }
 0xc46   :  { %v4339_v55 = vpop.f32.mrb[36].mxu1  ;;  %v2538_v63 = vsel %vm77_vm0, %v2518_v43, 0.0 }
 0xc47   :  { %v2521_v14 = vmul.f32 %v4339_v55, %v3830_v21  ;;  %v2448_v61 = vpop.f32.mrb[37].mxu1 }
 0xc48   :  { %v2520_v36 = vmul.f32 %v3829_v3, %v2448_v61 }
 0xc49   :  { %v2536_v29 = vsel %vm77_vm0, %v2521_v14, 0.0 }
 0xc4a   :  { %v2537_v58 = vadd.f32 %v2536_v29, %v2535_v24  ;;  %v2533_v53 = vsel %vm77_vm0, %v2520_v36, 0.0  ;;  %v4342_v59 = vpop.f32.mrb[38].mxu1 }
 0xc4b   :  { %v2534_v12 = vadd.f32 %v2533_v53, %v2532_v45  ;;  %v2523_v62 = vmul.f32 %v4342_v59, %v3832_v4  ;;  %v2458_v25 = vpop.f32.mrb[39].mxu1 }
 0xc4c   :  { %v6702_v51 = vadd.f32 %v2537_v58, %v6107_v23  ;;  %v2522_v57 = vmul.f32 %v3831_v34, %v2458_v25 }
 0xc4d   :  { %v6706_v40 = vadd.f32 %v2534_v12, %v6109_v44  ;;  %v2542_v54 = vsel %vm77_vm0, %v2523_v62, 0.0 }
 0xc4e   :  { %v2543_v46 = vadd.f32 %v2542_v54, %v2541_v56  ;;  %v2539_v42 = vsel %vm77_vm0, %v2522_v57, 0.0  ;;  %v4345_v8 = vpop.f32.mrb[40].mxu1  ;;  %v2571_v39 = vsel %vm77_vm0, %v6702_v51, 0.0 }
 0xc4f   :  { %v2540_v13 = vadd.f32 %v2539_v42, %v2538_v63  ;;  %2572 = vadd.xlane.f32.xlu1 %v2571_v39  ;;  %v2468_v23 = vpop.f32.mrb[41].mxu1  ;;  %v2568_v38 = vsel %vm77_vm0, %v6706_v40, 0.0  ;;  %v2525_v26 = vmul.f32 %v4345_v8, %v3826_v2 }
 0xc50   :  { %v6716_v44 = vadd.f32 %v2543_v46, %v6117_v49  ;;  %2569 = vadd.xlane.f32.xlu0 %v2568_v38  ;;  %v2524_v33 = vmul.f32 %v3825_v37, %v2468_v23 }
 0xc51   :  { %v6719_v48 = vadd.f32 %v2540_v13, %v6119_v6  ;;  %v2547_v1 = vsel %vm77_vm0, %v2525_v26, 0.0 }
 0xc52   :  { %v4348_v5 = vpop.f32.mrb[42].mxu1  ;;  %v2577_v15 = vsel %vm77_vm0, %v6716_v44, 0.0  ;;  %v2544_v47 = vsel %vm77_vm0, %v2524_v33, 0.0 }
 0xc53   :  { %2578 = vadd.xlane.f32.xlu1 %v2577_v15  ;;  %v2478_v16 = vpop.f32.mrb[43].mxu1  ;;  %v2574_v41 = vsel %vm77_vm0, %v6719_v48, 0.0  ;;  %v2527_v6 = vmul.f32 %v4348_v5, %v3828_v60 }
 0xc54   :  { %2575 = vadd.xlane.f32.xlu0 %v2574_v41  ;;  %v2526_v22 = vmul.f32 %v3827_v10, %v2478_v16 }
 0xc55   :  { %v2553_v20 = vsel %vm77_vm0, %v2527_v6, 0.0 }
 0xc56   :  { %v4351_v30 = vpop.f32.mrb[44].mxu1  ;;  %v2550_v60 = vsel %vm77_vm0, %v2526_v22, 0.0 }
 0xc57   :  { %v2529_v35 = vmul.f32 %v4351_v30, %v3830_v21  ;;  %v2488_v49 = vpop.f32.mrb[45].mxu1 }
 0xc58   :  { %v2528_v52 = vmul.f32 %v3829_v3, %v2488_v49 }
 0xc59   :  { %v2548_v32 = vsel %vm77_vm0, %v2529_v35, 0.0 }
 0xc5a   :  { %v2549_v0 = vadd.f32 %v2548_v32, %v2547_v1  ;;  %v2545_v31 = vsel %vm77_vm0, %v2528_v52, 0.0  ;;  %v4354_v28 = vpop.f32.mrb[46].mxu1 }
 0xc5b   :  { %v2546_v9 = vadd.f32 %v2545_v31, %v2544_v47  ;;  %v2531_v27 = vmul.f32 %v4354_v28, %v3832_v4  ;;  %v2498_v2 = vpop.f32.mrb[47].mxu1  ;;  %v3837_v31 = vld [vmem:[%s7215_s8 + $0x20] sm:$0xff]  ;;  %v3838_v28 = vld [vmem:[%s7215_s8 + $0x28] sm:$0xff] }
 0xc5c   :  { %v6730_v37 = vadd.f32 %v2549_v0, %v6127_v7  ;;  %v2530_v21 = vmul.f32 %v3831_v34, %v2498_v2  ;;  %v3840_v2 = vld [vmem:[%s7215_s8 + $0x38] sm:$0xff] }
 0xc5d   :  { %v6734_v3 = vadd.f32 %v2546_v9, %v6129_v18  ;;  %v2554_v11 = vsel %vm77_vm0, %v2531_v27, 0.0  ;;  %v4607_v9 = vpack.c.bf16 %v3838_v28, %v3837_v31  ;;  %v3839_v27 = vld [vmem:[%s7215_s8 + $0x30] sm:$0xff]  ;;  %v6818_v28 = vld [vmem:[%s7213_s6 + $0x1] ss:$0 sm:$0xff] }
 0xc5e   :  { %v2555_v55 = vadd.f32 %v2554_v11, %v2553_v20  ;;  %v2551_v10 = vsel %vm77_vm0, %v2530_v21, 0.0  ;;  %v2583_v14 = vsel %vm77_vm0, %v6730_v37, 0.0  ;;  %v4611_v21 = vpack.c.bf16 %v3840_v2, %v3839_v27 }
 0xc5f   :  { %v2552_v61 = vadd.f32 %v2551_v10, %v2550_v60  ;;  %2584 = vadd.xlane.f32.xlu1 %v2583_v14  ;;  %v2580_v7 = vsel %vm77_vm0, %v6734_v3, 0.0  ;;  %4608 = vmatprep.subr.bf16.mxu1 %v4607_v9 }
 0xc60   :  { %v6744_v36 = vadd.f32 %v2555_v55, %v6137_v19  ;;  %2581 = vadd.xlane.f32.xlu0 %v2580_v7  ;;  %4610 = vmatpush3.bf16.msra.mxu1 %v4607_v9 }
 0xc61   :  { %v6747_v18 = vadd.f32 %v2552_v61, %v6139_v50  ;;  %4612 = vmatprep.subr.bf16.mxu1 %v4611_v21 }
 0xc62   :  { %v2589_v4 = vsel %vm77_vm0, %v6744_v36, 0.0 }
 0xc63   :  { %2590 = vadd.xlane.f32.xlu1 %v2589_v4  ;;  %v2586_v24 = vsel %vm77_vm0, %v6747_v18, 0.0 }
 0xc64   :  { %2587 = vadd.xlane.f32.xlu0 %v2586_v24  ;;  %4614 = vmatpush3.bf16.msra.mxu1 %v4611_v21 }
 0xcdc   :  { %v2573_v17 = vpop.xlane.xlu1 %2572 }
 0xcdd   :  { %v2593_v29 = vmul.f32 0.03125, %v2573_v17  ;;  %v2570_v34 = vpop.xlane.xlu0 %2569 }
 0xcde   :  { %v2592_v45 = vmul.f32 0.03125, %v2570_v34 }
 0xcdf   :  { %v6754_v43 = vsub.f32 %v6702_v51, %v2593_v29 }
 0xce0   :  { %v6757_v19 = vsub.f32 %v6706_v40, %v2592_v45  ;;  %v2579_v50 = vpop.xlane.xlu1 %2578 }
 0xce1   :  { %v2595_v58 = vmul.f32 0.03125, %v2579_v50  ;;  %v2576_v53 = vpop.xlane.xlu0 %2575  ;;  %v2609_v59 = vmul.f32 %v6754_v43, %v6754_v43 }
 0xce2   :  { %v2594_v12 = vmul.f32 0.03125, %v2576_v53  ;;  %v2608_v62 = vmul.f32 %v6757_v19, %v6757_v19 }
 0xce3   :  { %v6764_v25 = vsub.f32 %v6716_v44, %v2595_v58  ;;  %v2619_v57 = vsel %vm77_vm0, %v2609_v59, 0.0 }
 0xce4   :  { %v6768_v56 = vsub.f32 %v6719_v48, %v2594_v12  ;;  %2620 = vadd.xlane.f32.xlu1 %v2619_v57  ;;  %v2616_v54 = vsel %vm77_vm0, %v2608_v62, 0.0 }
 0xce5   :  { %2617 = vadd.xlane.f32.xlu0 %v2616_v54  ;;  %v2611_v63 = vmul.f32 %v6764_v25, %v6764_v25 }
 0xce6   :  { %v2610_v46 = vmul.f32 %v6768_v56, %v6768_v56 }
 0xce7   :  { %v2625_v42 = vsel %vm77_vm0, %v2611_v63, 0.0 }
 0xce8   :  { %2626 = vadd.xlane.f32.xlu1 %v2625_v42  ;;  %v2622_v8 = vsel %vm77_vm0, %v2610_v46, 0.0 }
 0xce9   :  { %2623 = vadd.xlane.f32.xlu0 %v2622_v8 }
 0xcec   :  { %v2585_v39 = vpop.xlane.xlu1 %2584 }
 0xced   :  { %v2597_v13 = vmul.f32 0.03125, %v2585_v39  ;;  %v2582_v23 = vpop.xlane.xlu0 %2581 }
 0xcee   :  { %v2596_v38 = vmul.f32 0.03125, %v2582_v23 }
 0xcef   :  { %v6778_v5 = vsub.f32 %v6730_v37, %v2597_v13 }
 0xcf0   :  { %v6781_v15 = vsub.f32 %v6734_v3, %v2596_v38  ;;  %v2591_v16 = vpop.xlane.xlu1 %2590 }
 0xcf1   :  { %v2599_v41 = vmul.f32 0.03125, %v2591_v16  ;;  %v2588_v26 = vpop.xlane.xlu0 %2587  ;;  %v2613_v33 = vmul.f32 %v6778_v5, %v6778_v5 }
 0xcf2   :  { %v2598_v30 = vmul.f32 0.03125, %v2588_v26  ;;  %v2612_v35 = vmul.f32 %v6781_v15, %v6781_v15 }
 0xcf3   :  { %v6788_v49 = vsub.f32 %v6744_v36, %v2599_v41  ;;  %v2631_v52 = vsel %vm77_vm0, %v2613_v33, 0.0 }
 0xcf4   :  { %v6792_v1 = vsub.f32 %v6747_v18, %v2598_v30  ;;  %2632 = vadd.xlane.f32.xlu1 %v2631_v52  ;;  %v2628_v6 = vsel %vm77_vm0, %v2612_v35, 0.0 }
 0xcf5   :  { %2629 = vadd.xlane.f32.xlu0 %v2628_v6  ;;  %v2615_v32 = vmul.f32 %v6788_v49, %v6788_v49 }
 0xcf6   :  { %v2614_v47 = vmul.f32 %v6792_v1, %v6792_v1 }
 0xcf7   :  { %v2637_v22 = vsel %vm77_vm0, %v2615_v32, 0.0 }
 0xcf8   :  { %2638 = vadd.xlane.f32.xlu1 %v2637_v22  ;;  %v2634_v0 = vsel %vm77_vm0, %v2614_v47, 0.0 }
 0xcf9   :  { %2635 = vadd.xlane.f32.xlu0 %v2634_v0 }
 0xd71   :  { %v2621_v20 = vpop.xlane.xlu1 %2620 }
 0xd72   :  { %v2641_v11 = vmul.f32 0.03125, %v2621_v20  ;;  %v2618_v60 = vpop.xlane.xlu0 %2617 }
 0xd73   :  { %v2640_v55 = vmul.f32 0.03125, %v2618_v60 }
 0xd74   :  { %4898 = vrsqrt.f32 %v2641_v11  ;;  %vm2657_vm2 = vcmp.eq.f32.partialorder %v2641_v11, inf  ;;  %vm2659_vm3 = vcmp.eq.f32.partialorder %v2641_v11, 0.0  ;;  %v2660_v29 = vand.u32 2147483648, %v2641_v11 }
 0xd75   :  { %4900 = vrsqrt.f32 %v2640_v55  ;;  %v2627_v10 = vpop.xlane.xlu1 %2626  ;;  %vm2650_vm4 = vcmp.eq.f32.partialorder %v2640_v55, inf  ;;  %vm2652_vm5 = vcmp.eq.f32.partialorder %v2640_v55, 0.0  ;;  %v2653_v50 = vand.u32 2147483648, %v2640_v55 }
 0xd76   :  { %v2643_v14 = vmul.f32 0.03125, %v2627_v10  ;;  %v2624_v61 = vpop.xlane.xlu0 %2623  ;;  %v3836_v10 = vld [vmem:[%s7214_s7 + $0x1] ss:$0 sm:$0xff] }
 0xd77   :  { %v2642_v7 = vmul.f32 0.03125, %v2624_v61 }
 0xd78   :  { %4902 = vrsqrt.f32 %v2643_v14  ;;  %vm2671_vm6 = vcmp.eq.f32.partialorder %v2643_v14, inf  ;;  %vm2673_vm7 = vcmp.eq.f32.partialorder %v2643_v14, 0.0  ;;  %v2674_v13 = vand.u32 2147483648, %v2643_v14 }
 0xd79   :  { %4904 = vrsqrt.f32 %v2642_v7  ;;  %vm2664_vm9 = vcmp.eq.f32.partialorder %v2642_v7, inf  ;;  %v2667_v16 = vand.u32 2147483648, %v2642_v7  ;;  %vm2666_vm10 = vcmp.eq.f32.partialorder %v2642_v7, 0.0 }
 0xd7e   :  { %v4899_v4 = vpop.eup %4898 }
 0xd7f   :  { %v4901_v24 = vpop.eup %4900  ;;  %v2656_v17 = vmul.f32 %v4899_v4, %v2641_v11 }
 0xd80   :  { %v2649_v34 = vmul.f32 %v4901_v24, %v2640_v55 }
 0xd81   :  { %v2658_v45 = vsel %vm2657_vm2, %v2641_v11, %v2656_v17  ;;  %v2633_v58 = vpop.xlane.xlu1 %2632 }
 0xd82   :  { %v4903_v53 = vpop.eup %4902  ;;  %v2661_v59 = vsel %vm2659_vm3, %v2660_v29, %v2658_v45  ;;  %v2651_v12 = vsel %vm2650_vm4, %v2640_v55, %v2649_v34  ;;  %v2645_v62 = vmul.f32 0.03125, %v2633_v58  ;;  %v2630_v57 = vpop.xlane.xlu0 %2629 }
 0xd83   :  { %v4905_v54 = vpop.eup %4904  ;;  %v2705_v63 = vadd.f32 1e-05, %v2661_v59  ;;  %v2654_v46 = vsel %vm2652_vm5, %v2653_v50, %v2651_v12  ;;  %v2670_v42 = vmul.f32 %v4903_v53, %v2643_v14  ;;  %v2644_v8 = vmul.f32 0.03125, %v2630_v57 }
 0xd84   :  { %v2704_v39 = vadd.f32 1e-05, %v2654_v46  ;;  %v2663_v23 = vmul.f32 %v4905_v54, %v2642_v7  ;;  %4906 = vrsqrt.f32 %v2645_v62  ;;  %vm2685_vm11 = vcmp.eq.f32.partialorder %v2645_v62, inf }
 0xd85   :  { %4908 = vrcp.f32 %v2705_v63  ;;  %v2672_v38 = vsel %vm2671_vm6, %v2643_v14, %v2670_v42  ;;  %v2639_v41 = vpop.xlane.xlu1 %2638  ;;  %v2688_v27 = vand.u32 2147483648, %v2645_v62  ;;  %vm2687_vm12 = vcmp.eq.f32.partialorder %v2645_v62, 0.0 }
 0xd86   :  { %4910 = vrcp.f32 %v2704_v39  ;;  %v2675_v26 = vsel %vm2673_vm7, %v2674_v13, %v2672_v38  ;;  %v2665_v33 = vsel %vm2664_vm9, %v2642_v7, %v2663_v23  ;;  %v2636_v30 = vpop.xlane.xlu0 %2635  ;;  %v2647_v32 = vmul.f32 0.03125, %v2639_v41 }
 0xd87   :  { %v2707_v35 = vadd.f32 1e-05, %v2675_v26  ;;  %v2668_v52 = vsel %vm2666_vm10, %v2667_v16, %v2665_v33  ;;  %4912 = vrsqrt.f32 %v2644_v8  ;;  %v2646_v47 = vmul.f32 0.03125, %v2636_v30 }
 0xd88   :  { %v2706_v6 = vadd.f32 1e-05, %v2668_v52  ;;  %vm2678_vm13 = vcmp.eq.f32.partialorder %v2644_v8, inf  ;;  %v2681_v4 = vand.u32 2147483648, %v2644_v8  ;;  %vm2680_vm14 = vcmp.eq.f32.partialorder %v2644_v8, 0.0 }
 0xd89   :  { %4914 = vrcp.f32 %v2707_v35  ;;  %vm2699_vm15 = vcmp.eq.f32.partialorder %v2647_v32, inf  ;;  %vm2701_vm1 = vcmp.eq.f32.partialorder %v2647_v32, 0.0  ;;  %v2702_v57 = vand.u32 2147483648, %v2647_v32 }
 0xd8a   :  { %4916 = vrcp.f32 %v2706_v6  ;;  %vm2692_vm2 = vcmp.eq.f32.partialorder %v2646_v47, inf  ;;  %v2695_v46 = vand.u32 2147483648, %v2646_v47  ;;  %vm2694_vm3 = vcmp.eq.f32.partialorder %v2646_v47, 0.0 }
 0xd8b   :  { %4918 = vrsqrt.f32 %v2647_v32 }
 0xd8c   :  { %4920 = vrsqrt.f32 %v2646_v47 }
 0xd8e   :  { %v4907_v22 = vpop.eup %4906 }
 0xd8f   :  { %v4909_v0 = vpop.eup %4908  ;;  %v2684_v31 = vmul.f32 %v4907_v22, %v2645_v62 }
 0xd90   :  { %v4911_v9 = vpop.eup %4910  ;;  %v2721_v2 = vmul.f32 %v4909_v0, %v6754_v43 }
 0xd91   :  { %v4913_v21 = vpop.eup %4912  ;;  %v2686_v20 = vsel %vm2685_vm11, %v2645_v62, %v2684_v31  ;;  %v2720_v11 = vmul.f32 %v4911_v9, %v6757_v19 }
 0xd92   :  { %v2689_v60 = vsel %vm2687_vm12, %v2688_v27, %v2686_v20  ;;  %v2677_v55 = vmul.f32 %v4913_v21, %v2644_v8  ;;  %v2735_v14 = vmul.f32 %v6818_v28, %v2721_v2  ;;  %v3862_v2 = vld [vmem:[%s7217_s10 + $0x58] sm:$0xff]  ;;  %v3863_v20 = vld [vmem:[%s7217_s10 + $0x60] sm:$0xff] }
 0xd93   :  { %v4915_v61 = vpop.eup %4914  ;;  %v2709_v7 = vadd.f32 1e-05, %v2689_v60  ;;  %v2734_v24 = vmul.f32 %v6818_v28, %v2720_v11  ;;  %v3864_v11 = vld [vmem:[%s7217_s10 + $0x68] sm:$0xff] }
 0xd94   :  { %v4917_v43 = vpop.eup %4916  ;;  %v2679_v17 = vsel %vm2678_vm13, %v2644_v8, %v2677_v55  ;;  %v2723_v19 = vmul.f32 %v4915_v61, %v6764_v25  ;;  %v2749_v12 = vadd.f32 %v3836_v10, %v2735_v14  ;;  %v4623_v60 = vpack.c.bf16 %v3864_v11, %v3863_v20  ;;  %v3865_v55 = vld [vmem:[%s7217_s10 + $0x70] sm:$0xff]  ;;  %v3842_v61 = vld [vmem:[%s7216_s9 + $0x1] ss:$0 sm:$0xff] }
 0xd95   :  { %v4919_v29 = vpop.eup %4918  ;;  %4922 = vrcp.f32 %v2709_v7  ;;  %v2682_v34 = vsel %vm2680_vm14, %v2681_v4, %v2679_v17  ;;  %v2748_v45 = vadd.f32 %v3836_v10, %v2734_v24  ;;  %v2722_v50 = vmul.f32 %v4917_v43, %v6768_v56 }
 0xd96   :  { %v4921_v58 = vpop.eup %4920  ;;  %v2708_v53 = vadd.f32 1e-05, %v2682_v34  ;;  %v2698_v59 = vmul.f32 %v4919_v29, %v2647_v32  ;;  %v2737_v62 = vmul.f32 %v6818_v28, %v2723_v19 }
 0xd97   :  { %v2691_v54 = vmul.f32 %v4921_v58, %v2646_v47  ;;  %4363 = vmatprep.mubr.msk.f32.mxu1 %vm77_vm0, %v2748_v45  ;;  %v2736_v63 = vmul.f32 %v6818_v28, %v2722_v50 }
 0xd98   :  { %4924 = vrcp.f32 %v2708_v53  ;;  %v2700_v25 = vsel %vm2699_vm15, %v2647_v32, %v2698_v59  ;;  %4364 = vmatmul.mubr.msk.f32.vlgmr.msra.gmra.mrb[48].mxu1 %vm77_vm0, %v2749_v12  ;;  %v2751_v23 = vadd.f32 %v3836_v10, %v2737_v62 }
 0xd99   :  { %v2703_v56 = vsel %vm2701_vm1, %v2702_v57, %v2700_v25  ;;  %v2693_v42 = vsel %vm2692_vm2, %v2646_v47, %v2691_v54  ;;  %v2750_v8 = vadd.f32 %v3836_v10, %v2736_v63 }
 0xd9a   :  { %v2711_v39 = vadd.f32 1e-05, %v2703_v56  ;;  %v2696_v13 = vsel %vm2694_vm3, %v2695_v46, %v2693_v42 }
 0xd9b   :  { %v2710_v38 = vadd.f32 1e-05, %v2696_v13  ;;  %4366 = vmatprep.mubr.msk.f32.mxu1 %vm77_vm0, %v2750_v8 }
 0xd9c   :  { %4926 = vrcp.f32 %v2711_v39  ;;  %4367 = vmatmul.mubr.msk.f32.gmra.mrb[50].mxu1 %vm77_vm0, %v2751_v23 }
 0xd9d   :  { %4928 = vrcp.f32 %v2710_v38 }
 0xd9f   :  { %v4923_v16 = vpop.eup %4922 }
 0xda0   :  { %v2725_v41 = vmul.f32 %v4923_v16, %v6778_v5 }
 0xda2   :  { %v4925_v26 = vpop.eup %4924  ;;  %v2739_v30 = vmul.f32 %v6818_v28, %v2725_v41 }
 0xda3   :  { %v2724_v33 = vmul.f32 %v4925_v26, %v6781_v15 }
 0xda4   :  { %v2753_v22 = vadd.f32 %v3836_v10, %v2739_v30 }
 0xda5   :  { %v2738_v35 = vmul.f32 %v6818_v28, %v2724_v33 }
 0xda6   :  { %v4927_v52 = vpop.eup %4926 }
 0xda7   :  { %v4929_v6 = vpop.eup %4928  ;;  %v2752_v32 = vadd.f32 %v3836_v10, %v2738_v35  ;;  %v2727_v47 = vmul.f32 %v4927_v52, %v6788_v49  ;;  %v3859_v49 = vld [vmem:[%s7217_s10 + $0x40] sm:$0xff] }
 0xda8   :  { %v2726_v0 = vmul.f32 %v4929_v6, %v6792_v1  ;;  %v3860_v1 = vld [vmem:[%s7217_s10 + $0x48] sm:$0xff] }
 0xda9   :  { %4369 = vmatprep.mubr.msk.f32.mxu1 %vm77_vm0, %v2752_v32  ;;  %v2741_v31 = vmul.f32 %v6818_v28, %v2727_v47  ;;  %v4615_v27 = vpack.c.bf16 %v3860_v1, %v3859_v49 }
 0xdaa   :  { %4370 = vmatmul.mubr.msk.f32.gmra.mrb[52].mxu1 %vm77_vm0, %v2753_v22  ;;  %v2740_v5 = vmul.f32 %v6818_v28, %v2726_v0  ;;  %v3861_v28 = vld [vmem:[%s7217_s10 + $0x50] sm:$0xff] }
 0xdab   :  { %v2755_v9 = vadd.f32 %v3836_v10, %v2741_v31  ;;  %4616 = vmatprep.subr.bf16.mxu0 %v4615_v27  ;;  %v4619_v21 = vpack.c.bf16 %v3862_v2, %v3861_v28 }
 0xdac   :  { %v2754_v15 = vadd.f32 %v3836_v10, %v2740_v5  ;;  %4618 = vmatpush3.bf16.msra.mxu0 %v4615_v27  ;;  %v3866_v10 = vld [vmem:[%s7217_s10 + $0x78] sm:$0xff] }
 0xdad   :  { %4620 = vmatprep.subr.bf16.mxu0 %v4619_v21  ;;  %v4627_v14 = vpack.c.bf16 %v3866_v10, %v3865_v55 }
 0xdae   :  { %4372 = vmatprep.mubr.msk.f32.mxu1 %vm77_vm0, %v2754_v15 }
 0xdaf   :  { %4373 = vmatmul.mubr.msk.f32.gmra.mrb[54].mxu1 %vm77_vm0, %v2755_v9 }
 0xdb0   :  { %4622 = vmatpush3.bf16.msra.mxu0 %v4619_v21 }
 0xdb1   :  { %4624 = vmatprep.subr.bf16.mxu0 %v4623_v60 }
 0xdb4   :  { %4626 = vmatpush3.bf16.msra.mxu0 %v4623_v60 }
 0xdb5   :  { %4628 = vmatprep.subr.bf16.mxu0 %v4627_v14 }
 0xdb8   :  { %4630 = vmatpush3.bf16.msra.mxu0 %v4627_v14 }
 0xe6b   :  { %v4365_v7 = vpop.f32.mrb[48].mxu1 }
 0xe6c   :  { %v6875_v4 = vadd.f32 %v4365_v7, %v3842_v61  ;;  %v2859_v24 = vpop.f32.mrb[49].mxu1 }
 0xe6d   :  { %v6877_v43 = vadd.f32 %v3842_v61, %v2859_v24 }
 0xe6e   :  { %v6880_v17 = vmul.f32 0.70710677, %v6875_v4 }
 0xe6f   :  { %v6883_v19 = vmul.f32 0.70710677, %v6877_v43  ;;  %v4368_v29 = vpop.f32.mrb[50].mxu1 }
 0xe70   :  { %v6886_v34 = vand.u32 2147483647, %v6880_v17  ;;  %v6888_v45 = vadd.f32 %v4368_v29, %v3842_v61  ;;  %v2869_v50 = vpop.f32.mrb[51].mxu1  ;;  %vm3147_vm4 = vcmp.ge.f32.partialorder %v6880_v17, 0.0 }
 0xe71   :  { %v6891_v58 = vand.u32 2147483647, %v6883_v19  ;;  %v6893_v53 = vadd.f32 %v3842_v61, %v2869_v50  ;;  %vm3146_vm5 = vcmp.ge.f32.partialorder %v6883_v19, 0.0 }
 0xe72   :  { %v2923_v59 = vmul.f32 0.5, %v6886_v34  ;;  %v6897_v12 = vmul.f32 0.70710677, %v6888_v45  ;;  %v2901_v19 = vmul.f32 0.5, %v6888_v45 }
 0xe73   :  { %v2922_v62 = vmul.f32 0.5, %v6891_v58  ;;  %v6901_v57 = vmul.f32 0.70710677, %v6893_v53 }
 0xe74   :  { %v2931_v54 = vadd.f32 1.0, %v2923_v59  ;;  %v6904_v63 = vand.u32 2147483647, %v6897_v12  ;;  %vm3149_vm6 = vcmp.ge.f32.partialorder %v6897_v12, 0.0 }
 0xe75   :  { %v2930_v25 = vadd.f32 1.0, %v2922_v62  ;;  %v6907_v46 = vand.u32 2147483647, %v6901_v57  ;;  %vm3148_vm7 = vcmp.ge.f32.partialorder %v6901_v57, 0.0 }
 0xe76   :  { %4930 = vrcp.f32 %v2931_v54  ;;  %v2925_v56 = vmul.f32 0.5, %v6904_v63 }
 0xe77   :  { %4932 = vrcp.f32 %v2930_v25  ;;  %v2924_v42 = vmul.f32 0.5, %v6907_v46 }
 0xe78   :  { %v2933_v8 = vadd.f32 1.0, %v2925_v56 }
 0xe79   :  { %v2932_v39 = vadd.f32 1.0, %v2924_v42 }
 0xe7a   :  { %4934 = vrcp.f32 %v2933_v8 }
 0xe7b   :  { %4936 = vrcp.f32 %v2932_v39 }
 0xe7d   :  { %v4371_v13 = vpop.f32.mrb[52].mxu1 }
 0xe7e   :  { %v6911_v23 = vadd.f32 %v4371_v13, %v3842_v61  ;;  %v2879_v38 = vpop.f32.mrb[53].mxu1 }
 0xe7f   :  { %v6913_v16 = vadd.f32 %v3842_v61, %v2879_v38 }
 0xe80   :  { %v6915_v41 = vpop.eup %4930  ;;  %v6918_v26 = vmul.f32 0.70710677, %v6911_v23 }
 0xe81   :  { %v6920_v33 = vpop.eup %4932  ;;  %v2955_v30 = vmul.f32 0.17087276, %v6915_v41  ;;  %v6924_v35 = vmul.f32 0.70710677, %v6913_v16 }
 0xe82   :  { %v2954_v52 = vmul.f32 0.17087276, %v6920_v33  ;;  %v6928_v6 = vand.u32 2147483647, %v6918_v26  ;;  %v4374_v32 = vpop.f32.mrb[54].mxu1  ;;  %vm3151_vm9 = vcmp.ge.f32.partialorder %v6918_v26, 0.0 }
 0xe83   :  { %v2963_v47 = vadd.f32 -0.82215226, %v2955_v30  ;;  %v6931_v22 = vand.u32 2147483647, %v6924_v35  ;;  %v2889_v0 = vpop.f32.mrb[55].mxu1  ;;  %v6941_v28 = vadd.f32 %v4374_v32, %v3842_v61  ;;  %vm3150_vm10 = vcmp.ge.f32.partialorder %v6924_v35, 0.0 }
 0xe84   :  { %v6933_v31 = vpop.eup %4934  ;;  %v2962_v5 = vadd.f32 -0.82215226, %v2954_v52  ;;  %v2927_v15 = vmul.f32 0.5, %v6928_v6  ;;  %v6945_v11 = vadd.f32 %v3842_v61, %v2889_v0 }
 0xe85   :  { %v6936_v9 = vpop.eup %4936  ;;  %v2971_v49 = vmul.f32 %v6915_v41, %v2963_v47  ;;  %v2957_v1 = vmul.f32 0.17087276, %v6933_v31  ;;  %v2926_v27 = vmul.f32 0.5, %v6931_v22  ;;  %v6950_v50 = vmul.f32 0.70710677, %v6941_v28 }
 0xe86   :  { %v2970_v2 = vmul.f32 %v6920_v33, %v2962_v5  ;;  %v2956_v21 = vmul.f32 0.17087276, %v6936_v9  ;;  %v2935_v20 = vadd.f32 1.0, %v2927_v15  ;;  %v6955_v61 = vmul.f32 0.70710677, %v6945_v11 }
 0xe87   :  { %v2979_v60 = vadd.f32 1.4885159, %v2971_v49  ;;  %v2965_v55 = vadd.f32 -0.82215226, %v2957_v1  ;;  %v2934_v10 = vadd.f32 1.0, %v2926_v27  ;;  %vm3153_vm11 = vcmp.ge.f32.partialorder %v6950_v50, 0.0 }
 0xe88   :  { %v2978_v14 = vadd.f32 1.4885159, %v2970_v2  ;;  %v2964_v7 = vadd.f32 -0.82215226, %v2956_v21  ;;  %4938 = vrcp.f32 %v2935_v20  ;;  %v6958_v56 = vand.u32 2147483647, %v6950_v50 }
 0xe89   :  { %v2987_v24 = vmul.f32 %v6915_v41, %v2979_v60  ;;  %v2973_v29 = vmul.f32 %v6933_v31, %v2965_v55  ;;  %4940 = vrcp.f32 %v2934_v10  ;;  %v6966_v32 = vand.u32 2147483647, %v6955_v61 }
 0xe8a   :  { %v2986_v59 = vmul.f32 %v6920_v33, %v2978_v14  ;;  %v2972_v62 = vmul.f32 %v6936_v9, %v2964_v7  ;;  %v2929_v38 = vmul.f32 0.5, %v6958_v56  ;;  %v3099_v20 = vsub.f32 0.0, %v6886_v34 }
 0xe8b   :  { %v2995_v54 = vadd.f32 -1.135204, %v2987_v24  ;;  %v2981_v25 = vadd.f32 1.4885159, %v2973_v29  ;;  %v2928_v1 = vmul.f32 0.5, %v6966_v32  ;;  %v3104_v57 = vsub.f32 0.0, %v6966_v32 }
 0xe8c   :  { %v2994_v42 = vadd.f32 -1.135204, %v2986_v59  ;;  %v2980_v8 = vadd.f32 1.4885159, %v2972_v62  ;;  %v2937_v5 = vadd.f32 1.0, %v2929_v38  ;;  %vm3152_vm12 = vcmp.ge.f32.partialorder %v6955_v61, 0.0 }
 0xe8d   :  { %v3003_v39 = vmul.f32 %v6915_v41, %v2995_v54  ;;  %v2989_v13 = vmul.f32 %v6933_v31, %v2981_v25  ;;  %v2936_v10 = vadd.f32 1.0, %v2928_v1 }
 0xe8e   :  { %v3002_v30 = vmul.f32 %v6920_v33, %v2994_v42  ;;  %v2988_v52 = vmul.f32 %v6936_v9, %v2980_v8  ;;  %4942 = vrcp.f32 %v2937_v5 }
 0xe8f   :  { %v3011_v47 = vadd.f32 0.27886808, %v3003_v39  ;;  %v2997_v0 = vadd.f32 -1.135204, %v2989_v13  ;;  %4944 = vrcp.f32 %v2936_v10  ;;  %v3098_v13 = vsub.f32 0.0, %v6891_v58 }
 0xe90   :  { %v3010_v15 = vadd.f32 0.27886808, %v3002_v30  ;;  %v2996_v49 = vadd.f32 -1.135204, %v2988_v52 }
 0xe91   :  { %v3019_v27 = vmul.f32 %v6915_v41, %v3011_v47  ;;  %v3005_v2 = vmul.f32 %v6933_v31, %v2997_v0  ;;  %v3101_v0 = vsub.f32 0.0, %v6904_v63 }
 0xe92   :  { %v6971_v21 = vpop.eup %4938  ;;  %v3018_v60 = vmul.f32 %v6920_v33, %v3010_v15  ;;  %v3004_v55 = vmul.f32 %v6936_v9, %v2996_v49  ;;  %v3107_v15 = vmul.f32 %v3099_v20, %v6886_v34 }
 0xe93   :  { %v6976_v14 = vpop.eup %4940  ;;  %v3027_v7 = vadd.f32 -0.18628806, %v3019_v27  ;;  %v3013_v24 = vadd.f32 0.27886808, %v3005_v2  ;;  %v2959_v29 = vmul.f32 0.17087276, %v6971_v21 }
 0xe94   :  { %v3026_v59 = vadd.f32 -0.18628806, %v3018_v60  ;;  %v3012_v62 = vadd.f32 0.27886808, %v3004_v55  ;;  %v2958_v54 = vmul.f32 0.17087276, %v6976_v14 }
 0xe95   :  { %v3035_v25 = vmul.f32 %v6915_v41, %v3027_v7  ;;  %v3021_v42 = vmul.f32 %v6933_v31, %v3013_v24  ;;  %v2967_v8 = vadd.f32 -0.82215226, %v2959_v29  ;;  %v3100_v55 = vsub.f32 0.0, %v6907_v46 }
 0xe96   :  { %v3034_v39 = vmul.f32 %v6920_v33, %v3026_v59  ;;  %v3020_v38 = vmul.f32 %v6936_v9, %v3012_v62  ;;  %v2966_v30 = vadd.f32 -0.82215226, %v2958_v54  ;;  %v3106_v24 = vmul.f32 %v3098_v13, %v6891_v58 }
 0xe97   :  { %v3043_v52 = vadd.f32 0.09678418, %v3035_v25  ;;  %v3029_v47 = vadd.f32 -0.18628806, %v3021_v42  ;;  %v2975_v5 = vmul.f32 %v6971_v21, %v2967_v8  ;;  %v3109_v54 = vmul.f32 %v3101_v0, %v6904_v63 }
 0xe98   :  { %v3042_v49 = vadd.f32 0.09678418, %v3034_v39  ;;  %v3028_v1 = vadd.f32 -0.18628806, %v3020_v38  ;;  %v2974_v27 = vmul.f32 %v6976_v14, %v2966_v30  ;;  %v6995_v62 = vpop.eup %4942  ;;  %v3108_v13 = vmul.f32 %v3100_v55, %v6907_v46 }
 0xe99   :  { %v3051_v2 = vmul.f32 %v6915_v41, %v3043_v52  ;;  %v3037_v60 = vmul.f32 %v6933_v31, %v3029_v47  ;;  %v2983_v10 = vadd.f32 1.4885159, %v2975_v5  ;;  %v2961_v38 = vmul.f32 0.17087276, %v6995_v62  ;;  %v7004_v47 = vpop.eup %4944 }
 0xe9a   :  { %v3050_v7 = vmul.f32 %v6920_v33, %v3042_v49  ;;  %v3036_v29 = vmul.f32 %v6936_v9, %v3028_v1  ;;  %v2982_v59 = vadd.f32 1.4885159, %v2974_v27 }
 0xe9b   :  { %v3059_v34 = vadd.f32 0.37409195, %v3051_v2  ;;  %v3045_v20 = vadd.f32 0.09678418, %v3037_v60  ;;  %v2991_v25 = vmul.f32 %v6971_v21, %v2983_v10  ;;  %v2969_v49 = vadd.f32 -0.82215226, %v2961_v38 }
 0xe9c   :  { %v3058_v42 = vadd.f32 0.37409195, %v3050_v7  ;;  %v3044_v8 = vadd.f32 0.09678418, %v3036_v29  ;;  %v2990_v39 = vmul.f32 %v6976_v14, %v2982_v59  ;;  %v2960_v60 = vmul.f32 0.17087276, %v7004_v47 }
 0xe9d   :  { %v3067_v30 = vmul.f32 %v6915_v41, %v3059_v34  ;;  %v3053_v58 = vmul.f32 %v6933_v31, %v3045_v20  ;;  %v2999_v52 = vadd.f32 -1.135204, %v2991_v25  ;;  %v2977_v46 = vmul.f32 %v6995_v62, %v2969_v49 }
 0xe9e   :  { %v3066_v5 = vmul.f32 %v6920_v33, %v3058_v42  ;;  %v3052_v63 = vmul.f32 %v6936_v9, %v3044_v8  ;;  %v2998_v0 = vadd.f32 -1.135204, %v2990_v39  ;;  %v2968_v20 = vadd.f32 -0.82215226, %v2960_v60 }
 0xe9f   :  { %v3075_v1 = vadd.f32 1.0000237, %v3067_v30  ;;  %v3061_v27 = vadd.f32 0.37409195, %v3053_v58  ;;  %v3007_v2 = vmul.f32 %v6971_v21, %v2999_v52  ;;  %v2985_v39 = vadd.f32 1.4885159, %v2977_v46 }
 0xea0   :  { %v3074_v10 = vadd.f32 1.0000237, %v3066_v5  ;;  %v3060_v7 = vadd.f32 0.37409195, %v3052_v63  ;;  %v3006_v29 = vmul.f32 %v6976_v14, %v2998_v0  ;;  %v2976_v52 = vmul.f32 %v7004_v47, %v2968_v20 }
 0xea1   :  { %v3083_v55 = vmul.f32 %v6915_v41, %v3075_v1  ;;  %v3069_v59 = vmul.f32 %v6933_v31, %v3061_v27  ;;  %v3015_v34 = vadd.f32 0.27886808, %v3007_v2  ;;  %v2993_v49 = vmul.f32 %v6995_v62, %v2985_v39 }
 0xea2   :  { %v3082_v25 = vmul.f32 %v6920_v33, %v3074_v10  ;;  %v3068_v42 = vmul.f32 %v6936_v9, %v3060_v7  ;;  %v3014_v8 = vadd.f32 0.27886808, %v3006_v29  ;;  %v2984_v60 = vadd.f32 1.4885159, %v2976_v52 }
 0xea3   :  { %v3091_v38 = vadd.f32 -1.2655122, %v3083_v55  ;;  %v3077_v30 = vadd.f32 1.0000237, %v3069_v59  ;;  %v3023_v58 = vmul.f32 %v6971_v21, %v3015_v34  ;;  %v3001_v46 = vadd.f32 -1.135204, %v2993_v49 }
 0xea4   :  { %v3090_v5 = vadd.f32 -1.2655122, %v3082_v25  ;;  %v3076_v63 = vadd.f32 1.0000237, %v3068_v42  ;;  %v3022_v0 = vmul.f32 %v6976_v14, %v3014_v8  ;;  %v2992_v20 = vmul.f32 %v7004_v47, %v2984_v60 }
 0xea5   :  { %v3115_v1 = vadd.f32 %v3107_v15, %v3091_v38  ;;  %v3085_v27 = vmul.f32 %v6933_v31, %v3077_v30  ;;  %v3031_v2 = vadd.f32 -0.18628806, %v3023_v58  ;;  %v3009_v15 = vmul.f32 %v6995_v62, %v3001_v46 }
 0xea6   :  { %v3114_v10 = vadd.f32 %v3106_v24, %v3090_v5  ;;  %v3084_v7 = vmul.f32 %v6936_v9, %v3076_v63  ;;  %v3030_v29 = vadd.f32 -0.18628806, %v3022_v0  ;;  %v3000_v24 = vadd.f32 -1.135204, %v2992_v20 }
 0xea7   :  { %v3124_v55 = vmul.f32 1.442695, %v3115_v1  ;;  %v3093_v59 = vadd.f32 -1.2655122, %v3085_v27  ;;  %v3039_v34 = vmul.f32 %v6971_v21, %v3031_v2  ;;  %v3017_v52 = vadd.f32 0.27886808, %v3009_v15 }
 0xea8   :  { %v3122_v25 = vmul.f32 1.442695, %v3114_v10  ;;  %v3092_v42 = vadd.f32 -1.2655122, %v3084_v7  ;;  %v3038_v8 = vmul.f32 %v6976_v14, %v3030_v29  ;;  %v3008_v0 = vmul.f32 %v7004_v47, %v3000_v24 }
 0xea9   :  { %4946 = vpow2.f32 %v3124_v55  ;;  %v3117_v39 = vadd.f32 %v3109_v54, %v3093_v59  ;;  %v3047_v38 = vadd.f32 0.09678418, %v3039_v34  ;;  %v3025_v27 = vmul.f32 %v6995_v62, %v3017_v52 }
 0xeaa   :  { %4948 = vpow2.f32 %v3122_v25  ;;  %v3116_v30 = vadd.f32 %v3108_v13, %v3092_v42  ;;  %v3046_v58 = vadd.f32 0.09678418, %v3038_v8  ;;  %v3016_v60 = vadd.f32 0.27886808, %v3008_v0 }
 0xeab   :  { %v3128_v5 = vmul.f32 1.442695, %v3117_v39  ;;  %v3055_v63 = vmul.f32 %v6971_v21, %v3047_v38  ;;  %v3033_v10 = vadd.f32 -0.18628806, %v3025_v27  ;;  %v3103_v7 = vsub.f32 0.0, %v6928_v6 }
 0xeac   :  { %v3126_v49 = vmul.f32 1.442695, %v3116_v30  ;;  %v3054_v1 = vmul.f32 %v6976_v14, %v3046_v58  ;;  %v3024_v29 = vmul.f32 %v7004_v47, %v3016_v60  ;;  %v3102_v55 = vsub.f32 0.0, %v6931_v22 }
 0xead   :  { %4950 = vpow2.f32 %v3128_v5  ;;  %v3063_v2 = vadd.f32 0.37409195, %v3055_v63  ;;  %v3041_v59 = vmul.f32 %v6995_v62, %v3033_v10  ;;  %v2899_v34 = vmul.f32 0.5, %v6875_v4 }
 0xeae   :  { %4952 = vpow2.f32 %v3126_v49  ;;  %v3062_v54 = vadd.f32 0.37409195, %v3054_v1  ;;  %v2898_v20 = vmul.f32 0.5, %v6877_v43  ;;  %v3032_v42 = vadd.f32 -0.18628806, %v3024_v29 }
 0xeaf   :  { %v3071_v13 = vmul.f32 %v6971_v21, %v3063_v2  ;;  %v3049_v15 = vadd.f32 0.09678418, %v3041_v59  ;;  %v3111_v24 = vmul.f32 %v3103_v7, %v6928_v6  ;;  %v3110_v52 = vmul.f32 %v3102_v55, %v6931_v22 }
 0xeb0   :  { %v3070_v46 = vmul.f32 %v6976_v14, %v3062_v54  ;;  %v3040_v30 = vmul.f32 %v7004_v47, %v3032_v42  ;;  %v3105_v49 = vsub.f32 0.0, %v6958_v56 }
 0xeb1   :  { %v3079_v25 = vadd.f32 1.0000237, %v3071_v13  ;;  %v3057_v5 = vmul.f32 %v6995_v62, %v3049_v15 }
 0xeb2   :  { %v3078_v8 = vadd.f32 1.0000237, %v3070_v46  ;;  %v3048_v1 = vadd.f32 0.09678418, %v3040_v30  ;;  %v3113_v45 = vmul.f32 %v3105_v49, %v6958_v56 }
 0xeb3   :  { %v4947_v39 = vpop.eup %4946  ;;  %v3087_v38 = vmul.f32 %v6971_v21, %v3079_v25  ;;  %v3065_v60 = vadd.f32 0.37409195, %v3057_v5 }
 0xeb4   :  { %v4949_v4 = vpop.eup %4948  ;;  %v3139_v43 = vmul.f32 %v4947_v39, %v6915_v41  ;;  %v3086_v58 = vmul.f32 %v6976_v14, %v3078_v8  ;;  %v3056_v7 = vmul.f32 %v7004_v47, %v3048_v1 }
 0xeb5   :  { %v3138_v63 = vmul.f32 %v4949_v4, %v6920_v33  ;;  %v3095_v0 = vadd.f32 -1.2655122, %v3087_v38  ;;  %v3073_v55 = vmul.f32 %v6995_v62, %v3065_v60 }
 0xeb6   :  { %v3155_v6 = vsub.f32 1.0, %v3139_v43  ;;  %v3852_v27 = vadd.f32 -1.0, %v3139_v43  ;;  %v3094_v2 = vadd.f32 -1.2655122, %v3086_v58  ;;  %v3064_v5 = vadd.f32 0.37409195, %v3056_v7 }
 0xeb7   :  { %v4951_v54 = vpop.eup %4950  ;;  %v3154_v41 = vsub.f32 1.0, %v3138_v63  ;;  %v3851_v10 = vadd.f32 -1.0, %v3138_v63  ;;  %v3119_v13 = vadd.f32 %v3111_v24, %v3095_v0  ;;  %v3081_v58 = vadd.f32 1.0000237, %v3073_v55 }
 0xeb8   :  { %v4953_v29 = vpop.eup %4952  ;;  %v3171_v22 = vsel %vm3147_vm4, %v3155_v6, %v3852_v27  ;;  %v3141_v33 = vmul.f32 %v4951_v54, %v6933_v31  ;;  %v3118_v46 = vadd.f32 %v3110_v52, %v3094_v2  ;;  %v2900_v63 = vmul.f32 0.5, %v6893_v53 }
 0xeb9   :  { %v3179_v59 = vadd.f32 1.0, %v3171_v22  ;;  %v3170_v25 = vsel %vm3146_vm5, %v3154_v41, %v3851_v10  ;;  %v3140_v42 = vmul.f32 %v4953_v29, %v6936_v9  ;;  %v3132_v8 = vmul.f32 1.442695, %v3119_v13 }
 0xeba   :  { %v3178_v15 = vadd.f32 1.0, %v3170_v25  ;;  %v3157_v39 = vsub.f32 1.0, %v3141_v33  ;;  %v3854_v38 = vadd.f32 -1.0, %v3141_v33  ;;  %v3130_v24 = vmul.f32 1.442695, %v3118_v46 }
 0xebb   :  { %v3187_v30 = vmul.f32 %v3179_v59, %v2899_v34  ;;  %v3156_v4 = vsub.f32 1.0, %v3140_v42  ;;  %v3853_v17 = vadd.f32 -1.0, %v3140_v42  ;;  %4954 = vpow2.f32 %v3132_v8 }
 0xebc   :  { %v3186_v43 = vmul.f32 %v3178_v15, %v2898_v20  ;;  %v3173_v31 = vsel %vm3149_vm6, %v3157_v39, %v3854_v38  ;;  %4956 = vpow2.f32 %v3130_v24  ;;  %v3089_v34 = vmul.f32 %v6995_v62, %v3081_v58 }
 0xebd   :  { %v3181_v52 = vadd.f32 1.0, %v3173_v31  ;;  %v3172_v9 = vsel %vm3148_vm7, %v3156_v4, %v3853_v17  ;;  %v3072_v12 = vmul.f32 %v7004_v47, %v3064_v5  ;;  %v3112_v10 = vmul.f32 %v3104_v57, %v6966_v32 }
 0xebe   :  { %v3180_v0 = vadd.f32 1.0, %v3172_v9  ;;  %4391 = vmatprep.mubr.msk.f32.mxu0 %vm1559_vm8, %v3186_v43  ;;  %v3097_v6 = vadd.f32 -1.2655122, %v3089_v34  ;;  %v2903_v25 = vmul.f32 0.5, %v6911_v23 }
 0xebf   :  { %v3189_v20 = vmul.f32 %v3181_v52, %v2901_v19  ;;  %4392 = vmatmul.mubr.msk.f32.vlgmr.msra.gmra.mrb[32].mxu0 %vm1559_vm8, %v3187_v30  ;;  %v3080_v27 = vadd.f32 1.0000237, %v3072_v12  ;;  %v2905_v30 = vmul.f32 0.5, %v6941_v28  ;;  %v3876_v28 = vld [vmem:[%s7218_s11 + $0x1] ss:$0 sm:$0xff] }
 0xec0   :  { %v3188_v1 = vmul.f32 %v3180_v0, %v2900_v63  ;;  %v3121_v2 = vadd.f32 %v3113_v45, %v3097_v6 }
 0xec1   :  { %v3088_v53 = vmul.f32 %v7004_v47, %v3080_v27 }
 0xec2   :  { %4394 = vmatprep.mubr.msk.f32.mxu0 %vm1559_vm8, %v3188_v1  ;;  %v3136_v60 = vmul.f32 1.442695, %v3121_v2 }
 0xec3   :  { %4395 = vmatmul.mubr.msk.f32.gmra.mrb[34].mxu0 %vm1559_vm8, %v3189_v20  ;;  %v3096_v41 = vadd.f32 -1.2655122, %v3088_v53 }
 0xec4   :  { %4958 = vpow2.f32 %v3136_v60 }
 0xec5   :  { %v4955_v54 = vpop.eup %4954  ;;  %v3120_v49 = vadd.f32 %v3112_v10, %v3096_v41 }
 0xec6   :  { %v4957_v13 = vpop.eup %4956  ;;  %v3143_v7 = vmul.f32 %v4955_v54, %v6971_v21  ;;  %v2902_v21 = vmul.f32 0.5, %v6913_v16 }
 0xec7   :  { %v3142_v56 = vmul.f32 %v4957_v13, %v6976_v14  ;;  %v3134_v55 = vmul.f32 1.442695, %v3120_v49 }
 0xec8   :  { %v3159_v29 = vsub.f32 1.0, %v3143_v7  ;;  %v3856_v22 = vadd.f32 -1.0, %v3143_v7 }
 0xec9   :  { %v3158_v33 = vsub.f32 1.0, %v3142_v56  ;;  %v3855_v46 = vadd.f32 -1.0, %v3142_v56  ;;  %4960 = vpow2.f32 %v3134_v55 }
 0xeca   :  { %v3175_v59 = vsel %vm3151_vm9, %v3159_v29, %v3856_v22 }
 0xecb   :  { %v3183_v32 = vadd.f32 1.0, %v3175_v59  ;;  %v3174_v42 = vsel %vm3150_vm10, %v3158_v33, %v3855_v46 }
 0xecc   :  { %v3182_v8 = vadd.f32 1.0, %v3174_v42 }
 0xecd   :  { %v3191_v14 = vmul.f32 %v3183_v32, %v2903_v25 }
 0xece   :  { %v3190_v15 = vmul.f32 %v3182_v8, %v2902_v21  ;;  %v4959_v39 = vpop.eup %4958 }
 0xecf   :  { %v3145_v26 = vmul.f32 %v4959_v39, %v6995_v62  ;;  %v2904_v62 = vmul.f32 0.5, %v6945_v11 }
 0xed0   :  { %4397 = vmatprep.mubr.msk.f32.mxu0 %vm1559_vm8, %v3190_v15 }
 0xed1   :  { %4398 = vmatmul.mubr.msk.f32.gmra.mrb[36].mxu0 %vm1559_vm8, %v3191_v14  ;;  %v3161_v38 = vsub.f32 1.0, %v3145_v26  ;;  %v3858_v24 = vadd.f32 -1.0, %v3145_v26 }
 0xed3   :  { %v4961_v23 = vpop.eup %4960  ;;  %v3177_v35 = vsel %vm3153_vm11, %v3161_v38, %v3858_v24 }
 0xed4   :  { %v3185_v4 = vadd.f32 1.0, %v3177_v35  ;;  %v3144_v16 = vmul.f32 %v4961_v23, %v7004_v47 }
 0xed6   :  { %v3193_v17 = vmul.f32 %v3185_v4, %v2905_v30  ;;  %v3160_v43 = vsub.f32 1.0, %v3144_v16  ;;  %v3857_v31 = vadd.f32 -1.0, %v3144_v16 }
 0xed8   :  { %v3176_v58 = vsel %vm3152_vm12, %v3160_v43, %v3857_v31 }
 0xed9   :  { %v3184_v19 = vadd.f32 1.0, %v3176_v58 }
 0xedb   :  { %v3192_v52 = vmul.f32 %v3184_v19, %v2904_v62 }
 0xedd   :  { %4400 = vmatprep.mubr.msk.f32.mxu0 %vm1559_vm8, %v3192_v52 }
 0xede   :  { %4401 = vmatmul.mubr.msk.f32.gmra.mrb[38].mxu0 %vm1559_vm8, %v3193_v17 }
 0xf92   :  { %v4393_v50 = vpop.f32.mrb[32].mxu0 }
 0xf93   :  { %v3333_v47 = vadd.f32 %v4393_v50, %v6702_v51  ;;  %v3293_v9 = vpop.f32.mrb[33].mxu0 }
 0xf94   :  { %v3332_v5 = vadd.f32 %v3293_v9, %v6706_v40 }
 0xf95   :  { %v3349_v61 = vadd.f32 %v3876_v28, %v3333_v47 }
 0xf96   :  { %v3348_v63 = vadd.f32 %v3876_v28, %v3332_v5  ;;  %v4396_v0 = vpop.f32.mrb[34].mxu0 }
 0xf97   :  { %v3335_v11 = vadd.f32 %v4396_v0, %v6716_v44  ;;  %v3303_v34 = vpop.f32.mrb[35].mxu0  ;;  %v3361_v20 = vsel %vm77_vm0, %v3349_v61, 0.0 }
 0xf98   :  { %v3334_v12 = vadd.f32 %v3303_v34, %v6719_v48  ;;  %3362 = vadd.xlane.f32.xlu1 %v3361_v20  ;;  %v3358_v1 = vsel %vm77_vm0, %v3348_v63, 0.0  ;;  %v3546_v34 = vld [vmem:[%s7221_s14] sm:$0xff]  ;;  %v3547_v20 = vld [vmem:[%s7221_s14 + $0x8] sm:$0xff] }
 0xf99   :  { %v3351_v6 = vadd.f32 %v3876_v28, %v3335_v11  ;;  %3359 = vadd.xlane.f32.xlu0 %v3358_v1  ;;  %v3548_v1 = vld [vmem:[%s7221_s14 + $0x10] sm:$0xff] }
 0xf9a   :  { %v3350_v45 = vadd.f32 %v3876_v28, %v3334_v12  ;;  %v4631_v12 = vpack.c.bf16 %v3547_v20, %v3546_v34 }
 0xf9b   :  { %v3367_v51 = vsel %vm77_vm0, %v3351_v6, 0.0 }
 0xf9c   :  { %3368 = vadd.xlane.f32.xlu1 %v3367_v51  ;;  %v3364_v40 = vsel %vm77_vm0, %v3350_v45, 0.0  ;;  %4632 = vmatprep.subr.bf16.mxu1 %v4631_v12 }
 0xf9d   :  { %3365 = vadd.xlane.f32.xlu0 %v3364_v40  ;;  %4634 = vmatpush3.bf16.msra.mxu1 %v4631_v12 }
 0xfa4   :  { %v4399_v27 = vpop.f32.mrb[36].mxu0 }
 0xfa5   :  { %v3337_v44 = vadd.f32 %v4399_v27, %v6730_v37  ;;  %v3313_v57 = vpop.f32.mrb[37].mxu0 }
 0xfa6   :  { %v3336_v2 = vadd.f32 %v3313_v57, %v6734_v3 }
 0xfa7   :  { %v3353_v53 = vadd.f32 %v3876_v28, %v3337_v44 }
 0xfa8   :  { %v3352_v48 = vadd.f32 %v3876_v28, %v3336_v2 }
 0xfa9   :  { %v3373_v60 = vsel %vm77_vm0, %v3353_v53, 0.0 }
 0xfaa   :  { %3374 = vadd.xlane.f32.xlu1 %v3373_v60  ;;  %v3370_v54 = vsel %vm77_vm0, %v3352_v48, 0.0 }
 0xfab   :  { %3371 = vadd.xlane.f32.xlu0 %v3370_v54 }
 0xfb1   :  { %v4402_v41 = vpop.f32.mrb[38].mxu0 }
 0xfb2   :  { %v3339_v10 = vadd.f32 %v4402_v41, %v6744_v36  ;;  %v3323_v13 = vpop.f32.mrb[39].mxu0 }
 0xfb3   :  { %v3338_v7 = vadd.f32 %v3323_v13, %v6747_v18 }
 0xfb4   :  { %v3355_v56 = vadd.f32 %v3876_v28, %v3339_v10 }
 0xfb5   :  { %v3354_v49 = vadd.f32 %v3876_v28, %v3338_v7 }
 0xfb6   :  { %v3379_v37 = vsel %vm77_vm0, %v3355_v56, 0.0 }
 0xfb7   :  { %3380 = vadd.xlane.f32.xlu1 %v3379_v37  ;;  %v3376_v3 = vsel %vm77_vm0, %v3354_v49, 0.0 }
 0xfb8   :  { %3377 = vadd.xlane.f32.xlu0 %v3376_v3 }
0x1025   :  { %v3363_v29 = vpop.xlane.xlu1 %3362 }
0x1026   :  { %v3383_v22 = vmul.f32 0.03125, %v3363_v29  ;;  %v3360_v33 = vpop.xlane.xlu0 %3359 }
0x1027   :  { %v3382_v46 = vmul.f32 0.03125, %v3360_v33 }
0x1028   :  { %v7110_v55 = vsub.f32 %v3349_v61, %v3383_v22 }
0x1029   :  { %v7112_v59 = vsub.f32 %v3348_v63, %v3382_v46  ;;  %v3369_v36 = vpop.xlane.xlu1 %3368 }
0x102a   :  { %v3385_v25 = vmul.f32 0.03125, %v3369_v36  ;;  %v3366_v32 = vpop.xlane.xlu0 %3365  ;;  %v3399_v18 = vmul.f32 %v7110_v55, %v7110_v55 }
0x102b   :  { %v3384_v42 = vmul.f32 0.03125, %v3366_v32  ;;  %v3398_v21 = vmul.f32 %v7112_v59, %v7112_v59 }
0x102c   :  { %v7118_v8 = vsub.f32 %v3351_v6, %v3385_v25  ;;  %v3409_v14 = vsel %vm77_vm0, %v3399_v18, 0.0  ;;  %v3549_v6 = vld [vmem:[%s7221_s14 + $0x18] sm:$0xff] }
0x102d   :  { %v7121_v15 = vsub.f32 %v3350_v45, %v3384_v42  ;;  %3410 = vadd.xlane.f32.xlu1 %v3409_v14  ;;  %v3406_v39 = vsel %vm77_vm0, %v3398_v21, 0.0  ;;  %v4635_v45 = vpack.c.bf16 %v3549_v6, %v3548_v1 }
0x102e   :  { %3407 = vadd.xlane.f32.xlu0 %v3406_v39  ;;  %v3401_v26 = vmul.f32 %v7118_v8, %v7118_v8 }
0x102f   :  { %v3400_v38 = vmul.f32 %v7121_v15, %v7121_v15  ;;  %4636 = vmatprep.subr.bf16.mxu1 %v4635_v45 }
0x1030   :  { %v3415_v24 = vsel %vm77_vm0, %v3401_v26, 0.0  ;;  %4638 = vmatpush3.bf16.msra.mxu1 %v4635_v45 }
0x1031   :  { %3416 = vadd.xlane.f32.xlu1 %v3415_v24  ;;  %v3412_v23 = vsel %vm77_vm0, %v3400_v38, 0.0 }
0x1032   :  { %3413 = vadd.xlane.f32.xlu0 %v3412_v23 }
0x1037   :  { %v3375_v35 = vpop.xlane.xlu1 %3374 }
0x1038   :  { %v3387_v30 = vmul.f32 0.03125, %v3375_v35  ;;  %v3372_v4 = vpop.xlane.xlu0 %3371 }
0x1039   :  { %v3386_v16 = vmul.f32 0.03125, %v3372_v4 }
0x103a   :  { %v7130_v17 = vsub.f32 %v3353_v53, %v3387_v30 }
0x103b   :  { %v7132_v43 = vsub.f32 %v3352_v48, %v3386_v16 }
0x103c   :  { %v3403_v31 = vmul.f32 %v7130_v17, %v7130_v17 }
0x103d   :  { %v3402_v58 = vmul.f32 %v7132_v43, %v7132_v43 }
0x103e   :  { %v3421_v62 = vsel %vm77_vm0, %v3403_v31, 0.0 }
0x103f   :  { %3422 = vadd.xlane.f32.xlu1 %v3421_v62  ;;  %v3418_v19 = vsel %vm77_vm0, %v3402_v58, 0.0  ;;  %v7167_v62 = vld [vmem:[%s7219_s12] ss:$0 sm:$0xff] }
0x1040   :  { %3419 = vadd.xlane.f32.xlu0 %v3418_v19 }
0x1044   :  { %v3381_v52 = vpop.xlane.xlu1 %3380 }
0x1045   :  { %v3389_v50 = vmul.f32 0.03125, %v3381_v52  ;;  %v3378_v28 = vpop.xlane.xlu0 %3377 }
0x1046   :  { %v3388_v47 = vmul.f32 0.03125, %v3378_v28 }
0x1047   :  { %v7140_v9 = vsub.f32 %v3355_v56, %v3389_v50 }
0x1048   :  { %v7142_v5 = vsub.f32 %v3354_v49, %v3388_v47 }
0x1049   :  { %v3405_v61 = vmul.f32 %v7140_v9, %v7140_v9 }
0x104a   :  { %v3404_v63 = vmul.f32 %v7142_v5, %v7142_v5 }
0x104b   :  { %v3427_v0 = vsel %vm77_vm0, %v3405_v61, 0.0 }
0x104c   :  { %3428 = vadd.xlane.f32.xlu1 %v3427_v0  ;;  %v3424_v11 = vsel %vm77_vm0, %v3404_v63, 0.0 }
0x104d   :  { %3425 = vadd.xlane.f32.xlu0 %v3424_v11 }
0x10ba   :  { %v3411_v51 = vpop.xlane.xlu1 %3410 }
0x10bb   :  { %v3431_v40 = vmul.f32 0.03125, %v3411_v51  ;;  %v3408_v27 = vpop.xlane.xlu0 %3407  ;;  %v3878_v51 = vld [vmem:[%s7220_s13] ss:$0 sm:$0xff]  ;;  %s5042_s13 = smov [#allocation2]  }
0x10bc   :  { %v3430_v44 = vmul.f32 0.03125, %v3408_v27  ;;  %s3692_s4 = sshll.u32 %s5042_s13, 4  ;;  %s3693_s4 = int_to_ptr.vmem [resolvable:$true] %s3692_s4 }
0x10bd   :  { %4962 = vrsqrt.f32 %v3431_v40  ;;  %vm3447_vm8 = vcmp.eq.f32.partialorder %v3431_v40, inf  ;;  %vm3449_vm13 = vcmp.eq.f32.partialorder %v3431_v40, 0.0  ;;  %v3450_v10 = vand.u32 2147483648, %v3431_v40  ;;  %s5018_s28 = scalar_lea.vmem %s3693_s4, 1024  ;;  %p5023_p1 = scmp.lt.s32.totalorder %s3693_s4, %s3693_s4 }
0x10be   :  { %4964 = vrsqrt.f32 %v3430_v44  ;;  %v3417_v57 = vpop.xlane.xlu1 %3416  ;;  %vm3440_vm14 = vcmp.eq.f32.partialorder %v3430_v44, inf  ;;  %vm3442_vm15 = vcmp.eq.f32.partialorder %v3430_v44, 0.0  ;;  %v3443_v56 = vand.u32 2147483648, %v3430_v44  ;;  %p5019_p0 = scmp.ne.s32.totalorder %s3693_s4, %s5018_s28  ;;  %p5024_p2 = scmp.lt.s32.totalorder %s5018_s28, %s5018_s28 }
0x10bf   :  { %v3433_v2 = vmul.f32 0.03125, %v3417_v57  ;;  %v3414_v53 = vpop.xlane.xlu0 %3413 }
0x10c0   :  { %v3432_v48 = vmul.f32 0.03125, %v3414_v53  ;;  %p5025_p3 = por %p5024_p2, %p5023_p1 }
0x10c1   :  { %4966 = vrsqrt.f32 %v3433_v2  ;;  %vm3461_vm1 = vcmp.eq.f32.partialorder %v3433_v2, inf  ;;  %vm3463_vm2 = vcmp.eq.f32.partialorder %v3433_v2, 0.0  ;;  %v3464_v36 = vand.u32 2147483648, %v3433_v2 }
0x10c2   :  { %4968 = vrsqrt.f32 %v3432_v48  ;;  %vm3454_vm3 = vcmp.eq.f32.partialorder %v3432_v48, inf  ;;  %v3457_v39 = vand.u32 2147483648, %v3432_v48  ;;  %vm3456_vm4 = vcmp.eq.f32.partialorder %v3432_v48, 0.0  ;;  %p5026_p4 = pnand %p5025_p3, %p5019_p0 }
0x10c7   :  { %v4963_v60 = vpop.eup %4962 }
0x10c8   :  { %v4965_v54 = vpop.eup %4964  ;;  %v3446_v41 = vmul.f32 %v4963_v60, %v3431_v40 }
0x10c9   :  { %v3439_v13 = vmul.f32 %v4965_v54, %v3430_v44 }
0x10ca   :  { %v3448_v7 = vsel %vm3447_vm8, %v3431_v40, %v3446_v41 }
0x10cb   :  { %v4967_v49 = vpop.eup %4966  ;;  %v3451_v37 = vsel %vm3449_vm13, %v3450_v10, %v3448_v7  ;;  %v3441_v3 = vsel %vm3440_vm14, %v3430_v44, %v3439_v13 }
0x10cc   :  { %v4969_v29 = vpop.eup %4968  ;;  %v3495_v22 = vadd.f32 1e-05, %v3451_v37  ;;  %v3444_v33 = vsel %vm3442_vm15, %v3443_v56, %v3441_v3  ;;  %v3460_v46 = vmul.f32 %v4967_v49, %v3433_v2  ;;  %v3423_v25 = vpop.xlane.xlu1 %3422 }
0x10cd   :  { %v3494_v32 = vadd.f32 1e-05, %v3444_v33  ;;  %v3453_v18 = vmul.f32 %v4969_v29, %v3432_v48  ;;  %v3435_v42 = vmul.f32 0.03125, %v3423_v25  ;;  %v3420_v21 = vpop.xlane.xlu0 %3419 }
0x10ce   :  { %4970 = vrcp.f32 %v3495_v22  ;;  %v3462_v14 = vsel %vm3461_vm1, %v3433_v2, %v3460_v46  ;;  %v3434_v26 = vmul.f32 0.03125, %v3420_v21 }
0x10cf   :  { %4972 = vrcp.f32 %v3494_v32  ;;  %v3465_v38 = vsel %vm3463_vm2, %v3464_v36, %v3462_v14  ;;  %v3455_v24 = vsel %vm3454_vm3, %v3432_v48, %v3453_v18  ;;  %vm3475_vm5 = vcmp.eq.f32.partialorder %v3435_v42, inf }
0x10d0   :  { %v3497_v23 = vadd.f32 1e-05, %v3465_v38  ;;  %v3458_v35 = vsel %vm3456_vm4, %v3457_v39, %v3455_v24  ;;  %4974 = vrsqrt.f32 %v3435_v42  ;;  %vm3477_vm6 = vcmp.eq.f32.partialorder %v3435_v42, 0.0 }
0x10d1   :  { %v3496_v30 = vadd.f32 1e-05, %v3458_v35  ;;  %4976 = vrsqrt.f32 %v3434_v26  ;;  %v3478_v28 = vand.u32 2147483648, %v3435_v42  ;;  %vm3468_vm7 = vcmp.eq.f32.partialorder %v3434_v26, inf }
0x10d2   :  { %4978 = vrcp.f32 %v3497_v23  ;;  %vm3470_vm9 = vcmp.eq.f32.partialorder %v3434_v26, 0.0  ;;  %v3471_v0 = vand.u32 2147483648, %v3434_v26 }
0x10d3   :  { %4980 = vrcp.f32 %v3496_v30 }
0x10d8   :  { %v4971_v4 = vpop.eup %4970 }
0x10d9   :  { %v4973_v16 = vpop.eup %4972  ;;  %v3511_v31 = vmul.f32 %v4971_v4, %v7110_v55  ;;  %v3429_v47 = vpop.xlane.xlu1 %3428 }
0x10da   :  { %v4975_v58 = vpop.eup %4974  ;;  %v3510_v19 = vmul.f32 %v4973_v16, %v7112_v59  ;;  %v3437_v55 = vmul.f32 0.03125, %v3429_v47  ;;  %v3426_v11 = vpop.xlane.xlu0 %3425 }
0x10db   :  { %v4977_v52 = vpop.eup %4976  ;;  %v3474_v50 = vmul.f32 %v4975_v58, %v3435_v42  ;;  %v3436_v20 = vmul.f32 0.03125, %v3426_v11  ;;  %v3525_v1 = vmul.f32 %v7167_v62, %v3511_v31 }
0x10dc   :  { %v4979_v61 = vpop.eup %4978  ;;  %v3467_v63 = vmul.f32 %v4977_v52, %v3434_v26  ;;  %v3524_v12 = vmul.f32 %v7167_v62, %v3510_v19  ;;  %4982 = vrsqrt.f32 %v3437_v55  ;;  %vm3489_vm10 = vcmp.eq.f32.partialorder %v3437_v55, inf }
0x10dd   :  { %v3476_v34 = vsel %vm3475_vm5, %v3435_v42, %v3474_v50  ;;  %v4981_v6 = vpop.eup %4980  ;;  %v3513_v40 = vmul.f32 %v4979_v61, %v7118_v8  ;;  %4984 = vrsqrt.f32 %v3436_v20  ;;  %v3539_v48 = vadd.f32 %v3878_v51, %v3525_v1 }
0x10de   :  { %v3479_v59 = vsel %vm3477_vm6, %v3478_v28, %v3476_v34  ;;  %v3469_v45 = vsel %vm3468_vm7, %v3434_v26, %v3467_v63  ;;  %v3538_v2 = vadd.f32 %v3878_v51, %v3524_v12  ;;  %v3512_v53 = vmul.f32 %v4981_v6, %v7121_v15 }
0x10df   :  { %v3499_v27 = vadd.f32 1e-05, %v3479_v59  ;;  %v3472_v44 = vsel %vm3470_vm9, %v3471_v0, %v3469_v45  ;;  %v3527_v60 = vmul.f32 %v7167_v62, %v3513_v40  ;;  %v3492_v15 = vand.u32 2147483648, %v3437_v55 }
0x10e0   :  { %v3498_v57 = vadd.f32 1e-05, %v3472_v44  ;;  %4411 = vmatprep.mubr.msk.f32.mxu1 %vm77_vm0, %v3538_v2  ;;  %v3526_v54 = vmul.f32 %v7167_v62, %v3512_v53  ;;  %vm3491_vm11 = vcmp.eq.f32.partialorder %v3437_v55, 0.0  ;;  %vm3482_vm12 = vcmp.eq.f32.partialorder %v3436_v20, inf }
0x10e1   :  { %4986 = vrcp.f32 %v3499_v27  ;;  %4412 = vmatmul.mubr.msk.f32.vlgmr.msra.gmra.mrb[56].mxu1 %vm77_vm0, %v3539_v48  ;;  %v3541_v8 = vadd.f32 %v3878_v51, %v3527_v60  ;;  %v3485_v22 = vand.u32 2147483648, %v3436_v20  ;;  %vm3484_vm8 = vcmp.eq.f32.partialorder %v3436_v20, 0.0 }
0x10e2   :  { %4988 = vrcp.f32 %v3498_v57  ;;  %v3540_v41 = vadd.f32 %v3878_v51, %v3526_v54 }
0x10e4   :  { %4414 = vmatprep.mubr.msk.f32.mxu1 %vm77_vm0, %v3540_v41 }
0x10e5   :  { %4415 = vmatmul.mubr.msk.f32.gmra.mrb[58].mxu1 %vm77_vm0, %v3541_v8 }
0x10e6   :  { %v4983_v10 = vpop.eup %4982 }
0x10e7   :  { %v3488_v13 = vmul.f32 %v4983_v10, %v3437_v55  ;;  %v4985_v7 = vpop.eup %4984 }
0x10e8   :  { %v3481_v37 = vmul.f32 %v4985_v7, %v3436_v20 }
0x10e9   :  { %v3490_v49 = vsel %vm3489_vm10, %v3437_v55, %v3488_v13 }
0x10ea   :  { %v3493_v29 = vsel %vm3491_vm11, %v3492_v15, %v3490_v49  ;;  %v3483_v36 = vsel %vm3482_vm12, %v3436_v20, %v3481_v37 }
0x10eb   :  { %v4987_v56 = vpop.eup %4986  ;;  %v3501_v46 = vadd.f32 1e-05, %v3493_v29  ;;  %v3486_v32 = vsel %vm3484_vm8, %v3485_v22, %v3483_v36 }
0x10ec   :  { %v4989_v3 = vpop.eup %4988  ;;  %v3515_v33 = vmul.f32 %v4987_v56, %v7130_v17  ;;  %v3500_v42 = vadd.f32 1e-05, %v3486_v32 }
0x10ed   :  { %v3514_v25 = vmul.f32 %v4989_v3, %v7132_v43  ;;  %4990 = vrcp.f32 %v3501_v46 }
0x10ee   :  { %v3529_v18 = vmul.f32 %v7167_v62, %v3515_v33  ;;  %4992 = vrcp.f32 %v3500_v42 }
0x10ef   :  { %v3528_v21 = vmul.f32 %v7167_v62, %v3514_v25 }
0x10f0   :  { %v3543_v39 = vadd.f32 %v3878_v51, %v3529_v18 }
0x10f1   :  { %v3542_v14 = vadd.f32 %v3878_v51, %v3528_v21 }
0x10f3   :  { %4417 = vmatprep.mubr.msk.f32.mxu1 %vm77_vm0, %v3542_v14 }
0x10f4   :  { %4418 = vmatmul.mubr.msk.f32.gmra.mrb[60].mxu1 %vm77_vm0, %v3543_v39 }
0x10f7   :  { %v4991_v17 = vpop.eup %4990 }
0x10f8   :  { %v3517_v26 = vmul.f32 %v4991_v17, %v7140_v9  ;;  %v4993_v38 = vpop.eup %4992 }
0x10f9   :  { %v3516_v43 = vmul.f32 %v4993_v38, %v7142_v5 }
0x10fa   :  { %v3531_v24 = vmul.f32 %v7167_v62, %v3517_v26 }
0x10fb   :  { %v3530_v23 = vmul.f32 %v7167_v62, %v3516_v43 }
0x10fc   :  { %v3545_v30 = vadd.f32 %v3878_v51, %v3531_v24 }
0x10fd   :  { %v3544_v35 = vadd.f32 %v3878_v51, %v3530_v23 }
0x10ff   :  { %4420 = vmatprep.mubr.msk.f32.mxu1 %vm77_vm0, %v3544_v35 }
0x1100   :  { %4421 = vmatmul.mubr.msk.f32.gmra.mrb[62].mxu1 %vm77_vm0, %v3545_v30 }
0x11b4   :  { %v4413_v4 = vpop.f32.mrb[56].mxu1 }
0x11b5   :  { %3680 = vst [vmem:[#allocation2 + $0x8] sm:$0xff] %v4413_v4  ;;  %v3640_v16 = vpop.f32.mrb[57].mxu1 }
0x11b6   :  { %3679 = vst [vmem:[#allocation2] sm:$0xff] %v3640_v16 }
0x11b8   :  { %v4416_v31 = vpop.f32.mrb[58].mxu1 }
0x11b9   :  { %3682 = vst [vmem:[#allocation2 + $0x18] sm:$0xff] %v4416_v31  ;;  %v3650_v9 = vpop.f32.mrb[59].mxu1 }
0x11ba   :  { %3681 = vst [vmem:[#allocation2 + $0x10] sm:$0xff] %v3650_v9 }
0x11c7   :  { %v4419_v58 = vpop.f32.mrb[60].mxu1 }
0x11c8   :  { %3684 = vst [vmem:[#allocation2 + $0x28] sm:$0xff] %v4419_v58  ;;  %v3660_v5 = vpop.f32.mrb[61].mxu1 }
0x11c9   :  { %3683 = vst [vmem:[#allocation2 + $0x20] sm:$0xff] %v3660_v5 }
0x11d3   :  { %v4422_v62 = vpop.f32.mrb[62].mxu1 }
0x11d4   :  { %3686 = vst [vmem:[#allocation2 + $0x38] sm:$0xff] %v4422_v62  ;;  %v3670_v19 = vpop.f32.mrb[63].mxu1 }
0x11d5   :  { %3685 = vst [vmem:[#allocation2 + $0x30] sm:$0xff] %v3670_v19 }
0x11d6   :  { %5029 = shalt.err (!%p5026_p4)
}
0x11d7   :  { %s5030_s30 = scalar_lea.hbm %s7222_s15, 1024 }
0x11d8   :  { %p5031_p5 = scmp.ne.s32.totalorder %s7222_s15, %s5030_s30  ;;  %p5034_p6 = scmp.lt.u32.totalorder %s5030_s30, %s7222_s15 }
0x11da   :  { %p5036_p7 = pnand %p5034_p6, %p5031_p5 }
0x11dc   :  { %5039 = shalt.err (!%p5036_p7)
}
0x11dd   :  { %s5043_s5 = smov 128   ;;  %s5044_s18 = smov 8  }
0x11de   :  { %3698 = dma.vmem_to_hbm [thread:$0]  %s3693_s4, 1024, %s7222_s15, [#allocation3], %s5043_s5, %s5043_s5, %s5044_s18  }
0x11df   :  { %5040 = dma.done.wait [#allocation3], 1024  }
0x11e0   :  { %5041 = vsyncadd [#allocation3], 4294966272 }
0x11e1   :  { %3702 = vsyncpa [#allocation3], 1 }

</bundles_post_ra>
